<compile_context>
chip_gen: v6e
topology: v6e:2x2x1
jax: 0.10.0
libtpu: 0.0.40
codegen_flags: <defaults>
</compile_context>

<pallas_src>
import jax
import jax.numpy as jnp
from jax import lax
from jax.experimental import pallas as pl
from jax.experimental.pallas import tpu as pltpu


# ----------------------------------------------------------------------------
# Static configuration of the stand-in extractor / head
# ----------------------------------------------------------------------------
CP = 8           # input channels padded 3 -> 8 (zero-padded, K-dim friendly)
F_CONV = 128     # conv output channels (natively lane-dense)
D_FEAT = 512     # raw / id feature width (matches InceptionResnetV1 output)
N_CLS = 6        # age classes
N_CLS_PAD = 128  # classifier output padded to a lane-dense width


# ----------------------------------------------------------------------------
# Fused Pallas kernel: conv3x3 + ReLU + GAP + proj + head, one batch element
# per grid step.
# ----------------------------------------------------------------------------
def _make_kernel(H, W):
    Wp = W + 2          # padded row width (1 col of zero pad on each side)
    L = H * Wp          # flat rows covering all output pixels (pad cols masked)

    def kernel(x_ref, pool_ref, cw_ref, cb_ref, pw_ref, pb_ref,
               wa_ref, ba_ref, wc_ref, bc_ref, id_ref, age_ref):
        # x_ref   : (1, (H+3)*Wp, CP)  bf16  zero-padded NHWC image, flattened
        # pool_ref: (1, L)             bf16  masked mean-pool row (1/(H*W) or 0)
        # cw_ref  : (9, CP, F)         bf16  conv taps, t = dy*3 + dx
        # cb_ref  : (1, F)             f32
        # pw_ref  : (F, D)             bf16  projection to 512
        # pb_ref  : (1, D)             f32
        # wa_ref  : (D, D)  bf16 / ba_ref: (1, D) f32    age_feature_transform
        # wc_ref  : (D, 128) bf16 / bc_ref: (1, 128) f32 age_classify (padded)
        # id_ref  : (1, 1, D)   f32 out
        # age_ref : (1, 1, 128) f32 out
        F = cw_ref.shape[-1]

        # ---- 3x3 SAME conv as 9 shifted-slab matmuls, f32 accumulation ----
        # slab[r] = padded_image[r + dy*Wp + dx]; for output pixel r = y*Wp + x
        # (x < W valid) this is exactly pixel (y+dy, x+dx) of the padded image.
        acc = jnp.zeros((L, F), jnp.float32)
        for t in range(9):                       # static unroll: 9 MXU pushes
            dy, dx = divmod(t, 3)
            s = dy * Wp + dx
            slab = x_ref[0, s:s + L, :]                       # (L, CP) bf16
            acc = acc + jnp.dot(slab, cw_ref[t],
                                preferred_element_type=jnp.float32)
        act = jnp.maximum(acc + cb_ref[...], 0.0)             # ReLU, f32 (VPU)

        # ---- global average pool as one matmul (mask folds out pad cols) ----
        pooled = jnp.dot(pool_ref[...], act.astype(jnp.bfloat16),
                         preferred_element_type=jnp.float32)  # (1, F)

        # ---- projection to raw features (one row of the (B,512) contract) ----
        raw = jnp.dot(pooled.astype(jnp.bfloat16), pw_ref[...],
                      preferred_element_type=jnp.float32) + pb_ref[...]  # (1, D)

        # ---- head: age_feature_transform -> normalize(raw) -> age_classify ----
        age_feat = jnp.dot(raw.astype(jnp.bfloat16), wa_ref[...],
                           preferred_element_type=jnp.float32) + ba_ref[...]

        # F.normalize(raw, p=2, dim=1, eps=1e-12): rsqrt on EUP, multiply on VPU.
        sq = jnp.sum(raw * raw, axis=1, keepdims=True)
        inv = lax.rsqrt(jnp.maximum(sq, 1e-24))     # == 1 / max(||raw||, 1e-12)
        id_ref[0] = raw * inv

        age_ref[0] = jnp.dot(age_feat.astype(jnp.bfloat16), wc_ref[...],
                             preferred_element_type=jnp.float32) + bc_ref[...]

    return kernel


# ----------------------------------------------------------------------------
# Wrapper: layout plumbing + single fused pallas_call
# ----------------------------------------------------------------------------
def aicnn_t_forward(x, params):
    """x: (B, C, H, W) float32 NCHW -> (id_feature (B,512), age_out (B,6))."""
    B, C, H, W = x.shape
    Hr, Wp = H + 3, W + 2       # 1 row pad top, 2 bottom; 1 col pad each side
    Np, L = Hr * Wp, H * Wp
    F = params["conv_w"].shape[-1]
    D = params["proj_w"].shape[-1]
    n_cls = params["w_cls"].shape[-1]

    # Layout plumbing only (no K^2 im2col inflation): NCHW -> padded NHWC,
    # channels zero-padded to CP, rows flattened; bf16 for MXU-rate feeds.
    xh = jnp.transpose(x, (0, 2, 3, 1))                            # (B,H,W,C)
    xh = jnp.pad(xh, ((0, 0), (1, 2), (1, 1), (0, CP - C)))        # (B,Hr,Wp,CP)
    xp = xh.reshape(B, Np, CP).astype(jnp.bfloat16)

    # Masked mean-pool row: 1/(H*W) on valid columns (x < W), 0 on pad columns.
    r = jnp.arange(L)
    pool = jnp.where((r % Wp) < W, 1.0 / (H * W), 0.0)
    pool = pool.astype(jnp.bfloat16)[None, :]                      # (1, L)

    # bf16 MXU weights (f32 accumulate in-kernel); biases stay f32.
    cw = params["conv_w"].astype(jnp.bfloat16)                     # (9, CP, F)
    pw = params["proj_w"].astype(jnp.bfloat16)                     # (F, D)
    wa = params["w_age"].astype(jnp.bfloat16)                      # (D, D)
    wc = jnp.pad(params["w_cls"].astype(jnp.bfloat16),
                 ((0, 0), (0, N_CLS_PAD - n_cls)))                 # (D, 128)
    bc = jnp.pad(params["b_cls"].astype(jnp.float32),
                 ((0, 0), (0, N_CLS_PAD - n_cls)))                 # (1, 128)

    kernel = _make_kernel(H, W)

    grid_spec = pltpu.PrefetchScalarGridSpec(
        num_scalar_prefetch=0,
        grid=(B,),                                   # one image per grid step
        in_specs=[
            pl.BlockSpec((1, Np, CP), lambda b: (b, 0, 0)),        # image
            pl.BlockSpec((1, L), lambda b: (0, 0)),                # pool row
            pl.BlockSpec((9, CP, F), lambda b: (0, 0, 0)),         # conv w
            pl.BlockSpec((1, F), lambda b: (0, 0)),                # conv b
            pl.BlockSpec((F, D), lambda b: (0, 0)),                # proj w
            pl.BlockSpec((1, D), lambda b: (0, 0)),                # proj b
            pl.BlockSpec((D, D), lambda b: (0, 0)),                # w_age
            pl.BlockSpec((1, D), lambda b: (0, 0)),                # b_age
            pl.BlockSpec((D, N_CLS_PAD), lambda b: (0, 0)),        # w_cls (pad)
            pl.BlockSpec((1, N_CLS_PAD), lambda b: (0, 0)),        # b_cls (pad)
        ],
        out_specs=[
            pl.BlockSpec((1, 1, D), lambda b: (b, 0, 0)),          # id_feature
            pl.BlockSpec((1, 1, N_CLS_PAD), lambda b: (b, 0, 0)),  # age (padded)
        ],
    )

    id3, age3 = pl.pallas_call(
        kernel,
        out_shape=(jax.ShapeDtypeStruct((B, 1, D), jnp.float32),
                   jax.ShapeDtypeStruct((B, 1, N_CLS_PAD), jnp.float32)),
        grid_spec=grid_spec,
        compiler_params=pltpu.CompilerParams(
            dimension_semantics=("parallel",),       # batch axis -> 2 TCs on v7x
            vmem_limit_bytes=32 * 1024 * 1024,       # explicit budget (v7x-safe)
        ),
    )(xp, pool, cw, params["conv_b"], pw, params["proj_b"],
      wa, params["b_age"], wc, bc)

    id_feature = id3.reshape(B, D)
    age_out = age3.reshape(B, N_CLS_PAD)[:, :n_cls]   # drop lane padding
    return id_feature, age_out


# ----------------------------------------------------------------------------
# Deterministic parameter init (stand-in extractor + exact head shapes)
# ----------------------------------------------------------------------------
def init_params(key, C=3, F=F_CONV, D=D_FEAT, n_cls=N_CLS):
    ks = jax.random.split(key, 8)
    s = 0.05
    conv_w = s * jax.random.normal(ks[0], (9, CP, F), jnp.float32)
    conv_w = conv_w.at[:, C:, :].set(0.0)     # padded input channels unused
    conv_b = s * jax.random.normal(ks[1], (1, F), jnp.float32)
    proj_w = s * jax.random.normal(ks[2], (F, D), jnp.float32)
    proj_b = s * jax.random.normal(ks[3], (1, D), jnp.float32)
    # nn.Linear(512, 512) and nn.Linear(512, 6) (weights stored input-major)
    w_age = s * jax.random.normal(ks[4], (D, D), jnp.float32)
    b_age = s * jax.random.normal(ks[5], (1, D), jnp.float32)
    w_cls = s * jax.random.normal(ks[6], (D, n_cls), jnp.float32)
    b_cls = s * jax.random.normal(ks[7], (1, n_cls), jnp.float32)
    return dict(conv_w=conv_w, conv_b=conv_b, proj_w=proj_w, proj_b=proj_b,
                w_age=w_age, b_age=b_age, w_cls=w_cls, b_cls=b_cls)


if __name__ == "__main__":
    key = jax.random.PRNGKey(0)
    k_x, k_p = jax.random.split(key)

    B, C, H, W = 2, 3, 16, 16
    x = jax.random.normal(k_x, (B, C, H, W), jnp.float32)
    params = init_params(k_p, C=C)

    fwd = jax.jit(aicnn_t_forward)
    id_feature, age_out = fwd(x, params)
    jax.block_until_ready((id_feature, age_out))

    assert id_feature.shape == (B, 512)
    assert age_out.shape == (B, 6)
    # id_feature rows are L2-normalized raw features
    norms = jnp.linalg.norm(id_feature, axis=1)
    assert jnp.allclose(norms, 1.0, atol=1e-3)

    print("KERNEL_OK")
</pallas_src>

<mosaic_0001>
module attributes {stable_mosaic.version = 11 : i64} {
  func.func @kernel(%arg0: i32, %arg1: memref<1x342x8xbf16, #tpu.memory_space<vmem>>, %arg2: memref<1x288xbf16, #tpu.memory_space<vmem>>, %arg3: memref<9x8x128xbf16, #tpu.memory_space<vmem>>, %arg4: memref<1x128xf32, #tpu.memory_space<vmem>>, %arg5: memref<128x512xbf16, #tpu.memory_space<vmem>>, %arg6: memref<1x512xf32, #tpu.memory_space<vmem>>, %arg7: memref<512x512xbf16, #tpu.memory_space<vmem>>, %arg8: memref<1x512xf32, #tpu.memory_space<vmem>>, %arg9: memref<512x128xbf16, #tpu.memory_space<vmem>>, %arg10: memref<1x128xf32, #tpu.memory_space<vmem>>, %arg11: memref<1x1x512xf32, #tpu.memory_space<vmem>>, %arg12: memref<1x1x128xf32, #tpu.memory_space<vmem>>) attributes {dimension_semantics = [#tpu.dimension_semantics<parallel>], iteration_bounds = array<i64: 2>, scalar_prefetch = 0 : i64, scratch_operands = 0 : i64, tpu.core_type = #tpu.core_type<tc>, window_params = [{transform_indices = @transform_0, window_bounds = array<i64: 1, 342, 8>}, {pipeline_mode = #tpu.pipeline_mode<synchronous>, transform_indices = @transform_1, window_bounds = array<i64: 1, 288>}, {pipeline_mode = #tpu.pipeline_mode<synchronous>, transform_indices = @transform_2, window_bounds = array<i64: 9, 8, 128>}, {pipeline_mode = #tpu.pipeline_mode<synchronous>, transform_indices = @transform_3, window_bounds = array<i64: 1, 128>}, {pipeline_mode = #tpu.pipeline_mode<synchronous>, transform_indices = @transform_4, window_bounds = array<i64: 128, 512>}, {pipeline_mode = #tpu.pipeline_mode<synchronous>, transform_indices = @transform_5, window_bounds = array<i64: 1, 512>}, {pipeline_mode = #tpu.pipeline_mode<synchronous>, transform_indices = @transform_6, window_bounds = array<i64: 512, 512>}, {pipeline_mode = #tpu.pipeline_mode<synchronous>, transform_indices = @transform_7, window_bounds = array<i64: 1, 512>}, {pipeline_mode = #tpu.pipeline_mode<synchronous>, transform_indices = @transform_8, window_bounds = array<i64: 512, 128>}, {pipeline_mode = #tpu.pipeline_mode<synchronous>, transform_indices = @transform_9, window_bounds = array<i64: 1, 128>}, {transform_indices = @transform_10, window_bounds = array<i64: 1, 1, 512>}, {transform_indices = @transform_11, window_bounds = array<i64: 1, 1, 128>}]} {
    %cst = arith.constant 0.000000e+00 : f32
    %0 = vector.broadcast %cst : f32 to vector<288x128xf32>
    %c0 = arith.constant 0 : index
    %c0_0 = arith.constant 0 : index
    %c0_1 = arith.constant 0 : index
    %1 = vector.load %arg1[%c0, %c0_0, %c0_1] : memref<1x342x8xbf16, #tpu.memory_space<vmem>>, vector<1x288x8xbf16>
    %2 = vector.shape_cast %1 : vector<1x288x8xbf16> to vector<288x8xbf16>
    %c0_2 = arith.constant 0 : index
    %c0_3 = arith.constant 0 : index
    %c0_4 = arith.constant 0 : index
    %3 = vector.load %arg3[%c0_2, %c0_3, %c0_4] : memref<9x8x128xbf16, #tpu.memory_space<vmem>>, vector<1x8x128xbf16>
    %4 = vector.shape_cast %3 : vector<1x8x128xbf16> to vector<8x128xbf16>
    %cst_5 = arith.constant dense<0.000000e+00> : vector<288x128xf32>
    %5 = tpu.matmul %2, %4, %cst_5 {dimension_numbers = #tpu.dot_dimension_numbers<[1], [0], [0], [1], [0, 0, 1, 1], [], []>} : vector<288x8xbf16>, vector<8x128xbf16>, vector<288x128xf32> -> vector<288x128xf32>
    %6 = arith.addf %0, %5 : vector<288x128xf32>
    %c0_6 = arith.constant 0 : index
    %c1 = arith.constant 1 : index
    %c0_7 = arith.constant 0 : index
    %7 = vector.load %arg1[%c0_6, %c1, %c0_7] : memref<1x342x8xbf16, #tpu.memory_space<vmem>>, vector<1x288x8xbf16>
    %8 = vector.shape_cast %7 : vector<1x288x8xbf16> to vector<288x8xbf16>
    %c1_8 = arith.constant 1 : index
    %c0_9 = arith.constant 0 : index
    %c0_10 = arith.constant 0 : index
    %9 = vector.load %arg3[%c1_8, %c0_9, %c0_10] : memref<9x8x128xbf16, #tpu.memory_space<vmem>>, vector<1x8x128xbf16>
    %10 = vector.shape_cast %9 : vector<1x8x128xbf16> to vector<8x128xbf16>
    %cst_11 = arith.constant dense<0.000000e+00> : vector<288x128xf32>
    %11 = tpu.matmul %8, %10, %cst_11 {dimension_numbers = #tpu.dot_dimension_numbers<[1], [0], [0], [1], [0, 0, 1, 1], [], []>} : vector<288x8xbf16>, vector<8x128xbf16>, vector<288x128xf32> -> vector<288x128xf32>
    %12 = arith.addf %6, %11 : vector<288x128xf32>
    %c0_12 = arith.constant 0 : index
    %c2 = arith.constant 2 : index
    %c0_13 = arith.constant 0 : index
    %13 = vector.load %arg1[%c0_12, %c2, %c0_13] : memref<1x342x8xbf16, #tpu.memory_space<vmem>>, vector<1x288x8xbf16>
    %14 = vector.shape_cast %13 : vector<1x288x8xbf16> to vector<288x8xbf16>
    %c2_14 = arith.constant 2 : index
    %c0_15 = arith.constant 0 : index
    %c0_16 = arith.constant 0 : index
    %15 = vector.load %arg3[%c2_14, %c0_15, %c0_16] : memref<9x8x128xbf16, #tpu.memory_space<vmem>>, vector<1x8x128xbf16>
    %16 = vector.shape_cast %15 : vector<1x8x128xbf16> to vector<8x128xbf16>
    %cst_17 = arith.constant dense<0.000000e+00> : vector<288x128xf32>
    %17 = tpu.matmul %14, %16, %cst_17 {dimension_numbers = #tpu.dot_dimension_numbers<[1], [0], [0], [1], [0, 0, 1, 1], [], []>} : vector<288x8xbf16>, vector<8x128xbf16>, vector<288x128xf32> -> vector<288x128xf32>
    %18 = arith.addf %12, %17 : vector<288x128xf32>
    %c0_18 = arith.constant 0 : index
    %c18 = arith.constant 18 : index
    %c0_19 = arith.constant 0 : index
    %19 = vector.load %arg1[%c0_18, %c18, %c0_19] : memref<1x342x8xbf16, #tpu.memory_space<vmem>>, vector<1x288x8xbf16>
    %20 = vector.shape_cast %19 : vector<1x288x8xbf16> to vector<288x8xbf16>
    %c3 = arith.constant 3 : index
    %c0_20 = arith.constant 0 : index
    %c0_21 = arith.constant 0 : index
    %21 = vector.load %arg3[%c3, %c0_20, %c0_21] : memref<9x8x128xbf16, #tpu.memory_space<vmem>>, vector<1x8x128xbf16>
    %22 = vector.shape_cast %21 : vector<1x8x128xbf16> to vector<8x128xbf16>
    %cst_22 = arith.constant dense<0.000000e+00> : vector<288x128xf32>
    %23 = tpu.matmul %20, %22, %cst_22 {dimension_numbers = #tpu.dot_dimension_numbers<[1], [0], [0], [1], [0, 0, 1, 1], [], []>} : vector<288x8xbf16>, vector<8x128xbf16>, vector<288x128xf32> -> vector<288x128xf32>
    %24 = arith.addf %18, %23 : vector<288x128xf32>
    %c0_23 = arith.constant 0 : index
    %c19 = arith.constant 19 : index
    %c0_24 = arith.constant 0 : index
    %25 = vector.load %arg1[%c0_23, %c19, %c0_24] : memref<1x342x8xbf16, #tpu.memory_space<vmem>>, vector<1x288x8xbf16>
    %26 = vector.shape_cast %25 : vector<1x288x8xbf16> to vector<288x8xbf16>
    %c4 = arith.constant 4 : index
    %c0_25 = arith.constant 0 : index
    %c0_26 = arith.constant 0 : index
    %27 = vector.load %arg3[%c4, %c0_25, %c0_26] : memref<9x8x128xbf16, #tpu.memory_space<vmem>>, vector<1x8x128xbf16>
    %28 = vector.shape_cast %27 : vector<1x8x128xbf16> to vector<8x128xbf16>
    %cst_27 = arith.constant dense<0.000000e+00> : vector<288x128xf32>
    %29 = tpu.matmul %26, %28, %cst_27 {dimension_numbers = #tpu.dot_dimension_numbers<[1], [0], [0], [1], [0, 0, 1, 1], [], []>} : vector<288x8xbf16>, vector<8x128xbf16>, vector<288x128xf32> -> vector<288x128xf32>
    %30 = arith.addf %24, %29 : vector<288x128xf32>
    %c0_28 = arith.constant 0 : index
    %c20 = arith.constant 20 : index
    %c0_29 = arith.constant 0 : index
    %31 = vector.load %arg1[%c0_28, %c20, %c0_29] : memref<1x342x8xbf16, #tpu.memory_space<vmem>>, vector<1x288x8xbf16>
    %32 = vector.shape_cast %31 : vector<1x288x8xbf16> to vector<288x8xbf16>
    %c5 = arith.constant 5 : index
    %c0_30 = arith.constant 0 : index
    %c0_31 = arith.constant 0 : index
    %33 = vector.load %arg3[%c5, %c0_30, %c0_31] : memref<9x8x128xbf16, #tpu.memory_space<vmem>>, vector<1x8x128xbf16>
    %34 = vector.shape_cast %33 : vector<1x8x128xbf16> to vector<8x128xbf16>
    %cst_32 = arith.constant dense<0.000000e+00> : vector<288x128xf32>
    %35 = tpu.matmul %32, %34, %cst_32 {dimension_numbers = #tpu.dot_dimension_numbers<[1], [0], [0], [1], [0, 0, 1, 1], [], []>} : vector<288x8xbf16>, vector<8x128xbf16>, vector<288x128xf32> -> vector<288x128xf32>
    %36 = arith.addf %30, %35 : vector<288x128xf32>
    %c0_33 = arith.constant 0 : index
    %c36 = arith.constant 36 : index
    %c0_34 = arith.constant 0 : index
    %37 = vector.load %arg1[%c0_33, %c36, %c0_34] : memref<1x342x8xbf16, #tpu.memory_space<vmem>>, vector<1x288x8xbf16>
    %38 = vector.shape_cast %37 : vector<1x288x8xbf16> to vector<288x8xbf16>
    %c6 = arith.constant 6 : index
    %c0_35 = arith.constant 0 : index
    %c0_36 = arith.constant 0 : index
    %39 = vector.load %arg3[%c6, %c0_35, %c0_36] : memref<9x8x128xbf16, #tpu.memory_space<vmem>>, vector<1x8x128xbf16>
    %40 = vector.shape_cast %39 : vector<1x8x128xbf16> to vector<8x128xbf16>
    %cst_37 = arith.constant dense<0.000000e+00> : vector<288x128xf32>
    %41 = tpu.matmul %38, %40, %cst_37 {dimension_numbers = #tpu.dot_dimension_numbers<[1], [0], [0], [1], [0, 0, 1, 1], [], []>} : vector<288x8xbf16>, vector<8x128xbf16>, vector<288x128xf32> -> vector<288x128xf32>
    %42 = arith.addf %36, %41 : vector<288x128xf32>
    %c0_38 = arith.constant 0 : index
    %c37 = arith.constant 37 : index
    %c0_39 = arith.constant 0 : index
    %43 = vector.load %arg1[%c0_38, %c37, %c0_39] : memref<1x342x8xbf16, #tpu.memory_space<vmem>>, vector<1x288x8xbf16>
    %44 = vector.shape_cast %43 : vector<1x288x8xbf16> to vector<288x8xbf16>
    %c7 = arith.constant 7 : index
    %c0_40 = arith.constant 0 : index
    %c0_41 = arith.constant 0 : index
    %45 = vector.load %arg3[%c7, %c0_40, %c0_41] : memref<9x8x128xbf16, #tpu.memory_space<vmem>>, vector<1x8x128xbf16>
    %46 = vector.shape_cast %45 : vector<1x8x128xbf16> to vector<8x128xbf16>
    %cst_42 = arith.constant dense<0.000000e+00> : vector<288x128xf32>
    %47 = tpu.matmul %44, %46, %cst_42 {dimension_numbers = #tpu.dot_dimension_numbers<[1], [0], [0], [1], [0, 0, 1, 1], [], []>} : vector<288x8xbf16>, vector<8x128xbf16>, vector<288x128xf32> -> vector<288x128xf32>
    %48 = arith.addf %42, %47 : vector<288x128xf32>
    %c0_43 = arith.constant 0 : index
    %c38 = arith.constant 38 : index
    %c0_44 = arith.constant 0 : index
    %49 = vector.load %arg1[%c0_43, %c38, %c0_44] : memref<1x342x8xbf16, #tpu.memory_space<vmem>>, vector<1x288x8xbf16>
    %50 = vector.shape_cast %49 : vector<1x288x8xbf16> to vector<288x8xbf16>
    %c8 = arith.constant 8 : index
    %c0_45 = arith.constant 0 : index
    %c0_46 = arith.constant 0 : index
    %51 = vector.load %arg3[%c8, %c0_45, %c0_46] : memref<9x8x128xbf16, #tpu.memory_space<vmem>>, vector<1x8x128xbf16>
    %52 = vector.shape_cast %51 : vector<1x8x128xbf16> to vector<8x128xbf16>
    %cst_47 = arith.constant dense<0.000000e+00> : vector<288x128xf32>
    %53 = tpu.matmul %50, %52, %cst_47 {dimension_numbers = #tpu.dot_dimension_numbers<[1], [0], [0], [1], [0, 0, 1, 1], [], []>} : vector<288x8xbf16>, vector<8x128xbf16>, vector<288x128xf32> -> vector<288x128xf32>
    %54 = arith.addf %48, %53 : vector<288x128xf32>
    %c0_48 = arith.constant 0 : index
    %c0_49 = arith.constant 0 : index
    %55 = vector.load %arg4[%c0_48, %c0_49] : memref<1x128xf32, #tpu.memory_space<vmem>>, vector<1x128xf32>
    %56 = vector.broadcast %55 : vector<1x128xf32> to vector<288x128xf32>
    %57 = arith.addf %54, %56 : vector<288x128xf32>
    %cst_50 = arith.constant 0.000000e+00 : f32
    %58 = vector.broadcast %cst_50 : f32 to vector<288x128xf32>
    %59 = arith.maximumf %57, %58 : vector<288x128xf32>
    %c0_51 = arith.constant 0 : index
    %c0_52 = arith.constant 0 : index
    %60 = vector.load %arg2[%c0_51, %c0_52] : memref<1x288xbf16, #tpu.memory_space<vmem>>, vector<1x288xbf16>
    %61 = arith.truncf %59 : vector<288x128xf32> to vector<288x128xbf16>
    %cst_53 = arith.constant dense<0.000000e+00> : vector<1x128xf32>
    %62 = tpu.matmul %60, %61, %cst_53 {dimension_numbers = #tpu.dot_dimension_numbers<[1], [0], [0], [1], [0, 0, 1, 1], [], []>} : vector<1x288xbf16>, vector<288x128xbf16>, vector<1x128xf32> -> vector<1x128xf32>
    %63 = arith.truncf %62 : vector<1x128xf32> to vector<1x128xbf16>
    %c0_54 = arith.constant 0 : index
    %c0_55 = arith.constant 0 : index
    %64 = vector.load %arg5[%c0_54, %c0_55] : memref<128x512xbf16, #tpu.memory_space<vmem>>, vector<128x512xbf16>
    %cst_56 = arith.constant dense<0.000000e+00> : vector<1x512xf32>
    %65 = tpu.matmul %63, %64, %cst_56 {dimension_numbers = #tpu.dot_dimension_numbers<[1], [0], [0], [1], [0, 0, 1, 1], [], []>} : vector<1x128xbf16>, vector<128x512xbf16>, vector<1x512xf32> -> vector<1x512xf32>
    %c0_57 = arith.constant 0 : index
    %c0_58 = arith.constant 0 : index
    %66 = vector.load %arg6[%c0_57, %c0_58] : memref<1x512xf32, #tpu.memory_space<vmem>>, vector<1x512xf32>
    %67 = arith.addf %65, %66 : vector<1x512xf32>
    %68 = arith.truncf %67 : vector<1x512xf32> to vector<1x512xbf16>
    %c0_59 = arith.constant 0 : index
    %c0_60 = arith.constant 0 : index
    %69 = vector.load %arg7[%c0_59, %c0_60] : memref<512x512xbf16, #tpu.memory_space<vmem>>, vector<512x512xbf16>
    %cst_61 = arith.constant dense<0.000000e+00> : vector<1x512xf32>
    %70 = tpu.matmul %68, %69, %cst_61 {dimension_numbers = #tpu.dot_dimension_numbers<[1], [0], [0], [1], [0, 0, 1, 1], [], []>} : vector<1x512xbf16>, vector<512x512xbf16>, vector<1x512xf32> -> vector<1x512xf32>
    %c0_62 = arith.constant 0 : index
    %c0_63 = arith.constant 0 : index
    %71 = vector.load %arg8[%c0_62, %c0_63] : memref<1x512xf32, #tpu.memory_space<vmem>>, vector<1x512xf32>
    %72 = arith.addf %70, %71 : vector<1x512xf32>
    %73 = arith.mulf %67, %67 : vector<1x512xf32>
    %cst_64 = arith.constant dense<0.000000e+00> : vector<1xf32>
    %74 = vector.multi_reduction <add>, %73, %cst_64 [1] : vector<1x512xf32> to vector<1xf32>
    %75 = vector.shape_cast %74 : vector<1xf32> to vector<1x1xf32>
    %cst_65 = arith.constant 1.000000e-24 : f32
    %76 = vector.broadcast %cst_65 : f32 to vector<1x1xf32>
    %77 = arith.maximumf %75, %76 : vector<1x1xf32>
    %78 = math.rsqrt %77 : vector<1x1xf32>
    %79 = vector.broadcast %78 : vector<1x1xf32> to vector<1x512xf32>
    %80 = arith.mulf %67, %79 : vector<1x512xf32>
    %c0_66 = arith.constant 0 : index
    %c0_67 = arith.constant 0 : index
    %c0_68 = arith.constant 0 : index
    %81 = vector.load %arg11[%c0_66, %c0_67, %c0_68] : memref<1x1x512xf32, #tpu.memory_space<vmem>>, vector<1x1x512xf32>
    %82 = vector.shape_cast %81 : vector<1x1x512xf32> to vector<1x512xf32>
    %83 = vector.shape_cast %80 : vector<1x512xf32> to vector<1x1x512xf32>
    tpu.vector_store %arg11[%c0_66, %c0_67, %c0_68], %83 {strides = array<i32>} : memref<1x1x512xf32, #tpu.memory_space<vmem>>, vector<1x1x512xf32>,
    %84 = arith.truncf %72 : vector<1x512xf32> to vector<1x512xbf16>
    %c0_69 = arith.constant 0 : index
    %c0_70 = arith.constant 0 : index
    %85 = vector.load %arg9[%c0_69, %c0_70] : memref<512x128xbf16, #tpu.memory_space<vmem>>, vector<512x128xbf16>
    %cst_71 = arith.constant dense<0.000000e+00> : vector<1x128xf32>
    %86 = tpu.matmul %84, %85, %cst_71 {dimension_numbers = #tpu.dot_dimension_numbers<[1], [0], [0], [1], [0, 0, 1, 1], [], []>} : vector<1x512xbf16>, vector<512x128xbf16>, vector<1x128xf32> -> vector<1x128xf32>
    %c0_72 = arith.constant 0 : index
    %c0_73 = arith.constant 0 : index
    %87 = vector.load %arg10[%c0_72, %c0_73] : memref<1x128xf32, #tpu.memory_space<vmem>>, vector<1x128xf32>
    %88 = arith.addf %86, %87 : vector<1x128xf32>
    %c0_74 = arith.constant 0 : index
    %c0_75 = arith.constant 0 : index
    %c0_76 = arith.constant 0 : index
    %89 = vector.load %arg12[%c0_74, %c0_75, %c0_76] : memref<1x1x128xf32, #tpu.memory_space<vmem>>, vector<1x1x128xf32>
    %90 = vector.shape_cast %89 : vector<1x1x128xf32> to vector<1x128xf32>
    %91 = vector.shape_cast %88 : vector<1x128xf32> to vector<1x1x128xf32>
    tpu.vector_store %arg12[%c0_74, %c0_75, %c0_76], %91 {strides = array<i32>} : memref<1x1x128xf32, #tpu.memory_space<vmem>>, vector<1x1x128xf32>,
    return
  }
  func.func @transform_0(%arg0: i32) -> (i32, i32, i32) {
    %c0_i32 = arith.constant 0 : i32
    %c0_i32_0 = arith.constant 0 : i32
    %c0_i32_1 = arith.constant 0 : i32
    return %arg0, %c0_i32, %c0_i32_0 : i32, i32, i32
  }
  func.func @transform_1(%arg0: i32) -> (i32, i32) {
    %c0_i32 = arith.constant 0 : i32
    %c0_i32_0 = arith.constant 0 : i32
    %c0_i32_1 = arith.constant 0 : i32
    return %c0_i32, %c0_i32_0 : i32, i32
  }
  func.func @transform_2(%arg0: i32) -> (i32, i32, i32) {
    %c0_i32 = arith.constant 0 : i32
    %c0_i32_0 = arith.constant 0 : i32
    %c0_i32_1 = arith.constant 0 : i32
    %c0_i32_2 = arith.constant 0 : i32
    return %c0_i32, %c0_i32_0, %c0_i32_1 : i32, i32, i32
  }
  func.func @transform_3(%arg0: i32) -> (i32, i32) {
    %c0_i32 = arith.constant 0 : i32
    %c0_i32_0 = arith.constant 0 : i32
    %c0_i32_1 = arith.constant 0 : i32
    return %c0_i32, %c0_i32_0 : i32, i32
  }
  func.func @transform_4(%arg0: i32) -> (i32, i32) {
    %c0_i32 = arith.constant 0 : i32
    %c0_i32_0 = arith.constant 0 : i32
    %c0_i32_1 = arith.constant 0 : i32
    return %c0_i32, %c0_i32_0 : i32, i32
  }
  func.func @transform_5(%arg0: i32) -> (i32, i32) {
    %c0_i32 = arith.constant 0 : i32
    %c0_i32_0 = arith.constant 0 : i32
    %c0_i32_1 = arith.constant 0 : i32
    return %c0_i32, %c0_i32_0 : i32, i32
  }
  func.func @transform_6(%arg0: i32) -> (i32, i32) {
    %c0_i32 = arith.constant 0 : i32
    %c0_i32_0 = arith.constant 0 : i32
    %c0_i32_1 = arith.constant 0 : i32
    return %c0_i32, %c0_i32_0 : i32, i32
  }
  func.func @transform_7(%arg0: i32) -> (i32, i32) {
    %c0_i32 = arith.constant 0 : i32
    %c0_i32_0 = arith.constant 0 : i32
    %c0_i32_1 = arith.constant 0 : i32
    return %c0_i32, %c0_i32_0 : i32, i32
  }
  func.func @transform_8(%arg0: i32) -> (i32, i32) {
    %c0_i32 = arith.constant 0 : i32
    %c0_i32_0 = arith.constant 0 : i32
    %c0_i32_1 = arith.constant 0 : i32
    return %c0_i32, %c0_i32_0 : i32, i32
  }
  func.func @transform_9(%arg0: i32) -> (i32, i32) {
    %c0_i32 = arith.constant 0 : i32
    %c0_i32_0 = arith.constant 0 : i32
    %c0_i32_1 = arith.constant 0 : i32
    return %c0_i32, %c0_i32_0 : i32, i32
  }
  func.func @transform_10(%arg0: i32) -> (i32, i32, i32) {
    %c0_i32 = arith.constant 0 : i32
    %c0_i32_0 = arith.constant 0 : i32
    %c0_i32_1 = arith.constant 0 : i32
    return %arg0, %c0_i32, %c0_i32_0 : i32, i32, i32
  }
  func.func @transform_11(%arg0: i32) -> (i32, i32, i32) {
    %c0_i32 = arith.constant 0 : i32
    %c0_i32_0 = arith.constant 0 : i32
    %c0_i32_1 = arith.constant 0 : i32
    return %arg0, %c0_i32, %c0_i32_0 : i32, i32, i32
  }
}

</mosaic_0001>

<bundles_post_ra>
// kernel: aicnn_t_forward.1
= control target key start
LH: loop header
LB: loop body
LE: loop exit
PB: predicated region body
PF: predicated region fallthrough
CT: control target
= control target key end

     0   :  { %s9857_s0 = inlined_call_operand.vmem [shape: bf16[2,342,8], index: 0, kind: input, shape index: {}]   ;;  %s9858_s1 = inlined_call_operand.vmem [shape: bf16[1,288], index: 1, kind: input, shape index: {}]   ;;  %s9859_s2 = inlined_call_operand.vmem [shape: bf16[9,8,128], index: 2, kind: input, shape index: {}]   ;;  %s9860_s3 = inlined_call_operand.vmem [shape: f32[1,128], index: 3, kind: input, shape index: {}]   ;;  %s9861_s4 = inlined_call_operand.vmem [shape: bf16[128,512], index: 4, kind: input, shape index: {}]   ;;  %s9862_s5 = inlined_call_operand.vmem [shape: f32[1,512], index: 5, kind: input, shape index: {}]   ;;  %s9863_s6 = inlined_call_operand.vmem [shape: bf16[512,512], index: 6, kind: input, shape index: {}]   ;;  %s9864_s7 = inlined_call_operand.vmem [shape: f32[1,512], index: 7, kind: input, shape index: {}]   ;;  %s9865_s8 = inlined_call_operand.vmem [shape: bf16[512,128], index: 8, kind: input, shape index: {}]   ;;  %s9866_s9 = inlined_call_operand.vmem [shape: f32[1,128], index: 9, kind: input, shape index: {}]   ;;  %s9867_s10 = inlined_call_operand.vmem [shape: f32[2,1,512], index: 10, kind: output, shape index: {0}]   ;;  %s9868_s11 = inlined_call_operand.hbm [shape: f32[2,1,128], index: 11, kind: output, shape index: {1}]  }
   0x1   :  { %9880 = sst [smem:[#allocation20_spill]] %s9857_s0 }
   0x2   :  { %17 = vsyncpa [#allocation3], 0 }
   0x3   :  { %19 = vsyncpa [#allocation3 + $0x1], 0  ;;  %s7347_s17 = smov 0   ;;  %s7349_s18 = smov 0  }
   0x4   :  { %s7351_s19 = smov 0   ;;  %s7353_s20 = smov 0  }
   0x5 LB: > { %s7368_s21 = sadd.s32 4294967295, %s7280_s20   ;;  %s5802_s22 = sadd.s32 4294967294, %s7280_s20   ;;  %s7280_s20 = sphi %s7353_s20, %s9926_s20   ;;  %s7276_s19 = sphi %s7351_s19, %s9925_s19   ;;  %s7272_s18 = sphi %s7349_s18, %s9924_s18   ;;  %s7268_s17 = sphi %s7347_s17, %s9923_s17  }
   0x6   : > { %s7372_s23 = sadd.s32 1, %s7280_s20   ;;  %s273_s24 = sadd.s32 1, %s7276_s19 }
   0x7   : > { %s270_s25 = ssub.s32 %s7280_s20, %s7372_s23  ;;  %p283_p0 = scmp.ne.s32.totalorder %s7276_s19, %s7272_s18 }
   0x8   : > { %p271_p1 = scmp.eq.s32.totalorder %s270_s25, 0  ;;  %p284_p2 = scmp.eq.s32.totalorder %s7368_s21, 1 }
   0x9   : > { %p289_p3 = scmp.ne.s32.totalorder %s7272_s18, %s7268_s17  ;;  %p290_p4 = scmp.eq.s32.totalorder %s5802_s22, 1 }
   0xa   : > { %s7383_s26 = scalar_select %p271_p1, %s7276_s19, %s273_s24  }
   0xb   : > { %p7385_p5 = por %p284_p2, %p283_p0  ;;  %p7389_p6 = por %p290_p4, %p289_p3 }
   0xc   : > { %p5805_p7 = scmp.ge.s32.totalorder %s7280_s20, 1  ;;  %p343_p8 = scmp.lt.s32.totalorder %s7280_s20, 3 }
   0xe   : > { %p344_p9 = pnand %p5805_p7, %p343_p8 }
  0x10   : > { %347 = sbr.rel (%p344_p9) target bundleno = 1488 (0x5d0), region = 60 }
  0x15   : > { %v5808_v0 = vld [vmem:[%s9859_s2 + $0x4] sm:$0xf]  ;;  %vm733_vm0 = vcmask 1043456   ;;  %p386_p10 = scmp.lt.s32.totalorder %s7368_s21, 1  ;;  %v432_v2 = vld [vmem:[%s9859_s2] sm:$0xf] }
  0x16   : > { %6830 = vmatprep.subr.msk.bf16.mxu0 %vm733_vm0, %v5808_v0  ;;  %6831 = vmatprep.subr.msk.bf16.mxu1 %vm733_vm0, %v5808_v0  ;;  %v735_v1 = vsel %vm733_vm0, %v5808_v0, 0  ;;  %v5864_v3 = vld [vmem:[%s9859_s2 + $0x8] sm:$0xf]  ;;  %s9883_s0 = sld [smem:[#allocation20_spill]]  ;;  %vm529_vm1 = vsmask.f32 7424 }
  0x17   : > { %6479 = vmatpush3.bf16.msra.mxu0 %v735_v1  ;;  %6829 = vmatpush3.bf16.msra.mxu1 %v735_v1  ;;  %s7409_s16 = scalar_select %p386_p10, %s7368_s21, 1  ;;  %vm678_vm2 = vcmask 64512   ;;  %v951_v8 = vsel %vm733_vm0, %v432_v2, 0  ;;  %v1229_v16 = vsel %vm733_vm0, %v5864_v3, 0  ;;  %v7462_v33 = vld [vmem:[%s9859_s2 + $0x10] sm:$0xf] }
  0x18   : > { %6832 = vmatprep.subr.msk.bf16.mxu1 %vm733_vm0, %v432_v2  ;;  %6833 = vmatprep.subr.msk.bf16.mxu0 %vm733_vm0, %v5864_v3  ;;  %v5884_v45 = vld [vmem:[%s9859_s2 + $0xc] sm:$0xf]  ;;  %vm1136_vm3 = vcmask 1046528   ;;  %vm2336_vm4 = vcmask 1045504   ;;  %vm1889_vm5 = vsmask.f32 6400 }
  0x19   : > { %s6840_s22 = smul.u32 172, %s7409_s16  ;;  %vm3089_vm6 = vsmask.f32 5376  ;;  %vm3536_vm7 = vcmask 1044480   ;;  %vm7284_vm8 = vmmov 0   ;;  %vm3968_vm9 = vcmask 261120  }
  0x1a   : > { %vm5311_vm10 = vcmask 1040384   ;;  %s5807_s24 = sshll.u32 %s7409_s16, 2  ;;  %s384_s16 = sand.u32 1, %s7272_s18  }
  0x1b   : > { %s394_s12 = scalar_lea.vmem %s9867_s10, %s5807_s24  ;;  %s5708_s13 = scalar_lea.sflag [#allocation3], %s384_s16 }
  0x1c   : > { %s7417_s29 = scalar_lea.vmem %s9883_s0, %s6840_s22  ;;  %s6235_s0 = sshll.u32 %s7368_s21, 4 }
  0x1d   : > { %v396_v4 = vld [vmem:[%s7417_s29] sm:$0xf]  ;;  %v7421_v5 = vld [vmem:[%s7417_s29 + $0x4] sm:$0xf]  ;;  %v7427_v7 = vld [vmem:[%s7417_s29 + $0x8] sm:$0xff]   ;;  %s385_s22 = scalar_lea.vmem [#allocation2], %s384_s16 }
  0x1e   : > { %v7424_v6 = vcombine.low %v396_v4, %v7421_v5  ;;  %v538_v11 = vshll.u32 %v7427_v7, 16  ;;  %v542_v12 = vshrl.u32 %v7427_v7, 16  ;;  %v7435_v13 = vld [vmem:[%s7417_s29 + $0x70] sm:$0xff]   ;;  %v7438_v14 = vld [vmem:[%s7417_s29 + $0x78] sm:$0xff]   ;;  %v7450_v24 = vld [vmem:[%s7417_s29 + $0x80] sm:$0xff]   ;;  %s5723_s24 = sshll.u32 %s385_s22, 4  ;;  %s5724_s24 = int_to_ptr.vmem [resolvable:$true] %s5723_s24 }
  0x1f   : > { %v7441_v15 = vld [vmem:[%s7417_s29 + $0x10] sm:$0xff]   ;;  %v642_v19 = vshll.u32 %v7435_v13, 16  ;;  %v646_v20 = vshrl.u32 %v7435_v13, 16  ;;  %v650_v21 = vshll.u32 %v7438_v14, 16  ;;  %v654_v22 = vshrl.u32 %v7438_v14, 16  ;;  %v7455_v28 = vld [vmem:[%s7417_s29 + $0x18] sm:$0xff]  }
  0x20   : > { %v531_v9 = vshrl.u32 %v7424_v6, 16  ;;  %v533_v10 = vshll.u32 %v7424_v6, 16  ;;  %v540_v18 = vrot.slane %v538_v11, 1  ;;  %v546_v23 = vshll.u32 %v7441_v15, 16  ;;  %v7468_v37 = vld [vmem:[%s7417_s29 + $0x88] sm:$0xff]   ;;  %v7472_v39 = vld [vmem:[%s7417_s29 + $0x20] sm:$0xff]  }
  0x21   : > { %v7452_v27 = vrot.slane %v642_v19, 1  ;;  %v652_v29 = vrot.slane %v650_v21, 1  ;;  %v658_v31 = vshll.u32 %v7450_v24, 16  ;;  %v550_v32 = vshrl.u32 %v7441_v15, 16  ;;  %v7477_v44 = vld [vmem:[%s7417_s29 + $0x28] sm:$0xff]   ;;  %v7487_v50 = vld [vmem:[%s7417_s29 + $0x30] sm:$0xff]  }
  0x22   : > { %v535_v17 = vrot.slane %v533_v10, 1  ;;  %v544_v26 = vor.u32 %v542_v12, %v540_v18  ;;  %v548_v30 = vrot.slane %v546_v23, 1  ;;  %v554_v36 = vshll.u32 %v7455_v28, 16  ;;  %v7493_v54 = vld [vmem:[%s7417_s29 + $0x90] ss:$0 sps:$4 sm:$0x11]  }
  0x23   : > { %v648_v35 = vor.u32 %v646_v20, %v7452_v27  ;;  %v662_v38 = vshrl.u32 %v7450_v24, 16  ;;  %v656_v40 = vor.u32 %v654_v22, %v652_v29  ;;  %v660_v42 = vrot.slane %v658_v31, 1  ;;  %v7497_v56 = vld [vmem:[%s7417_s29 + $0x38] sm:$0xff]   ;;  %v7519_v19 = vld [vmem:[%s7417_s29 + $0x40] sm:$0xff]   ;;  %v7524_v23 = vld [vmem:[%s7417_s29 + $0x48] sm:$0xff]   ;;  %s7220_s14 = scalar_lea.vmem %s5724_s24, 16 }
  0x24   : > { %v536_v25 = vor.u32 %v535_v17, %v531_v9  ;;  %v549_v41 = vsel %vm529_vm1, %v544_v26, %v548_v30  ;;  %v552_v43 = vor.u32 %v550_v32, %v548_v30  ;;  %v556_v47 = vrot.slane %v554_v36, 1  ;;  %p7221_p11 = scmp.ne.s32.totalorder %s5724_s24, %s7220_s14  ;;  %s7286_s21 = smov [#allocation2]  }
  0x25   : > { %v653_v46 = vsel %vm529_vm1, %v648_v35, %v652_v29  ;;  %v666_v48 = vshll.u32 %v7468_v37, 16  ;;  %v558_v49 = vshrl.u32 %v7455_v28, 16  ;;  %v661_v51 = vsel %vm529_vm1, %v656_v40, %v660_v42  ;;  %v7536_v35 = vld [vmem:[%s7417_s29 + $0x50] sm:$0xff]  }
  0x26   : > { %v541_v34 = vsel %vm529_vm1, %v536_v25, %v540_v18  ;;  %6508 = vmatprep.mubr.msk.bf16.mxu1 %vm678_vm2, %v653_v46  ;;  %v664_v52 = vor.u32 %v662_v38, %v660_v42  ;;  %v562_v53 = vshll.u32 %v7472_v39, 16  ;;  %v670_v55 = vshrl.u32 %v7468_v37, 16  ;;  %p7222_p12 = pnand %p7221_p11, %p7385_p5 }
  0x27   : > { %6480 = vmatprep.mubr.msk.bf16.mxu0 %vm678_vm2, %v541_v34  ;;  %6509 = vmatmul.mubr.msk.bf16.vlgmr.msra.gmra.mxu1 %vm678_vm2, %v661_v51  ;;  %v557_v57 = vsel %vm529_vm1, %v552_v43, %v556_v47  ;;  %v668_v58 = vrot.slane %v666_v48, 1  ;;  %v560_v59 = vor.u32 %v558_v49, %v556_v47  ;;  %v566_v60 = vshrl.u32 %v7472_v39, 16  ;;  %v7555_v51 = vld [vmem:[%s7417_s29 + $0x60] sm:$0xff]  }
  0x28   : > { %6481 = vmatmul.mubr.msk.bf16.vlgmr.msra.gmra.mxu0 %vm678_vm2, %v549_v41  ;;  %v564_v61 = vrot.slane %v562_v53, 1  ;;  %v674_v62 = vshll.u32 %v7493_v54, 16  ;;  %6517 = vmatpush3.bf16.msra.mxu1 %v951_v8  ;;  %v570_v63 = vshll.u32 %v7477_v44, 16  ;;  %v574_v2 = vshrl.u32 %v7477_v44, 16  ;;  %v7543_v41 = vld [vmem:[%s7417_s29 + $0x58] sm:$0xff]   ;;  %p7223_p13 = pneg %p7222_p12 }
  0x29   : > { %6555 = vmatpush3.bf16.msra.mxu0 %v1229_v16  ;;  %6484 = vmatprep.mubr.msk.bf16.mxu0 %vm678_vm2, %v557_v57  ;;  %v669_v0 = vsel %vm529_vm1, %v664_v52, %v668_v58  ;;  %v672_v1 = vor.u32 %v670_v55, %v668_v58  ;;  %v578_v3 = vshll.u32 %v7487_v50, 16  ;;  %v582_v11 = vshrl.u32 %v7487_v50, 16  ;;  %v7561_v57 = vld [vmem:[%s7417_s29 + $0x68] sm:$0xff]  }
  0x2a   : > { %6835 = vmatprep.subr.msk.bf16.mxu0 %vm733_vm0, %v7462_v33  ;;  %6834 = vmatprep.subr.msk.bf16.mxu1 %vm733_vm0, %v5884_v45  ;;  %v565_v4 = vsel %vm529_vm1, %v560_v59, %v564_v61  ;;  %v676_v9 = vrot.slane %v674_v62, 1  ;;  %v568_v10 = vor.u32 %v566_v60, %v564_v61  ;;  %v572_v8 = vrot.slane %v570_v63, 1 }
  0x2b   : > { %6512 = vmatprep.mubr.msk.bf16.mxu1 %vm678_vm2, %v669_v0  ;;  %v586_v12 = vshll.u32 %v7497_v56, 16  ;;  %v580_v18 = vrot.slane %v578_v3, 1  ;;  %v594_v25 = vshll.u32 %v7519_v19, 16  ;;  %v590_v29 = vshrl.u32 %v7497_v56, 16 }
  0x2c   : > { %v677_v16 = vsel %vm529_vm1, %v672_v1, %v676_v9  ;;  %v573_v17 = vsel %vm529_vm1, %v568_v10, %v572_v8  ;;  %v576_v20 = vor.u32 %v574_v2, %v572_v8  ;;  %v598_v31 = vshrl.u32 %v7519_v19, 16 }
  0x2d   : > { %v584_v21 = vor.u32 %v582_v11, %v580_v18  ;;  %v588_v22 = vrot.slane %v586_v12, 1  ;;  %v602_v32 = vshll.u32 %v7524_v23, 16  ;;  %v596_v34 = vrot.slane %v594_v25, 1  ;;  %v7607_v25 = vld [vmem:[%s7417_s29 + $0xc] sm:$0xf] }
  0x2e   : > { %v581_v26 = vsel %vm529_vm1, %v576_v20, %v580_v18  ;;  %v1668_v36 = vsel %vm733_vm0, %v5884_v45, 0  ;;  %v610_v42 = vshll.u32 %v7536_v35, 16  ;;  %v606_v46 = vshrl.u32 %v7524_v23, 16 }
  0x2f   : > { %6513 = vmatmul.mubr.msk.bf16.gmra.mxu1 %vm678_vm2, %v677_v16  ;;  %v589_v30 = vsel %vm529_vm1, %v584_v21, %v588_v22  ;;  %v600_v38 = vor.u32 %v598_v31, %v596_v34  ;;  %v604_v40 = vrot.slane %v602_v32, 1  ;;  %v614_v47 = vshrl.u32 %v7536_v35, 16  ;;  %v7618_v31 = vld [vmem:[%s7417_s29 + $0x18] sm:$0xff]  }
  0x30   : > { %6485 = vmatmul.mubr.msk.bf16.gmra.mxu0 %vm678_vm2, %v565_v4  ;;  %6518 = vmatprep.mubr.msk.bf16.mxu1 %vm678_vm2, %v7424_v6  ;;  %v592_v6 = vor.u32 %v590_v29, %v588_v22  ;;  %v618_v48 = vshll.u32 %v7543_v41, 16  ;;  %v612_v49 = vrot.slane %v610_v42, 1  ;;  %v626_v58 = vshll.u32 %v7555_v51, 16 }
  0x31   : > { %6488 = vmatprep.mubr.msk.bf16.mxu0 %vm678_vm2, %v573_v17  ;;  %v605_v45 = vsel %vm529_vm1, %v600_v38, %v604_v40  ;;  %v608_v52 = vor.u32 %v606_v46, %v604_v40  ;;  %v1170_v59 = vrot.slane %v7468_v37, 1  ;;  %v622_v61 = vshrl.u32 %v7543_v41, 16  ;;  %v7592_v17 = vld [vmem:[%s9859_s2 + $0x14] sm:$0xf]  ;;  %v7636_v40 = vld [vmem:[%s7417_s29 + $0x28] sm:$0xff]  }
  0x32   : > { %v597_v43 = vsel %vm529_vm1, %v592_v6, %v596_v34  ;;  %v616_v53 = vor.u32 %v614_v47, %v612_v49  ;;  %v620_v55 = vrot.slane %v618_v48, 1  ;;  %v630_v62 = vshrl.u32 %v7555_v51, 16  ;;  %v7627_v34 = vld [vmem:[%s7417_s29 + $0x20] sm:$0xff]   ;;  %v7651_v47 = vld [vmem:[%s7417_s29 + $0x30] sm:$0xff]  }
  0x33   : > { %v613_v60 = vsel %vm529_vm1, %v608_v52, %v612_v49  ;;  %v634_v0 = vshll.u32 %v7561_v57, 16  ;;  %v1172_v1 = vrot.slane %v7493_v54, 1  ;;  %v628_v2 = vrot.slane %v626_v58, 1  ;;  %v1130_v54 = vld [vmem:[%s7417_s29] sm:$0xe] }
  0x34   : > { %v621_v63 = vsel %vm529_vm1, %v616_v53, %v620_v55  ;;  %v624_v4 = vor.u32 %v622_v61, %v620_v55  ;;  %v638_v11 = vshrl.u32 %v7561_v57, 16  ;;  %v5865_v16 = vcombine.low %v1130_v54, %v7421_v5  ;;  %v7663_v53 = vld [vmem:[%s7417_s29 + $0x38] sm:$0xff]  }
  0x35   : > { %v7577_v3 = vsel %vm1136_vm3, %v1170_v59, %v1172_v1  ;;  %v632_v9 = vor.u32 %v630_v62, %v628_v2  ;;  %v636_v10 = vrot.slane %v634_v0, 1  ;;  %v1138_v5 = vrot.slane %v7427_v7, 1 }
  0x36   : > { %v629_v8 = vsel %vm529_vm1, %v624_v4, %v628_v2  ;;  %v1137_v20 = vrot.slane %v5865_v16, 1  ;;  %v1140_v29 = vrot.slane %v7441_v15, 1  ;;  %v2340_v6 = vrot.slane %v7618_v31, 2  ;;  %v7691_v2 = vld [vmem:[%s7417_s29 + $0x50] sm:$0xff]   ;;  %v1444_v16 = vld [vmem:[%s7417_s29 + $0x8] sm:$0xe] }
  0x37   : > { %6519 = vmatmul.mubr.msk.bf16.vlgmr.msra.gmra.mxu1 %vm678_vm2, %v7427_v7  ;;  %v637_v12 = vsel %vm529_vm1, %v632_v9, %v636_v10  ;;  %v640_v18 = vor.u32 %v638_v11, %v636_v10  ;;  %v1142_v7 = vrot.slane %v7455_v28, 1  ;;  %v2115_v42 = vsel %vm733_vm0, %v7462_v33, 0 }
  0x38   : > { %6489 = vmatmul.mubr.msk.bf16.gmra.mxu0 %vm678_vm2, %v581_v26  ;;  %6522 = vmatprep.mubr.msk.bf16.mxu1 %vm678_vm2, %v7441_v15  ;;  %v1139_v22 = vsel %vm1136_vm3, %v1137_v20, %v1138_v5  ;;  %v2330_v26 = vld [vmem:[%s7417_s29 + $0x8] sm:$0xc]  ;;  %v2342_v46 = vrot.slane %v7627_v34, 2  ;;  %v2344_v33 = vrot.slane %v7636_v40, 2  ;;  %v1144_v49 = vrot.slane %v7472_v39, 1 }
  0x39   : > { %6492 = vmatprep.mubr.msk.bf16.mxu0 %vm678_vm2, %v589_v30  ;;  %6593 = vmatpush3.bf16.msra.mxu1 %v1668_v36  ;;  %v645_v21 = vsel %vm529_vm1, %v640_v18, %v7452_v27  ;;  %v7613_v30 = vld [vmem:[%s7417_s29 + $0x10] sm:$0xff]   ;;  %v5943_v27 = vcombine.low %v2330_v26, %v7607_v25  ;;  %v1143_v38 = vsel %vm1136_vm3, %v1140_v29, %v1142_v7  ;;  %v1146_v52 = vrot.slane %v7477_v44, 1  ;;  %v7713_v18 = vld [vmem:[%s7417_s29 + $0x60] sm:$0xff]  }
  0x3a   : > { %6836 = vmatprep.subr.msk.bf16.mxu1 %vm733_vm0, %v7592_v17  ;;  %v2338_v32 = vrot.slane %v7613_v30, 2  ;;  %v7654_v48 = vsel %vm2336_vm4, %v2340_v6, %v2342_v46  ;;  %v7666_v55 = vsel %vm2336_vm4, %v2342_v46, %v2344_v33  ;;  %v2346_v58 = vrot.slane %v7651_v47, 2 }
  0x3b   : > { %v2337_v15 = vrot.slane %v5943_v27, 2  ;;  %v1145_v61 = vsel %vm1136_vm3, %v1142_v7, %v1144_v49  ;;  %v1147_v62 = vsel %vm1136_vm3, %v1144_v49, %v1146_v52  ;;  %v1148_v10 = vrot.slane %v7487_v50, 1 }
  0x3c   : > { %v1150_v54 = vrot.slane %v7497_v56, 1  ;;  %v2358_v26 = vrot.slane %v7713_v18, 2  ;;  %v7731_v7 = vcombine.low %v1444_v16, %v7607_v25 }
  0x3d   : > { %v7632_v36 = vsel %vm2336_vm4, %v2337_v15, %v2338_v32 }
  0x3e   : > { %v1576_v25 = vrot.slane %v7731_v7, 1 }
  0x3f   : > { %6523 = vmatmul.mubr.msk.bf16.gmra.mxu1 %vm678_vm2, %v7455_v28  ;;  %v1141_v28 = vsel %vm1136_vm3, %v1138_v5, %v1140_v29  ;;  %v7721_v5 = vld [vmem:[%s7417_s29 + $0x68] sm:$0xff]  }
  0x40   : > { %6493 = vmatmul.mubr.msk.bf16.gmra.mxu0 %vm678_vm2, %v597_v43  ;;  %6526 = vmatprep.mubr.msk.bf16.mxu1 %vm678_vm2, %v7472_v39  ;;  %v7641_v43 = vsel %vm2336_vm4, %v2338_v32, %v2340_v6  ;;  %v7674_v39 = vld [vmem:[%s7417_s29 + $0x40] sm:$0xff]   ;;  %v2360_v29 = vrot.slane %v7721_v5, 2  ;;  %v1152_v32 = vrot.slane %v7519_v19, 1  ;;  %v1154_v6 = vrot.slane %v7524_v23, 1 }
  0x41   : > { %6496 = vmatprep.mubr.msk.bf16.mxu0 %vm678_vm2, %v605_v45  ;;  %v7647_v45 = vld [vmem:[%s9859_s2 + $0x18] sm:$0xf]  ;;  %v2350_v1 = vrot.slane %v7674_v39, 2 }
  0x42   : > { %v7739_v15 = vsel %vm2336_vm4, %v2358_v26, %v2360_v29  ;;  %v1155_v46 = vsel %vm1136_vm3, %v1152_v32, %v1154_v6 }
  0x47   : > { %6527 = vmatmul.mubr.msk.bf16.gmra.mxu1 %vm678_vm2, %v7477_v44  ;;  %v2348_v44 = vrot.slane %v7663_v53, 2 }
  0x48   : > { %6497 = vmatmul.mubr.msk.bf16.gmra.mxu0 %vm678_vm2, %v613_v60  ;;  %6530 = vmatprep.mubr.msk.bf16.mxu1 %vm678_vm2, %v7487_v50  ;;  %v7677_v60 = vsel %vm2336_vm4, %v2344_v33, %v2346_v58 }
  0x49   : > { %6500 = vmatprep.mubr.msk.bf16.mxu0 %vm678_vm2, %v621_v63  ;;  %v7683_v63 = vld [vmem:[%s7417_s29 + $0x48] sm:$0xff]   ;;  %v7686_v0 = vsel %vm2336_vm4, %v2346_v58, %v2348_v44  ;;  %v7694_v4 = vsel %vm2336_vm4, %v2348_v44, %v2350_v1  ;;  %v1156_v58 = vrot.slane %v7536_v35, 1 }
  0x4a   : > { %v2352_v9 = vrot.slane %v7683_v63, 2 }
  0x4c   : > { %v7706_v11 = vsel %vm2336_vm4, %v2350_v1, %v2352_v9  ;;  %v1579_v1 = vrot.slane %v7618_v31, 1 }
  0x4f   : > { %6531 = vmatmul.mubr.msk.bf16.gmra.mxu1 %vm678_vm2, %v7497_v56  ;;  %v1149_v56 = vsel %vm1136_vm3, %v1146_v52, %v1148_v10 }
  0x50   : > { %6501 = vmatmul.mubr.msk.bf16.gmra.mxu0 %vm678_vm2, %v629_v8  ;;  %6534 = vmatprep.mubr.msk.bf16.mxu1 %vm678_vm2, %v7519_v19  ;;  %v7703_v8 = vld [vmem:[%s7417_s29 + $0x58] sm:$0xff]   ;;  %v1153_v19 = vsel %vm1136_vm3, %v1150_v54, %v1152_v32  ;;  %v1162_v32 = vrot.slane %v7561_v57, 1 }
  0x51   : > { %6504 = vmatprep.mubr.msk.bf16.mxu0 %vm678_vm2, %v637_v12  ;;  %v2354_v12 = vrot.slane %v7691_v2, 2  ;;  %v2356_v20 = vrot.slane %v7703_v8, 2 }
  0x53   : > { %v7716_v50 = vsel %vm2336_vm4, %v2352_v9, %v2354_v12  ;;  %v7734_v27 = vsel %vm2336_vm4, %v2356_v20, %v2358_v26  ;;  %v1581_v9 = vrot.slane %v7627_v34, 1  ;;  %v1160_v26 = vrot.slane %v7555_v51, 1 }
  0x57   : > { %6535 = vmatmul.mubr.msk.bf16.gmra.mxu1 %vm678_vm2, %v7524_v23 }
  0x58   : > { %6505 = vmatmul.mubr.msk.bf16.gmra.mxu0 %vm678_vm2, %v645_v21  ;;  %6538 = vmatprep.mubr.msk.bf16.mxu1 %vm678_vm2, %v7536_v35  ;;  %v1151_v21 = vsel %vm1136_vm3, %v1148_v10, %v1150_v54  ;;  %v1157_v10 = vsel %vm1136_vm3, %v1154_v6, %v1156_v58  ;;  %v7779_v35 = vld [vmem:[%s7417_s29 + $0x88] sm:$0xff]   ;;  %v7800_v6 = vld [vmem:[%s7417_s29 + $0x90] sm:$0xff]  }
  0x59   : > { %6556 = vmatprep.mubr.msk.bf16.mxu0 %vm678_vm2, %v1139_v22  ;;  %v7725_v22 = vsel %vm2336_vm4, %v2354_v12, %v2356_v20  ;;  %v1582_v20 = vsel %vm1136_vm3, %v1579_v1, %v1581_v9 }
  0x5f   : > { %6539 = vmatmul.mubr.msk.bf16.gmra.mxu1 %vm678_vm2, %v7543_v41 }
  0x60   : > { %6557 = vmatmul.mubr.msk.bf16.vlgmr.msra.gmra.mxu0 %vm678_vm2, %v1141_v28  ;;  %6542 = vmatprep.mubr.msk.bf16.mxu1 %vm678_vm2, %v7555_v51  ;;  %v7745_v28 = vld [vmem:[%s7417_s29 + $0x70] sm:$0xff]   ;;  %v1163_v51 = vsel %vm1136_vm3, %v1160_v26, %v1162_v32 }
  0x61   : > { %6560 = vmatprep.mubr.msk.bf16.mxu0 %vm678_vm2, %v1143_v38  ;;  %6631 = vmatpush3.bf16.msra.mxu0 %v2115_v42  ;;  %v1577_v38 = vrot.slane %v7613_v30, 1  ;;  %v7753_v42 = vld [vmem:[%s7417_s29 + $0x78] sm:$0xff]   ;;  %v2362_v33 = vrot.slane %v7745_v28, 2 }
  0x62   : > { %6837 = vmatprep.subr.msk.bf16.mxu0 %vm733_vm0, %v7647_v45  ;;  %v2364_v23 = vrot.slane %v7753_v42, 2 }
  0x63   : > { %v1578_v49 = vsel %vm1136_vm3, %v1576_v25, %v1577_v38  ;;  %v7761_v52 = vsel %vm2336_vm4, %v2360_v29, %v2362_v33  ;;  %v1580_v16 = vsel %vm1136_vm3, %v1577_v38, %v1579_v1  ;;  %v1585_v25 = vrot.slane %v7651_v47, 1 }
  0x64   : > { %v7766_v44 = vsel %vm2336_vm4, %v2362_v33, %v2364_v23 }
  0x67   : > { %6543 = vmatmul.mubr.msk.bf16.gmra.mxu1 %vm678_vm2, %v7561_v57 }
  0x68   : > { %6561 = vmatmul.mubr.msk.bf16.gmra.mxu0 %vm678_vm2, %v1145_v61  ;;  %6546 = vmatprep.mubr.msk.bf16.mxu1 %vm678_vm2, %v7435_v13  ;;  %v1158_v61 = vrot.slane %v7543_v41, 1  ;;  %v2368_v41 = vrot.slane %v7779_v35, 2 }
  0x69   : > { %6564 = vmatprep.mubr.msk.bf16.mxu0 %vm678_vm2, %v1147_v62  ;;  %v7772_v62 = vld [vmem:[%s7417_s29 + $0x80] sm:$0xff]  }
  0x6a   : > { %v1159_v54 = vsel %vm1136_vm3, %v1156_v58, %v1158_v61  ;;  %v2366_v12 = vrot.slane %v7772_v62, 2  ;;  %v1161_v38 = vsel %vm1136_vm3, %v1158_v61, %v1160_v26  ;;  %v1587_v58 = vrot.slane %v7663_v53, 1 }
  0x6b   : > { %v1589_v61 = vrot.slane %v7674_v39, 1  ;;  %v1593_v26 = vrot.slane %v7691_v2, 1 }
  0x6c   : > { %v7795_v29 = vsel %vm2336_vm4, %v2366_v12, %v2368_v41 }
  0x6f   : > { %6547 = vmatmul.mubr.msk.bf16.gmra.mxu1 %vm678_vm2, %v7438_v14 }
  0x70   : > { %6565 = vmatmul.mubr.msk.bf16.gmra.mxu0 %vm678_vm2, %v1149_v56  ;;  %6550 = vmatprep.mubr.msk.bf16.mxu1 %vm678_vm2, %v7450_v24  ;;  %v2429_v56 = vsel %vm733_vm0, %v7592_v17, 0  ;;  %v1583_v17 = vrot.slane %v7636_v40, 1 }
  0x71   : > { %6568 = vmatprep.mubr.msk.bf16.mxu0 %vm678_vm2, %v1151_v21  ;;  %v7790_v21 = vsel %vm2336_vm4, %v2364_v23, %v2366_v12  ;;  %v1164_v23 = vrot.slane %v7435_v13, 1  ;;  %v1588_v13 = vsel %vm1136_vm3, %v1585_v25, %v1587_v58  ;;  %v1891_v12 = vshrl.u32 %v7731_v7, 16 }
  0x72   : > { %v1586_v57 = vsel %vm1136_vm3, %v1583_v17, %v1585_v25 }
  0x73   : > { %v1165_v1 = vsel %vm1136_vm3, %v1162_v32, %v1164_v23 }
  0x77   : > { %6551 = vmatmul.mubr.msk.bf16.gmra.mxu1 %vm678_vm2, %v7468_v37 }
  0x78   : > { %6569 = vmatmul.mubr.msk.bf16.gmra.mxu0 %vm678_vm2, %v1153_v19  ;;  %6594 = vmatprep.mubr.msk.bf16.mxu1 %vm678_vm2, %v1578_v49  ;;  %v2370_v19 = vrot.slane %v7800_v6, 2  ;;  %v1166_v49 = vrot.slane %v7438_v14, 1  ;;  %v1590_v14 = vsel %vm1136_vm3, %v1587_v58, %v1589_v61  ;;  %v1595_v58 = vrot.slane %v7703_v8, 1 }
  0x79   : > { %6572 = vmatprep.mubr.msk.bf16.mxu0 %vm678_vm2, %v1155_v46  ;;  %v1584_v46 = vsel %vm1136_vm3, %v1581_v9, %v1583_v17  ;;  %v7827_v9 = vld [vmem:[%s9859_s2 + $0x1c] sm:$0xf]  ;;  %v1893_v17 = vrot.slane %v1891_v12, 1  ;;  %v1926_v12 = vshrl.u32 %v7636_v40, 16 }
  0x7a   : > { %v7814_v33 = vsel %vm2336_vm4, %v2368_v41, %v2370_v19  ;;  %v1899_v41 = vshrl.u32 %v7613_v30, 16 }
  0x7f   : > { %6595 = vmatmul.mubr.msk.bf16.vlgmr.msra.gmra.mxu1 %vm678_vm2, %v1580_v16  ;;  %v1894_v16 = vshll.u32 %v7731_v7, 16 }
  0x80   : > { %6573 = vmatmul.mubr.msk.bf16.gmra.mxu0 %vm678_vm2, %v1157_v10  ;;  %6598 = vmatprep.mubr.msk.bf16.mxu1 %vm678_vm2, %v1582_v20  ;;  %v1167_v10 = vsel %vm1136_vm3, %v1164_v23, %v1166_v49  ;;  %v1902_v20 = vshll.u32 %v7613_v30, 16  ;;  %v1917_v23 = vshrl.u32 %v7627_v34, 16 }
  0x81   : > { %6576 = vmatprep.mubr.msk.bf16.mxu0 %vm678_vm2, %v1159_v54  ;;  %6669 = vmatpush3.bf16.msra.mxu1 %v2429_v56  ;;  %v1168_v54 = vrot.slane %v7450_v24, 1  ;;  %v1591_v56 = vrot.slane %v7683_v63, 1  ;;  %v1896_v25 = vrot.slane %v1894_v16, 2  ;;  %v1929_v16 = vshll.u32 %v7636_v40, 16 }
  0x82   : > { %6838 = vmatprep.subr.msk.bf16.mxu1 %vm733_vm0, %v7827_v9  ;;  %v1904_v7 = vrot.slane %v1902_v20, 2 }
  0x83   : > { %v1169_v32 = vsel %vm1136_vm3, %v1166_v49, %v1168_v54  ;;  %v1171_v24 = vsel %vm1136_vm3, %v1168_v54, %v1170_v59  ;;  %v1594_v30 = vsel %vm1136_vm3, %v1591_v56, %v1593_v26  ;;  %v1897_v37 = vor.u32 %v1896_v25, %v1893_v17 }
  0x84   : > { %v1920_v49 = vshll.u32 %v7627_v34, 16  ;;  %v1596_v54 = vsel %vm1136_vm3, %v1593_v26, %v1595_v58  ;;  %v1599_v26 = vrot.slane %v7721_v5, 1  ;;  %v1928_v17 = vrot.slane %v1926_v12, 1 }
  0x85   : > { %v1931_v40 = vrot.slane %v1929_v16, 2  ;;  %v1965_v12 = vshll.u32 %v7683_v63, 16  ;;  %v1971_v16 = vshrl.u32 %v7691_v2, 16 }
  0x87   : > { %6599 = vmatmul.mubr.msk.bf16.gmra.mxu1 %vm678_vm2, %v1584_v46  ;;  %v1908_v46 = vshrl.u32 %v7618_v31, 16 }
  0x88   : > { %6577 = vmatmul.mubr.msk.bf16.gmra.mxu0 %vm678_vm2, %v1161_v38  ;;  %6602 = vmatprep.mubr.msk.bf16.mxu1 %vm678_vm2, %v1586_v57  ;;  %v1901_v38 = vrot.slane %v1899_v41, 1  ;;  %v1911_v57 = vshll.u32 %v7618_v31, 16  ;;  %v1919_v31 = vrot.slane %v1917_v23, 1  ;;  %v1935_v41 = vshrl.u32 %v7651_v47, 16 }
  0x89   : > { %6580 = vmatprep.mubr.msk.bf16.mxu0 %vm678_vm2, %v1163_v51  ;;  %v1592_v51 = vsel %vm1136_vm3, %v1589_v61, %v1591_v56  ;;  %v1597_v61 = vrot.slane %v7713_v18, 1  ;;  %v1953_v23 = vshrl.u32 %v7674_v39, 16 }
  0x8a   : > { %v1905_v59 = vor.u32 %v1904_v7, %v1901_v38  ;;  %v1937_v25 = vrot.slane %v1935_v41, 1  ;;  %v1974_v41 = vshll.u32 %v7691_v2, 16 }
  0x8b   : > { %v1598_v34 = vsel %vm1136_vm3, %v1595_v58, %v1597_v61  ;;  %v1603_v58 = vrot.slane %v7753_v42, 1 }
  0x8f   : > { %6603 = vmatmul.mubr.msk.bf16.gmra.mxu1 %vm678_vm2, %v1588_v13  ;;  %v1906_v13 = vsel %vm1889_vm5, %v1897_v37, %v1905_v59  ;;  %v1947_v37 = vshll.u32 %v7663_v53, 16 }
  0x90   : > { %6581 = vmatmul.mubr.msk.bf16.gmra.mxu0 %vm678_vm2, %v1165_v1  ;;  %6606 = vmatprep.mubr.msk.bf16.mxu1 %vm678_vm2, %v1590_v14  ;;  %v1910_v1 = vrot.slane %v1908_v46, 1  ;;  %v1922_v14 = vrot.slane %v1920_v49, 2  ;;  %v1956_v49 = vshll.u32 %v7674_v39, 16  ;;  %v1962_v39 = vshrl.u32 %v7683_v63, 16 }
  0x91   : > { %6584 = vmatprep.mubr.msk.bf16.mxu0 %vm678_vm2, %v1167_v10  ;;  %v1913_v10 = vrot.slane %v1911_v57, 2  ;;  %v1944_v57 = vshrl.u32 %v7663_v53, 16  ;;  %v1605_v53 = vrot.slane %v7772_v62, 1  ;;  %v1609_v63 = vrot.slane %v7800_v6, 1 }
  0x92   : > { %v1923_v56 = vor.u32 %v1922_v14, %v1919_v31  ;;  %v1955_v31 = vrot.slane %v1953_v23, 1  ;;  %v1958_v14 = vrot.slane %v1956_v49, 2 }
  0x93   : > { %v1914_v20 = vor.u32 %v1913_v10, %v1910_v1  ;;  %v1946_v1 = vrot.slane %v1944_v57, 1  ;;  %v1949_v10 = vrot.slane %v1947_v37, 2  ;;  %v1989_v37 = vshrl.u32 %v7713_v18, 16 }
  0x95   : > { %v1924_v38 = vsel %vm1889_vm5, %v1914_v20, %v1923_v56 }
  0x97   : > { %6607 = vmatmul.mubr.msk.bf16.gmra.mxu1 %vm678_vm2, %v1592_v51  ;;  %v2868_v51 = vsel %vm733_vm0, %v7647_v45, 0 }
  0x98   : > { %6585 = vmatmul.mubr.msk.bf16.gmra.mxu0 %vm678_vm2, %v1169_v32  ;;  %6610 = vmatprep.mubr.msk.bf16.mxu1 %vm678_vm2, %v1594_v30  ;;  %v1938_v32 = vshll.u32 %v7651_v47, 16  ;;  %v1600_v30 = vsel %vm1136_vm3, %v1597_v61, %v1599_v26  ;;  %v7883_v47 = vld [vmem:[%s9859_s2 + $0x20] sm:$0xf] }
  0x99   : > { %6588 = vmatprep.mubr.msk.bf16.mxu0 %vm678_vm2, %v1171_v24  ;;  %v1915_v24 = vsel %vm1889_vm5, %v1905_v59, %v1914_v20  ;;  %v1932_v59 = vor.u32 %v1931_v40, %v1928_v17  ;;  %v1950_v20 = vor.u32 %v1949_v10, %v1946_v1  ;;  %v6922_v17 = vld [vmem:[%s7417_s29 + $0x98] ss:$0 sps:$4 sm:$0x11]   ;;  %v1973_v40 = vrot.slane %v1971_v16, 1 }
  0x9a   : > { %v1940_v7 = vrot.slane %v1938_v32, 2  ;;  %v1607_v32 = vrot.slane %v7779_v35, 1 }
  0x9b   : > { %v1933_v61 = vsel %vm1889_vm5, %v1923_v56, %v1932_v59  ;;  %v1959_v56 = vor.u32 %v1958_v14, %v1955_v31  ;;  %v2007_v14 = vshrl.u32 %v7745_v28, 16 }
  0x9c   : > { %v1941_v45 = vor.u32 %v1940_v7, %v1937_v25  ;;  %v1976_v25 = vrot.slane %v1974_v41, 2  ;;  %v1610_v7 = vsel %vm1136_vm3, %v1607_v32, %v1609_v63 }
  0x9d   : > { %v1960_v2 = vsel %vm1889_vm5, %v1950_v20, %v1959_v56  ;;  %v2009_v41 = vrot.slane %v2007_v14, 1 }
  0x9e   : > { %v1977_v57 = vor.u32 %v1976_v25, %v1973_v40  ;;  %v2037_v25 = vshll.u32 %v7779_v35, 16 }
  0x9f   : > { %6611 = vmatmul.mubr.msk.bf16.gmra.mxu1 %vm678_vm2, %v1596_v54 }
  0xa0   : > { %6589 = vmatmul.mubr.msk.bf16.gmra.mxu0 %vm678_vm2, %v7577_v3  ;;  %6614 = vmatprep.mubr.msk.bf16.mxu1 %vm678_vm2, %v1598_v34  ;;  %v1601_v3 = vrot.slane %v7745_v28, 1  ;;  %v1606_v34 = vsel %vm1136_vm3, %v1603_v58, %v1605_v53 }
  0xa1   : > { %6632 = vmatprep.mubr.msk.bf16.mxu0 %vm678_vm2, %v1906_v13  ;;  %v1942_v13 = vsel %vm1889_vm5, %v1932_v59, %v1941_v45  ;;  %v1992_v59 = vshll.u32 %v7713_v18, 16  ;;  %v1998_v18 = vshrl.u32 %v7721_v5, 16 }
  0xa2   : > { %v1602_v46 = vsel %vm1136_vm3, %v1599_v26, %v1601_v3  ;;  %v1604_v54 = vsel %vm1136_vm3, %v1601_v3, %v1603_v58  ;;  %v1964_v26 = vrot.slane %v1962_v39, 1  ;;  %v1967_v3 = vrot.slane %v1965_v12, 2 }
  0xa3   : > { %v2000_v12 = vrot.slane %v1998_v18, 1 }
  0xa7   : > { %6615 = vmatmul.mubr.msk.bf16.gmra.mxu1 %vm678_vm2, %v1600_v30  ;;  %v1983_v30 = vshll.u32 %v7703_v8, 16 }
  0xa8   : > { %6633 = vmatmul.mubr.msk.bf16.vlgmr.msra.gmra.mxu0 %vm678_vm2, %v1915_v24  ;;  %6618 = vmatprep.mubr.msk.bf16.mxu1 %vm678_vm2, %v1602_v46  ;;  %v1951_v24 = vsel %vm1889_vm5, %v1941_v45, %v1950_v20  ;;  %v1968_v46 = vor.u32 %v1967_v3, %v1964_v26  ;;  %v1611_v45 = vrot.slane %v6922_v17, 1  ;;  %v2028_v26 = vshll.u32 %v7772_v62, 16 }
  0xa9   : > { %6636 = vmatprep.mubr.msk.bf16.mxu0 %vm678_vm2, %v1924_v38  ;;  %6707 = vmatpush3.bf16.msra.mxu0 %v2868_v51  ;;  %v1608_v38 = vsel %vm1136_vm3, %v1605_v53, %v1607_v32  ;;  %v1980_v51 = vshrl.u32 %v7703_v8, 16  ;;  %v1985_v58 = vrot.slane %v1983_v30, 2  ;;  %v1991_v8 = vrot.slane %v1989_v37, 1 }
  0xaa   : > { %6839 = vmatprep.subr.msk.bf16.mxu0 %vm733_vm0, %v7883_v47  ;;  %v1969_v23 = vsel %vm1889_vm5, %v1959_v56, %v1968_v46  ;;  %v1978_v53 = vsel %vm1889_vm5, %v1968_v46, %v1977_v57  ;;  %v1612_v1 = vsel %vm1136_vm3, %v1609_v63, %v1611_v45  ;;  %v2025_v63 = vshrl.u32 %v7772_v62, 16  ;;  %v7965_v46 = vld [vmem:[%s7417_s29 + $0x98] ss:$0 sps:$4 sm:$0x33]  }
  0xab   : > { %v1982_v49 = vrot.slane %v1980_v51, 1  ;;  %v2030_v40 = vrot.slane %v2028_v26, 2  ;;  %v2034_v62 = vshrl.u32 %v7779_v35, 16  ;;  %v2039_v30 = vrot.slane %v2037_v25, 2  ;;  %v8054_v25 = vld [vmem:[%s7417_s29 + $0x48] sm:$0xff]  }
  0xac   : > { %9891 = vst [vmem:[#allocation12_spill] sm:$0xff] %v8054_v25 }
  0xad   : > { %v1986_v10 = vor.u32 %v1985_v58, %v1982_v49  ;;  %v2036_v51 = vrot.slane %v2034_v62, 1  ;;  %v7978_v49 = vld [vmem:[%s7417_s29 + $0x14] sm:$0xf] }
  0xaf   : > { %6619 = vmatmul.mubr.msk.bf16.gmra.mxu1 %vm678_vm2, %v1604_v54  ;;  %v2010_v54 = vshll.u32 %v7745_v28, 16  ;;  %v1987_v39 = vsel %vm1889_vm5, %v1977_v57, %v1986_v10  ;;  %v2016_v28 = vshrl.u32 %v7753_v42, 16  ;;  %v2040_v37 = vor.u32 %v2039_v30, %v2036_v51 }
  0xb0   : > { %6637 = vmatmul.mubr.msk.bf16.gmra.mxu0 %vm678_vm2, %v1933_v61  ;;  %6622 = vmatprep.mubr.msk.bf16.mxu1 %vm678_vm2, %v1606_v34  ;;  %v1994_v61 = vrot.slane %v1992_v59, 2  ;;  %v2055_v59 = vshll.u32 %v7965_v46, 16  ;;  %v2789_v51 = vrot.slane %v8054_v25, 2 }
  0xb1   : > { %6640 = vmatprep.mubr.msk.bf16.mxu0 %vm678_vm2, %v1942_v13  ;;  %v2001_v13 = vshll.u32 %v7721_v5, 16  ;;  %v2012_v20 = vrot.slane %v2010_v54, 2  ;;  %v3315_v5 = vsel %vm733_vm0, %v7827_v9, 0  ;;  %v2018_v3 = vrot.slane %v2016_v28, 1  ;;  %v8002_v54 = vld [vmem:[%s7417_s29 + $0x28] sm:$0xff]  }
  0xb2   : > { %v1995_v31 = vor.u32 %v1994_v61, %v1991_v8  ;;  %v2057_v8 = vrot.slane %v2055_v59, 2 }
  0xb3   : > { %v2003_v34 = vrot.slane %v2001_v13, 2  ;;  %v2013_v32 = vor.u32 %v2012_v20, %v2009_v41 }
  0xb4   : > { %v1996_v16 = vsel %vm1889_vm5, %v1986_v10, %v1995_v31  ;;  %v7986_v10 = vld [vmem:[%s7417_s29 + $0x18] sm:$0xff]  }
  0xb5   : > { %v2004_v56 = vor.u32 %v2003_v34, %v2000_v12  ;;  %v2777_v18 = vrot.slane %v7986_v10, 2  ;;  %v2781_v34 = vrot.slane %v8002_v54, 2 }
  0xb7   : > { %6623 = vmatmul.mubr.msk.bf16.gmra.mxu1 %vm678_vm2, %v1608_v38  ;;  %v2005_v9 = vsel %vm1889_vm5, %v1995_v31, %v2004_v56  ;;  %v2014_v17 = vsel %vm1889_vm5, %v2004_v56, %v2013_v32  ;;  %v2046_v38 = vshll.u32 %v7800_v6, 16  ;;  %v7998_v31 = vld [vmem:[%s7417_s29 + $0x20] sm:$0xff]  }
  0xb8   : > { %6641 = vmatmul.mubr.msk.bf16.gmra.mxu0 %vm678_vm2, %v1951_v24  ;;  %6626 = vmatprep.mubr.msk.bf16.mxu1 %vm678_vm2, %v1610_v7 }
  0xb9   : > { %6644 = vmatprep.mubr.msk.bf16.mxu0 %vm678_vm2, %v1960_v2  ;;  %v2043_v2 = vshrl.u32 %v7800_v6, 16 }
  0xbb   : > { %v2045_v57 = vrot.slane %v2043_v2, 1 }
  0xbf   : > { %6627 = vmatmul.mubr.msk.bf16.gmra.mxu1 %vm678_vm2, %v1612_v1 }
  0xc0   : > { %6645 = vmatmul.mubr.msk.bf16.gmra.mxu0 %vm678_vm2, %v1969_v23  ;;  %6670 = vmatprep.mubr.msk.bf16.mxu1 %vm678_vm2, %v7632_v36  ;;  %v2019_v36 = vshll.u32 %v7753_v42, 16  ;;  %v2027_v42 = vrot.slane %v2025_v63, 1  ;;  %v2644_v23 = vld [vmem:[%s7417_s29 + $0x10] sm:$0xc] }
  0xc1   : > { %6648 = vmatprep.mubr.msk.bf16.mxu0 %vm678_vm2, %v1978_v53  ;;  %v7983_v1 = vcombine.low %v2644_v23, %v7978_v49  ;;  %v8082_v23 = vld [vmem:[%s7417_s29 + $0x50] sm:$0xff]  }
  0xc2   : > { %v2021_v24 = vrot.slane %v2019_v36, 2  ;;  %9893 = vst [vmem:[#allocation14_spill] sm:$0xff] %v8082_v23 }
  0xc7   : > { %6671 = vmatmul.mubr.msk.bf16.vlgmr.msra.gmra.mxu1 %vm678_vm2, %v7641_v43  ;;  %v2022_v43 = vor.u32 %v2021_v24, %v2018_v3 }
  0xc8   : > { %6649 = vmatmul.mubr.msk.bf16.gmra.mxu0 %vm678_vm2, %v1987_v39  ;;  %6674 = vmatprep.mubr.msk.bf16.mxu1 %vm678_vm2, %v7654_v48  ;;  %v2031_v48 = vor.u32 %v2030_v40, %v2027_v42  ;;  %v8046_v40 = vld [vmem:[%s7417_s29 + $0x40] sm:$0xff]  }
  0xc9   : > { %6652 = vmatprep.mubr.msk.bf16.mxu0 %vm678_vm2, %v1996_v16  ;;  %6745 = vmatpush3.bf16.msra.mxu1 %v3315_v5  ;;  %v2023_v7 = vsel %vm1889_vm5, %v2013_v32, %v2022_v43  ;;  %v8018_v5 = vld [vmem:[%s7417_s29 + $0x30] sm:$0xff]   ;;  %v8024_v32 = vld [vmem:[%s7417_s29 + $0x38] sm:$0xff]  }
  0xca   : > { %v2032_v35 = vsel %vm1889_vm5, %v2022_v43, %v2031_v48  ;;  %v2041_v58 = vsel %vm1889_vm5, %v2031_v48, %v2040_v37  ;;  %v2783_v26 = vrot.slane %v8018_v5, 2  ;;  %v2785_v24 = vrot.slane %v8024_v32, 2 }
  0xcc   : > { %v2784_v42 = vsel %vm2336_vm4, %v2781_v34, %v2783_v26 }
  0xcf   : > { %6675 = vmatmul.mubr.msk.bf16.gmra.mxu1 %vm678_vm2, %v7666_v55  ;;  %v2048_v55 = vrot.slane %v2046_v38, 2 }
  0xd0   : > { %6653 = vmatmul.mubr.msk.bf16.gmra.mxu0 %vm678_vm2, %v2005_v9  ;;  %6678 = vmatprep.mubr.msk.bf16.mxu1 %vm678_vm2, %v7677_v60  ;;  %v2052_v60 = vshrl.u32 %v7965_v46, 16 }
  0xd1   : > { %6656 = vmatprep.mubr.msk.bf16.mxu0 %vm678_vm2, %v2014_v17  ;;  %v2049_v45 = vor.u32 %v2048_v55, %v2045_v57  ;;  %v3091_v55 = vshrl.u32 %v7983_v1, 16 }
  0xd2   : > { %v2054_v53 = vrot.slane %v2052_v60, 1  ;;  %v3099_v60 = vshrl.u32 %v7986_v10, 16 }
  0xd3   : > { %v2050_v61 = vsel %vm1889_vm5, %v2040_v37, %v2049_v45  ;;  %v3094_v37 = vshll.u32 %v7983_v1, 16 }
  0xd7   : > { %6679 = vmatmul.mubr.msk.bf16.gmra.mxu1 %vm678_vm2, %v7686_v0  ;;  %v2058_v0 = vor.u32 %v2057_v8, %v2054_v53  ;;  %v8088_v8 = vld [vmem:[%s7417_s29 + $0x58] sm:$0xff]  }
  0xd8   : > { %6657 = vmatmul.mubr.msk.bf16.gmra.mxu0 %vm678_vm2, %v2023_v7  ;;  %6682 = vmatprep.mubr.msk.bf16.mxu1 %vm678_vm2, %v7694_v4  ;;  %v2776_v4 = vrot.slane %v7983_v1, 2  ;;  %9894 = vst [vmem:[#allocation15_spill] sm:$0xff] %v8088_v8 }
  0xd9   : > { %6660 = vmatprep.mubr.msk.bf16.mxu0 %vm678_vm2, %v2032_v35  ;;  %v2059_v13 = vsel %vm1889_vm5, %v2049_v45, %v2058_v0 }
  0xda   : > { %v2778_v14 = vsel %vm2336_vm4, %v2776_v4, %v2777_v18  ;;  %v3093_v4 = vrot.slane %v3091_v55, 2 }
  0xdf   : > { %6683 = vmatmul.mubr.msk.bf16.gmra.mxu1 %vm678_vm2, %v7706_v11  ;;  %v2779_v11 = vrot.slane %v7998_v31, 2 }
  0xe0   : > { %6661 = vmatmul.mubr.msk.bf16.gmra.mxu0 %vm678_vm2, %v2041_v58  ;;  %6686 = vmatprep.mubr.msk.bf16.mxu1 %vm678_vm2, %v7716_v50 }
  0xe1   : > { %6664 = vmatprep.mubr.msk.bf16.mxu0 %vm678_vm2, %v2050_v61  ;;  %v2780_v20 = vsel %vm2336_vm4, %v2777_v18, %v2779_v11  ;;  %v2782_v36 = vsel %vm2336_vm4, %v2779_v11, %v2781_v34  ;;  %v3096_v18 = vrot.slane %v3094_v37, 3  ;;  %v2791_v11 = vrot.slane %v8082_v23, 2  ;;  %v8125_v37 = vld [vmem:[%s7417_s29 + $0x68] sm:$0xff]  }
  0xe2   : > { %9896 = vst [vmem:[#allocation17_spill] sm:$0xff] %v8125_v37 }
  0xe7   : > { %v8007_v12 = vpop.f32.mrf.mxu1  ;;  %6687 = vmatmul.mubr.msk.bf16.gmra.mxu1 %vm678_vm2, %v7725_v22  ;;  %v3629_v22 = vsel %vm733_vm0, %v7883_v47, 0 }
  0xe8   : > { %v6482_v39 = vpop.f32.mrf.mxu0  ;;  %6665 = vmatmul.mubr.msk.bf16.gmra.mxu0 %vm678_vm2, %v2059_v13  ;;  %9884 = vst [vmem:[#allocation5_spill] sm:$0xff] %v8007_v12  ;;  %6690 = vmatprep.mubr.msk.bf16.mxu1 %vm678_vm2, %v7734_v27  ;;  %v3101_v13 = vrot.slane %v3099_v60, 2 }
  0xe9   : > { %6708 = vmatprep.mubr.msk.bf16.mxu0 %vm678_vm2, %v2778_v14  ;;  %v8014_v16 = vpop.f32.mrf.mxu1 }
  0xea   : > { %v771_v50 = vpop.f32.mrf.mxu0  ;;  %9885 = vst [vmem:[#allocation6_spill] sm:$0xff] %v8014_v16  ;;  %v8247_v16 = vld [vmem:[%s7417_s29 + $0x98] sm:$0xff]  }
  0xeb   : > { %v8020_v56 = vpop.f32.mrf.mxu1 }
  0xec   : > { %v6483_v41 = vpop.f32.mrf.mxu0  ;;  %9886 = vst [vmem:[#allocation7_spill] sm:$0xff] %v8020_v56 }
  0xed   : > { %v8028_v63 = vpop.f32.mrf.mxu1 }
  0xee   : > { %v774_v28 = vpop.f32.mrf.mxu0  ;;  %9887 = vst [vmem:[#allocation8_spill] sm:$0xff] %v8028_v63 }
  0xef   : > { %v8033_v9 = vpop.f32.mrf.mxu1  ;;  %6691 = vmatmul.mubr.msk.bf16.gmra.mxu1 %vm678_vm2, %v7739_v15  ;;  %v2786_v15 = vsel %vm2336_vm4, %v2783_v26, %v2785_v24 }
  0xf0   : > { %v6486_v27 = vpop.f32.mrf.mxu0  ;;  %6709 = vmatmul.mubr.msk.bf16.vlgmr.msra.gmra.mxu0 %vm678_vm2, %v2780_v20  ;;  %9888 = vst [vmem:[#allocation9_spill] sm:$0xff] %v8033_v9  ;;  %6694 = vmatprep.mubr.msk.bf16.mxu1 %vm678_vm2, %v7761_v52  ;;  %v2787_v52 = vrot.slane %v8046_v40, 2 }
  0xf1   : > { %6712 = vmatprep.mubr.msk.bf16.mxu0 %vm678_vm2, %v2782_v36  ;;  %6783 = vmatpush3.bf16.msra.mxu0 %v3629_v22  ;;  %v8040_v47 = vpop.f32.mrf.mxu1  ;;  %v3108_v36 = vshrl.u32 %v7998_v31, 16  ;;  %v3111_v22 = vshll.u32 %v7998_v31, 16 }
  0xf2   : > { %v787_v3 = vpop.f32.mrf.mxu0  ;;  %9889 = vst [vmem:[#allocation10_spill] sm:$0xff] %v8040_v47  ;;  %v2788_v45 = vsel %vm2336_vm4, %v2785_v24, %v2787_v52 }
  0xf3   : > { %v8048_v43 = vpop.f32.mrf.mxu1 }
  0xf4   : > { %v8042_v17 = vpop.f32.mrf.mxu0  ;;  %9890 = vst [vmem:[#allocation11_spill] sm:$0xff] %v8048_v43 }
  0xf5   : > { %v8056_v48 = vpop.f32.mrf.mxu1 }
  0xf6   : > { %v8050_v62 = vpop.f32.mrf.mxu0  ;;  %9892 = vst [vmem:[#allocation13_spill] sm:$0xff] %v8056_v48  ;;  %v8207_v48 = vld [vmem:[%s7417_s29 + $0x88] sm:$0xff]  }
  0xf7   : > { %v6520_v38 = vpop.f32.mrf.mxu1  ;;  %6695 = vmatmul.mubr.msk.bf16.gmra.mxu1 %vm678_vm2, %v7766_v44  ;;  %v3102_v44 = vshll.u32 %v7986_v10, 16 }
  0xf8   : > { %v8058_v2 = vpop.f32.mrf.mxu0  ;;  %6713 = vmatmul.mubr.msk.bf16.gmra.mxu0 %vm678_vm2, %v2784_v42  ;;  %v8068_v30 = vadd.f32 %v6520_v38, %v6482_v39  ;;  %6698 = vmatprep.mubr.msk.bf16.mxu1 %vm678_vm2, %v7790_v21  ;;  %v2790_v21 = vsel %vm2336_vm4, %v2787_v52, %v2789_v51 }
  0xf9   : > { %6716 = vmatprep.mubr.msk.bf16.mxu0 %vm678_vm2, %v2786_v15  ;;  %v987_v35 = vpop.f32.mrf.mxu1  ;;  %v3104_v14 = vrot.slane %v3102_v44, 3  ;;  %v3117_v15 = vshrl.u32 %v8002_v54, 16  ;;  %v3110_v44 = vrot.slane %v3108_v36, 2 }
  0xfa   : > { %v8065_v7 = vpop.f32.mrf.mxu0  ;;  %v8078_v59 = vadd.f32 %v987_v35, %v771_v50 }
  0xfb   : > { %v6521_v58 = vpop.f32.mrf.mxu1  ;;  %v3105_v42 = vor.u32 %v3104_v14, %v3101_v13  ;;  %v2797_v13 = vrot.slane %v8125_v37, 2 }
  0xfc   : > { %v8072_v57 = vpop.f32.mrf.mxu0  ;;  %v8090_v61 = vadd.f32 %v6521_v58, %v6483_v41  ;;  %v2793_v41 = vrot.slane %v8088_v8, 2 }
  0xfd   : > { %v990_v1 = vpop.f32.mrf.mxu1 }
  0xfe   : > { %v8084_v53 = vpop.f32.mrf.mxu0  ;;  %v8095_v39 = vadd.f32 %v990_v1, %v774_v28  ;;  %v2372_v28 = vrot.slane %v7965_v46, 2  ;;  %v8119_v46 = vld [vmem:[%s7417_s29 + $0x60] sm:$0xff]   ;;  %v2794_v55 = vsel %vm2336_vm4, %v2791_v11, %v2793_v41  ;;  %v3119_v1 = vrot.slane %v3117_v15, 2 }
  0xff   : > { %v6524_v50 = vpop.f32.mrf.mxu1  ;;  %6699 = vmatmul.mubr.msk.bf16.gmra.mxu1 %vm678_vm2, %v7795_v29  ;;  %v3097_v29 = vor.u32 %v3096_v18, %v3093_v4  ;;  %9895 = vst [vmem:[#allocation16_spill] sm:$0xff] %v8119_v46  ;;  %v2795_v6 = vrot.slane %v8119_v46, 2 }
 0x100   : > { %v8092_v0 = vpop.f32.mrf.mxu0  ;;  %6717 = vmatmul.mubr.msk.bf16.gmra.mxu0 %vm678_vm2, %v2788_v45  ;;  %v8104_v20 = vadd.f32 %v6524_v50, %v6486_v27  ;;  %6702 = vmatprep.mubr.msk.bf16.mxu1 %vm678_vm2, %v7814_v33  ;;  %v3120_v27 = vshll.u32 %v8002_v54, 16  ;;  %v2792_v33 = vsel %vm2336_vm4, %v2789_v51, %v2791_v11  ;;  %v3113_v45 = vrot.slane %v3111_v22, 3 }
 0x101   : > { %6720 = vmatprep.mubr.msk.bf16.mxu0 %vm678_vm2, %v2790_v21  ;;  %v1003_v26 = vpop.f32.mrf.mxu1  ;;  %v3106_v21 = vsel %vm3089_vm6, %v3097_v29, %v3105_v42  ;;  %v3126_v11 = vshrl.u32 %v8018_v5, 16  ;;  %v3129_v50 = vshll.u32 %v8018_v5, 16  ;;  %v3138_v29 = vshll.u32 %v8024_v32, 16 }
 0x102   : > { %v8101_v34 = vpop.f32.mrf.mxu0  ;;  %v8115_v52 = vadd.f32 %v1003_v26, %v787_v3  ;;  %v2373_v3 = vsel %vm2336_vm4, %v2370_v19, %v2372_v28  ;;  %v3122_v4 = vrot.slane %v3120_v27, 3  ;;  %v3135_v26 = vshrl.u32 %v8024_v32, 16  ;;  %v8161_v27 = vld [vmem:[%s7417_s29 + $0x70] sm:$0xff]  }
 0x103   : > { %v6525_v38 = vpop.f32.mrf.mxu1 }
 0x104   : > { %v8111_v24 = vpop.f32.mrf.mxu0  ;;  %v8128_v60 = vadd.f32 %v6525_v38, %v8042_v17  ;;  %v3123_v22 = vor.u32 %v3122_v4, %v3119_v1  ;;  %v3137_v4 = vrot.slane %v3135_v26, 2  ;;  %v3147_v26 = vshll.u32 %v8046_v40, 16 }
 0x105   : > { %v1006_v51 = vpop.f32.mrf.mxu1 }
 0x106   : > { %v8121_v35 = vpop.f32.mrf.mxu0  ;;  %v8138_v18 = vadd.f32 %v1006_v51, %v8050_v62  ;;  %v3114_v62 = vor.u32 %v3113_v45, %v3110_v44  ;;  %v3128_v51 = vrot.slane %v3126_v11, 2  ;;  %v3149_v47 = vrot.slane %v3147_v26, 3 }
 0x107   : > { %v6528_v17 = vpop.f32.mrf.mxu1  ;;  %6703 = vmatmul.mubr.msk.bf16.gmra.mxu1 %vm678_vm2, %v2373_v3  ;;  %v8167_v3 = vld [vmem:[%s7417_s29 + $0x78] sm:$0xff]  }
 0x108   : > { %v8133_v58 = vpop.f32.mrf.mxu0  ;;  %6721 = vmatmul.mubr.msk.bf16.gmra.mxu0 %vm678_vm2, %v2792_v33  ;;  %v8147_v14 = vadd.f32 %v6528_v17, %v8058_v2  ;;  %6746 = vmatprep.mubr.msk.bf16.mxu1 %vm678_vm2, %v3106_v21  ;;  %v2796_v2 = vsel %vm2336_vm4, %v2793_v41, %v2795_v6  ;;  %v3115_v45 = vsel %vm3089_vm6, %v3105_v42, %v3114_v62  ;;  %v3131_v21 = vrot.slane %v3129_v50, 3 }
 0x109   : > { %6724 = vmatprep.mubr.msk.bf16.mxu0 %vm678_vm2, %v2794_v55  ;;  %v1019_v28 = vpop.f32.mrf.mxu1  ;;  %v2798_v55 = vsel %vm2336_vm4, %v2795_v6, %v2797_v13  ;;  %v3124_v41 = vsel %vm3089_vm6, %v3114_v62, %v3123_v22  ;;  %v3140_v17 = vrot.slane %v3138_v29, 3  ;;  %v2801_v11 = vrot.slane %v8167_v3, 2 }
 0x10a   : > { %v8143_v19 = vpop.f32.mrf.mxu0  ;;  %v8157_v15 = vadd.f32 %v1019_v28, %v8065_v7  ;;  %v3144_v62 = vshrl.u32 %v8046_v40, 16 }
 0x10b   : > { %v6529_v33 = vpop.f32.mrf.mxu1 }
 0x10c   : > { %v8152_v36 = vpop.f32.mrf.mxu0  ;;  %v8170_v44 = vadd.f32 %v6529_v33, %v8072_v57  ;;  %v2799_v57 = vrot.slane %v8161_v27, 2  ;;  %v3141_v33 = vor.u32 %v3140_v17, %v3137_v4  ;;  %v3146_v43 = vrot.slane %v3144_v62, 2 }
 0x10d   : > { %v1022_v7 = vpop.f32.mrf.mxu1  ;;  %v2805_v62 = vrot.slane %v8207_v48, 2 }
 0x10e   : > { %v8163_v38 = vpop.f32.mrf.mxu0  ;;  %v8178_v6 = vadd.f32 %v1022_v7, %v8084_v53  ;;  %v3132_v53 = vor.u32 %v3131_v21, %v3128_v51 }
 0x10f   : > { %v6532_v28 = vpop.f32.mrf.mxu1  ;;  %6747 = vmatmul.mubr.msk.bf16.vlgmr.msra.gmra.mxu1 %vm678_vm2, %v3115_v45  ;;  %v3156_v45 = vshll.u32 %v8054_v25, 16 }
 0x110   : > { %v8173_v1 = vpop.f32.mrf.mxu0  ;;  %6725 = vmatmul.mubr.msk.bf16.gmra.mxu0 %vm678_vm2, %v2796_v2  ;;  %v8187_v50 = vadd.f32 %v6532_v28, %v8092_v0  ;;  %6750 = vmatprep.mubr.msk.bf16.mxu1 %vm678_vm2, %v3124_v41  ;;  %v2800_v0 = vsel %vm2336_vm4, %v2797_v13, %v2799_v57  ;;  %v8201_v28 = vld [vmem:[%s7417_s29 + $0x80] sm:$0xff]   ;;  %v2802_v41 = vsel %vm2336_vm4, %v2799_v57, %v2801_v11 }
 0x111   : > { %6728 = vmatprep.mubr.msk.bf16.mxu0 %vm678_vm2, %v2798_v55  ;;  %v1035_v29 = vpop.f32.mrf.mxu1  ;;  %v3153_v55 = vshrl.u32 %v8054_v25, 16  ;;  %v3133_v17 = vsel %vm3089_vm6, %v3123_v22, %v3132_v53  ;;  %v3142_v13 = vsel %vm3089_vm6, %v3132_v53, %v3141_v33  ;;  %v3158_v63 = vrot.slane %v3156_v45, 3 }
 0x112   : > { %v8183_v42 = vpop.f32.mrf.mxu0  ;;  %v8197_v7 = vadd.f32 %v1035_v29, %v8101_v34  ;;  %v3162_v53 = vshrl.u32 %v8082_v23, 16 }
 0x113   : > { %v6533_v51 = vpop.f32.mrf.mxu1  ;;  %v3155_v9 = vrot.slane %v3153_v55, 2  ;;  %v3165_v55 = vshll.u32 %v8082_v23, 16 }
 0x114   : > { %v8192_v2 = vpop.f32.mrf.mxu0  ;;  %v8210_v4 = vadd.f32 %v6533_v51, %v8111_v24  ;;  %v2803_v24 = vrot.slane %v8201_v28, 2  ;;  %v3164_v12 = vrot.slane %v3162_v53, 2 }
 0x115   : > { %v1038_v34 = vpop.f32.mrf.mxu1 }
 0x116   : > { %v8203_v21 = vpop.f32.mrf.mxu0  ;;  %v8218_v57 = vadd.f32 %v1038_v34, %v8121_v35  ;;  %v3150_v35 = vor.u32 %v3149_v47, %v3146_v43  ;;  %v3174_v34 = vshll.u32 %v8088_v8, 16 }
 0x117   : > { %v6536_v51 = vpop.f32.mrf.mxu1  ;;  %6751 = vmatmul.mubr.msk.bf16.gmra.mxu1 %vm678_vm2, %v3133_v17  ;;  %v3171_v17 = vshrl.u32 %v8088_v8, 16  ;;  %v3167_v8 = vrot.slane %v3165_v55, 3  ;;  %v2809_v55 = vrot.slane %v8247_v16, 2 }
 0x118   : > { %v8213_v29 = vpop.f32.mrf.mxu0  ;;  %6729 = vmatmul.mubr.msk.bf16.gmra.mxu0 %vm678_vm2, %v2800_v0  ;;  %v8227_v26 = vadd.f32 %v6536_v51, %v8133_v58  ;;  %6754 = vmatprep.mubr.msk.bf16.mxu1 %vm678_vm2, %v3142_v13  ;;  %v2804_v58 = vsel %vm2336_vm4, %v2801_v11, %v2803_v24  ;;  %v8241_v51 = vld [vmem:[%s7417_s29 + $0x90] sm:$0xff]   ;;  %v2806_v13 = vsel %vm2336_vm4, %v2803_v24, %v2805_v62 }
 0x119   : > { %6732 = vmatprep.mubr.msk.bf16.mxu0 %vm678_vm2, %v2802_v41  ;;  %v1051_v45 = vpop.f32.mrf.mxu1  ;;  %v3159_v41 = vor.u32 %v3158_v63, %v3155_v9  ;;  %v3151_v9 = vsel %vm3089_vm6, %v3141_v33, %v3150_v35  ;;  %v3173_v23 = vrot.slane %v3171_v17, 2  ;;  %v3183_v17 = vshll.u32 %v8119_v46, 16 }
 0x11a   : > { %v8223_v22 = vpop.f32.mrf.mxu0  ;;  %v8237_v56 = vadd.f32 %v1051_v45, %v8143_v19 }
 0x11b   : > { %v6537_v47 = vpop.f32.mrf.mxu1  ;;  %v3160_v11 = vsel %vm3089_vm6, %v3150_v35, %v3159_v41  ;;  %v3180_v35 = vshrl.u32 %v8119_v46, 16  ;;  %v3185_v46 = vrot.slane %v3183_v17, 3 }
 0x11c   : > { %v8232_v0 = vpop.f32.mrf.mxu0  ;;  %9897 = vst [vmem:[#allocation18_spill] sm:$0xff] %v8237_v56  ;;  %v8250_v63 = vadd.f32 %v6537_v47, %v8152_v36  ;;  %v3176_v56 = vrot.slane %v3174_v34, 3  ;;  %v2807_v36 = vrot.slane %v8241_v51, 2  ;;  %v3168_v34 = vor.u32 %v3167_v8, %v3164_v12 }
 0x11d   : > { %v1054_v19 = vpop.f32.mrf.mxu1  ;;  %v3182_v8 = vrot.slane %v3180_v35, 2 }
 0x11e   : > { %v8243_v43 = vpop.f32.mrf.mxu0  ;;  %v8256_v24 = vadd.f32 %v1054_v19, %v8163_v38  ;;  %v3189_v19 = vshrl.u32 %v8125_v37, 16  ;;  %v2810_v12 = vsel %vm2336_vm4, %v2807_v36, %v2809_v55 }
 0x11f   : > { %v6540_v33 = vpop.f32.mrf.mxu1  ;;  %6755 = vmatmul.mubr.msk.bf16.gmra.mxu1 %vm678_vm2, %v3151_v9  ;;  %v3177_v9 = vor.u32 %v3176_v56, %v3173_v23  ;;  %v3186_v17 = vor.u32 %v3185_v46, %v3182_v8  ;;  %v3207_v46 = vshrl.u32 %v8167_v3, 16 }
 0x120   : > { %v6558_v45 = vpop.f32.mrf.mxu0  ;;  %6733 = vmatmul.mubr.msk.bf16.gmra.mxu0 %vm678_vm2, %v2804_v58  ;;  %9898 = vst [vmem:[#allocation19_spill] sm:$0xff] %v8256_v24  ;;  %v8268_v38 = vadd.f32 %v6540_v33, %v8173_v1  ;;  %6758 = vmatprep.mubr.msk.bf16.mxu1 %vm678_vm2, %v3160_v11  ;;  %v3530_v58 = vld [vmem:[%s7417_s29 + $0x10] sm:$0x8]  ;;  %v6943_v33 = vld [vmem:[%s7417_s29 + $0xa0] ss:$0 sps:$4 sm:$0x33]  }
 0x121   : > { %v8259_v25 = vadd.f32 %v6558_v45, %v8068_v30  ;;  %6736 = vmatprep.mubr.msk.bf16.mxu0 %vm678_vm2, %v2806_v13  ;;  %v1067_v47 = vpop.f32.mrf.mxu1  ;;  %v3192_v45 = vshll.u32 %v8125_v37, 16  ;;  %v6021_v56 = vcombine.low %v3530_v58, %v7978_v49  ;;  %v3191_v37 = vrot.slane %v3189_v19, 2 }
 0x122   : > { %v1265_v53 = vpop.f32.mrf.mxu0  ;;  %v8278_v24 = vadd.f32 %v1067_v47, %v8183_v42 }
 0x123   : > { %v8271_v30 = vadd.f32 %v1265_v53, %v8078_v59  ;;  %v2808_v59 = vsel %vm2336_vm4, %v2805_v62, %v2807_v36  ;;  %v6541_v53 = vpop.f32.mrf.mxu1  ;;  %v3178_v62 = vsel %vm3089_vm6, %v3168_v34, %v3177_v9  ;;  %v3194_v36 = vrot.slane %v3192_v45, 3 }
 0x124   : > { %v6559_v13 = vpop.f32.mrf.mxu0  ;;  %v8288_v23 = vadd.f32 %v6541_v53, %v8192_v2  ;;  %v3537_v58 = vrot.slane %v6021_v56, 3  ;;  %v3187_v56 = vsel %vm3089_vm6, %v3177_v9, %v3186_v17 }
 0x125   : > { %v8281_v1 = vadd.f32 %v6559_v13, %v8090_v61  ;;  %v3169_v61 = vsel %vm3089_vm6, %v3159_v41, %v3168_v34  ;;  %v1070_v47 = vpop.f32.mrf.mxu1  ;;  %v3198_v34 = vshrl.u32 %v8161_v27, 16  ;;  %v3195_v53 = vor.u32 %v3194_v36, %v3191_v37 }
 0x126   : > { %v1268_v11 = vpop.f32.mrf.mxu0  ;;  %v8297_v35 = vadd.f32 %v1070_v47, %v8203_v21 }
 0x127   : > { %v8291_v42 = vadd.f32 %v1268_v11, %v8095_v39  ;;  %v2811_v39 = vrot.slane %v6943_v33, 2  ;;  %v6544_v2 = vpop.f32.mrf.mxu1  ;;  %6759 = vmatmul.mubr.msk.bf16.gmra.mxu1 %vm678_vm2, %v3169_v61 }
 0x128   : > { %v6562_v13 = vpop.f32.mrf.mxu0  ;;  %6737 = vmatmul.mubr.msk.bf16.gmra.mxu0 %vm678_vm2, %v2808_v59  ;;  %v3538_v59 = vrot.slane %v7986_v10, 3  ;;  %v8307_v19 = vadd.f32 %v6544_v2, %v8213_v29  ;;  %6762 = vmatprep.mubr.msk.bf16.mxu1 %vm678_vm2, %v3178_v62  ;;  %v3210_v10 = vshll.u32 %v8167_v3, 16 }
 0x129   : > { %v8300_v49 = vadd.f32 %v6562_v13, %v8104_v20  ;;  %6740 = vmatprep.mubr.msk.bf16.mxu0 %vm678_vm2, %v2810_v12  ;;  %v3201_v20 = vshll.u32 %v8161_v27, 16  ;;  %v1083_v45 = vpop.f32.mrf.mxu1  ;;  %v3200_v13 = vrot.slane %v3198_v34, 2  ;;  %v3219_v34 = vshll.u32 %v8201_v28, 16 }
 0x12a   : > { %v1281_v41 = vpop.f32.mrf.mxu0  ;;  %v8317_v11 = vadd.f32 %v1083_v45, %v8223_v22  ;;  %v3539_v61 = vsel %vm3536_vm7, %v3537_v58, %v3538_v59  ;;  %v3542_v58 = vrot.slane %v8002_v54, 3 }
 0x12b   : > { %v8310_v21 = vadd.f32 %v1281_v41, %v8115_v52  ;;  %v2812_v52 = vsel %vm2336_vm4, %v2809_v55, %v2811_v39  ;;  %v6545_v12 = vpop.f32.mrf.mxu1  ;;  %v3203_v22 = vrot.slane %v3201_v20, 3  ;;  %v3209_v55 = vrot.slane %v3207_v46, 2 }
 0x12c   : > { %v6563_v33 = vpop.f32.mrf.mxu0  ;;  %v8326_v37 = vadd.f32 %v6545_v12, %v8232_v0  ;;  %v3212_v39 = vrot.slane %v3210_v10, 3  ;;  %v3228_v46 = vshll.u32 %v8207_v48, 16 }
 0x12d   : > { %v8320_v29 = vadd.f32 %v6563_v33, %v8128_v60  ;;  %v1086_v62 = vpop.f32.mrf.mxu1  ;;  %v3196_v60 = vsel %vm3089_vm6, %v3186_v17, %v3195_v53  ;;  %v3225_v33 = vshrl.u32 %v8207_v48, 16 }
 0x12e   : > { %v1284_v8 = vpop.f32.mrf.mxu0  ;;  %v8334_v9 = vadd.f32 %v1086_v62, %v8243_v43  ;;  %v3204_v43 = vor.u32 %v3203_v22, %v3200_v13  ;;  %v3213_v45 = vor.u32 %v3212_v39, %v3209_v55  ;;  %v3221_v13 = vrot.slane %v3219_v34, 3 }
 0x12f   : > { %v8329_v47 = vadd.f32 %v1284_v8, %v8138_v18  ;;  %v3540_v18 = vrot.slane %v7998_v31, 3  ;;  %v8341_v0 = vpop.f32.mrf.mxu1  ;;  %6763 = vmatmul.mubr.msk.bf16.gmra.mxu1 %vm678_vm2, %v3187_v56  ;;  %v3546_v39 = vrot.slane %v8024_v32, 3 }
 0x130   : > { %v6566_v36 = vpop.f32.mrf.mxu0  ;;  %6741 = vmatmul.mubr.msk.bf16.gmra.mxu0 %vm678_vm2, %v2812_v52  ;;  %6766 = vmatprep.mubr.msk.bf16.mxu1 %vm678_vm2, %v3196_v60  ;;  %v3205_v56 = vsel %vm3089_vm6, %v3195_v53, %v3204_v43 }
 0x131   : > { %v8337_v2 = vadd.f32 %v6566_v36, %v8147_v14  ;;  %6784 = vmatprep.mubr.msk.bf16.mxu0 %vm678_vm2, %v3539_v61  ;;  %v3216_v14 = vshrl.u32 %v8201_v28, 16  ;;  %v8351_v20 = vpop.f32.mrf.mxu1  ;;  %v3543_v12 = vsel %vm3536_vm7, %v3540_v18, %v3542_v58  ;;  %v3230_v36 = vrot.slane %v3228_v46, 3 }
 0x132   : > { %v1297_v41 = vpop.f32.mrf.mxu0 }
 0x133   : > { %v8346_v17 = vadd.f32 %v1297_v41, %v8157_v15  ;;  %v3541_v15 = vsel %vm3536_vm7, %v3538_v59, %v3540_v18  ;;  %v8359_v10 = vpop.f32.mrf.mxu1  ;;  %v3218_v61 = vrot.slane %v3216_v14, 2  ;;  %v3227_v59 = vrot.slane %v3225_v33, 2 }
 0x134   : > { %v6567_v31 = vpop.f32.mrf.mxu0  ;;  %v3234_v18 = vshrl.u32 %v8241_v51, 16  ;;  %v3237_v41 = vshll.u32 %v8241_v51, 16  ;;  %v3246_v33 = vshll.u32 %v8247_v16, 16 }
 0x135   : > { %v8356_v54 = vadd.f32 %v6567_v31, %v8170_v44  ;;  %v8366_v22 = vpop.f32.mrf.mxu1  ;;  %v3214_v44 = vsel %vm3089_vm6, %v3204_v43, %v3213_v45  ;;  %v3231_v34 = vor.u32 %v3230_v36, %v3227_v59  ;;  %v3243_v31 = vshrl.u32 %v8247_v16, 16 }
 0x136   : > { %v1300_v52 = vpop.f32.mrf.mxu0  ;;  %v3248_v36 = vrot.slane %v3246_v33, 3 }
 0x137   : > { %v8363_v8 = vadd.f32 %v1300_v52, %v8178_v6  ;;  %v3544_v6 = vrot.slane %v8018_v5, 3  ;;  %v8375_v55 = vpop.f32.mrf.mxu1  ;;  %6767 = vmatmul.mubr.msk.bf16.gmra.mxu1 %vm678_vm2, %v3205_v56  ;;  %v3239_v56 = vrot.slane %v3237_v41, 3  ;;  %v3245_v59 = vrot.slane %v3243_v31, 2  ;;  %v9899_v41 = vld [vmem:[#allocation12_spill] sm:$0xff] }
 0x138   : > { %v6570_v62 = vpop.f32.mrf.mxu0  ;;  %6785 = vmatmul.mubr.msk.bf16.vlgmr.msra.gmra.mxu0 %vm678_vm2, %v3541_v15  ;;  %6770 = vmatprep.mubr.msk.bf16.mxu1 %vm678_vm2, %v3214_v44 }
 0x139   : > { %v8371_v60 = vadd.f32 %v6570_v62, %v8187_v50  ;;  %6788 = vmatprep.mubr.msk.bf16.mxu0 %vm678_vm2, %v3543_v12  ;;  %v3222_v50 = vor.u32 %v3221_v13, %v3218_v61  ;;  %v8385_v14 = vpop.f32.mrf.mxu1  ;;  %v3545_v46 = vsel %vm3536_vm7, %v3542_v58, %v3544_v6  ;;  %v3547_v52 = vsel %vm3536_vm7, %v3544_v6, %v3546_v39  ;;  %v8401_v62 = vld [vmem:[%s7417_s29 + $0xa0] ss:$0 sps:$4 sm:$0x77]   ;;  %s7224_s29 = sshll.u32 %s7286_s21, 4  ;;  %s7225_s29 = int_to_ptr.vmem [resolvable:$false] %s7224_s29 }
 0x13a   : > { %v1313_v53 = vpop.f32.mrf.mxu0  ;;  %v3236_v12 = vrot.slane %v3234_v18, 2  ;;  %v3255_v33 = vshll.u32 %v8401_v62, 16  ;;  %s7226_s15 = scalar_lea.vmem %s7225_s29, 32  ;;  %p7227_p0 = scmp.lt.s32.totalorder %s5724_s24, %s7225_s29 }
 0x13b   : > { %v8382_v43 = vadd.f32 %v1313_v53, %v8197_v7  ;;  %v8393_v15 = vpop.f32.mrf.mxu1  ;;  %v3223_v13 = vsel %vm3089_vm6, %v3213_v45, %v3222_v50  ;;  %v3232_v58 = vsel %vm3089_vm6, %v3222_v50, %v3231_v34  ;;  %v9900_v50 = vld [vmem:[#allocation18_spill] sm:$0xff]  ;;  %p7228_p1 = scmp.lt.s32.totalorder %s7226_s15, %s7220_s14 }
 0x13c   : > { %v6571_v5 = vpop.f32.mrf.mxu0  ;;  %v3240_v18 = vor.u32 %v3239_v56, %v3236_v12 }
 0x13d   : > { %v8390_v32 = vadd.f32 %v6571_v5, %v8210_v4  ;;  %v8403_v44 = vpop.f32.mrf.mxu1  ;;  %v3550_v5 = vrot.slane %v9899_v41, 3  ;;  %v9901_v41 = vld [vmem:[#allocation19_spill] sm:$0xff]  ;;  %p7229_p2 = por %p7228_p1, %p7227_p0 }
 0x13e   : > { %v1316_v7 = vpop.f32.mrf.mxu0 }
 0x13f   : > { %v8397_v61 = vadd.f32 %v1316_v7, %v8218_v57  ;;  %v3548_v57 = vrot.slane %v8046_v40, 3  ;;  %v6596_v53 = vpop.f32.mrf.mxu1  ;;  %6771 = vmatmul.mubr.msk.bf16.gmra.mxu1 %vm678_vm2, %v3223_v13  ;;  %p7230_p3 = pnand %p7229_p2, %p7223_p13 }
 0x140   : > { %v6574_v4 = vpop.f32.mrf.mxu0  ;;  %6789 = vmatmul.mubr.msk.bf16.gmra.mxu0 %vm678_vm2, %v3545_v46  ;;  %v8415_v46 = vadd.f32 %v6596_v53, %v8259_v25  ;;  %6774 = vmatprep.mubr.msk.bf16.mxu1 %vm678_vm2, %v3232_v58  ;;  %v3241_v53 = vsel %vm3089_vm6, %v3231_v34, %v3240_v18  ;;  %v9902_v34 = vld [vmem:[#allocation14_spill] sm:$0xff] }
 0x141   : > { %v8408_v6 = vadd.f32 %v6574_v4, %v8227_v26  ;;  %6792 = vmatprep.mubr.msk.bf16.mxu0 %vm678_vm2, %v3547_v52  ;;  %v3252_v26 = vshrl.u32 %v8401_v62, 16  ;;  %v1704_v40 = vpop.f32.mrf.mxu1  ;;  %v3249_v52 = vor.u32 %v3248_v36, %v3245_v59  ;;  %v3549_v25 = vsel %vm3536_vm7, %v3546_v39, %v3548_v57 }
 0x142   : > { %v1329_v45 = vpop.f32.mrf.mxu0  ;;  %v8424_v13 = vadd.f32 %v1704_v40, %v8271_v30  ;;  %v3551_v58 = vsel %vm3536_vm7, %v3548_v57, %v3550_v5  ;;  %v3257_v30 = vrot.slane %v3255_v33, 3 }
 0x143   : > { %v8418_v31 = vadd.f32 %v1329_v45, %v9900_v50  ;;  %v6597_v56 = vpop.f32.mrf.mxu1  ;;  %v3254_v59 = vrot.slane %v3252_v26, 2  ;;  %v3250_v39 = vsel %vm3089_vm6, %v3240_v18, %v3249_v52  ;;  %v9903_v26 = vld [vmem:[#allocation15_spill] sm:$0xff] }
 0x144   : > { %v6575_v7 = vpop.f32.mrf.mxu0  ;;  %v8433_v45 = vadd.f32 %v6597_v56, %v8281_v1  ;;  %v3552_v1 = vrot.slane %v9902_v34, 3  ;;  %v3554_v33 = vrot.slane %v9903_v26, 3 }
 0x145   : > { %v8427_v12 = vadd.f32 %v6575_v7, %v8250_v63  ;;  %v8438_v36 = vpop.f32.mrf.mxu1 }
 0x146   : > { %v1332_v4 = vpop.f32.mrf.mxu0 }
 0x147   : > { %v8436_v50 = vadd.f32 %v1332_v4, %v9901_v41  ;;  %v6600_v57 = vpop.f32.mrf.mxu1  ;;  %6775 = vmatmul.mubr.msk.bf16.gmra.mxu1 %vm678_vm2, %v3241_v53  ;;  %v3553_v53 = vsel %vm3536_vm7, %v3550_v5, %v3552_v1  ;;  %v9904_v5 = vld [vmem:[#allocation16_spill] sm:$0xff] }
 0x148   : > { %v6578_v63 = vpop.f32.mrf.mxu0  ;;  %6793 = vmatmul.mubr.msk.bf16.gmra.mxu0 %vm678_vm2, %v3549_v25  ;;  %v8450_v56 = vadd.f32 %v6600_v57, %v8300_v49  ;;  %6778 = vmatprep.mubr.msk.bf16.mxu1 %vm678_vm2, %v3250_v39  ;;  %v3555_v49 = vsel %vm3536_vm7, %v3552_v1, %v3554_v33  ;;  %v3556_v1 = vrot.slane %v9904_v5, 3 }
 0x149   : > { %v8443_v40 = vadd.f32 %v6578_v63, %v8268_v38  ;;  %6796 = vmatprep.mubr.msk.bf16.mxu0 %vm678_vm2, %v3551_v58  ;;  %v3258_v38 = vor.u32 %v3257_v30, %v3254_v59  ;;  %v1720_v18 = vpop.f32.mrf.mxu1 }
 0x14a   : > { %v1345_v7 = vpop.f32.mrf.mxu0  ;;  %v8457_v58 = vadd.f32 %v1720_v18, %v8310_v21 }
 0x14b   : > { %v8453_v25 = vadd.f32 %v1345_v7, %v8278_v24  ;;  %v6601_v63 = vpop.f32.mrf.mxu1  ;;  %v3259_v59 = vsel %vm3089_vm6, %v3249_v52, %v3258_v38 }
 0x14c   : > { %v6579_v4 = vpop.f32.mrf.mxu0  ;;  %v8465_v24 = vadd.f32 %v6601_v63, %v8320_v29 }
 0x14d   : > { %v8460_v41 = vadd.f32 %v6579_v4, %v8288_v23  ;;  %v8471_v30 = vpop.f32.mrf.mxu1 }
 0x14e   : > { %v1348_v34 = vpop.f32.mrf.mxu0 }
 0x14f   : > { %v8468_v39 = vadd.f32 %v1348_v34, %v8297_v35  ;;  %v6604_v57 = vpop.f32.mrf.mxu1  ;;  %6779 = vmatmul.mubr.msk.bf16.gmra.mxu1 %vm678_vm2, %v3259_v59  ;;  %v9905_v35 = vld [vmem:[#allocation17_spill] sm:$0xff] }
 0x150   : > { %v6582_v21 = vpop.f32.mrf.mxu0  ;;  %6797 = vmatmul.mubr.msk.bf16.gmra.mxu0 %vm678_vm2, %v3553_v53  ;;  %v3558_v7 = vrot.slane %v9905_v35, 3  ;;  %v8482_v52 = vadd.f32 %v6604_v57, %v8337_v2  ;;  %v3557_v53 = vsel %vm3536_vm7, %v3554_v33, %v3556_v1  ;;  %v9906_v59 = vld [vmem:[#allocation5_spill] sm:$0xff] }
 0x151   : > { %v8475_v23 = vadd.f32 %v6582_v21, %v8307_v19  ;;  %6800 = vmatprep.mubr.msk.bf16.mxu0 %vm678_vm2, %v3555_v49  ;;  %v1736_v38 = vpop.f32.mrf.mxu1  ;;  %v1108_v2 = vadd.f32 %v8341_v0, %v9906_v59  ;;  %v3560_v0 = vrot.slane %v8161_v27, 3 }
 0x152   : > { %v1361_v29 = vpop.f32.mrf.mxu0  ;;  %v8488_v19 = vadd.f32 %v1736_v38, %v8346_v17  ;;  %v3559_v49 = vsel %vm3536_vm7, %v3556_v1, %v3558_v7 }
 0x153   : > { %v8485_v26 = vadd.f32 %v1361_v29, %v8317_v11  ;;  %v6605_v63 = vpop.f32.mrf.mxu1  ;;  %v3562_v29 = vrot.slane %v8167_v3, 3  ;;  %v3561_v3 = vsel %vm3536_vm7, %v3558_v7, %v3560_v0 }
 0x154   : > { %v6583_v18 = vpop.f32.mrf.mxu0  ;;  %v8498_v11 = vadd.f32 %v6605_v63, %v8356_v54  ;;  %v9909_v63 = vld [vmem:[#allocation8_spill] sm:$0xff] }
 0x155   : > { %v8491_v4 = vadd.f32 %v6583_v18, %v8326_v37  ;;  %v8503_v17 = vpop.f32.mrf.mxu1  ;;  %v9907_v37 = vld [vmem:[#allocation6_spill] sm:$0xff] }
 0x156   : > { %v1364_v34 = vpop.f32.mrf.mxu0  ;;  %v1100_v33 = vadd.f32 %v8351_v20, %v9907_v37 }
 0x157   : > { %v8501_v21 = vadd.f32 %v1364_v34, %v8334_v9  ;;  %v6608_v1 = vpop.f32.mrf.mxu1  ;;  %v9908_v9 = vld [vmem:[#allocation7_spill] sm:$0xff]  ;;  %v1103_v34 = vadd.f32 %v8366_v22, %v9909_v63 }
 0x158   : > { %v6586_v5 = vpop.f32.mrf.mxu0  ;;  %6801 = vmatmul.mubr.msk.bf16.gmra.mxu0 %vm678_vm2, %v3557_v53  ;;  %v1111_v35 = vadd.f32 %v8359_v10, %v9908_v9  ;;  %v8516_v38 = vadd.f32 %v6608_v1, %v8371_v60  ;;  %v3563_v10 = vsel %vm3536_vm7, %v3560_v0, %v3562_v29  ;;  %v9910_v60 = vld [vmem:[#allocation9_spill] sm:$0xff]  ;;  %v9911_v1 = vld [vmem:[#allocation10_spill] sm:$0xff]  ;;  %v3564_v0 = vrot.slane %v8201_v28, 3 }
 0x159   : > { %v8508_v57 = vadd.f32 %v6586_v5, %v1108_v2  ;;  %6804 = vmatprep.mubr.msk.bf16.mxu0 %vm678_vm2, %v3559_v49  ;;  %v1752_v53 = vpop.f32.mrf.mxu1  ;;  %v1124_v5 = vadd.f32 %v8375_v55, %v9910_v60  ;;  %v1116_v7 = vadd.f32 %v8385_v14, %v9911_v1  ;;  %v3570_v1 = vrot.slane %v8247_v16, 3 }
 0x15a   : > { %v1377_v54 = vpop.f32.mrf.mxu0  ;;  %v8523_v49 = vadd.f32 %v1752_v53, %v8382_v43  ;;  %v3565_v28 = vsel %vm3536_vm7, %v3562_v29, %v3564_v0  ;;  %v3568_v29 = vrot.slane %v8241_v51, 3 }
 0x15b   : > { %v8518_v18 = vadd.f32 %v1377_v54, %v1100_v33  ;;  %v6609_v59 = vpop.f32.mrf.mxu1 }
 0x15c   : > { %v6587_v20 = vpop.f32.mrf.mxu0  ;;  %v8532_v37 = vadd.f32 %v6609_v59, %v8390_v32  ;;  %v3566_v32 = vrot.slane %v8207_v48, 3  ;;  %v3571_v16 = vsel %vm3536_vm7, %v3568_v29, %v3570_v1 }
 0x15d   : > { %v8525_v27 = vadd.f32 %v6587_v20, %v1111_v35  ;;  %v8536_v22 = vpop.f32.mrf.mxu1  ;;  %v9912_v35 = vld [vmem:[#allocation11_spill] sm:$0xff] }
 0x15e   : > { %v1380_v2 = vpop.f32.mrf.mxu0  ;;  %v1127_v53 = vadd.f32 %v8393_v15, %v9912_v35  ;;  %v3567_v48 = vsel %vm3536_vm7, %v3564_v0, %v3566_v32  ;;  %v3569_v51 = vsel %vm3536_vm7, %v3566_v32, %v3568_v29  ;;  %v3572_v32 = vrot.slane %v8401_v62, 3 }
 0x15f   : > { %v8534_v33 = vadd.f32 %v1380_v2, %v1103_v34  ;;  %v6612_v55 = vpop.f32.mrf.mxu1 }
 0x160   : > { %v6590_v43 = vpop.f32.mrf.mxu0  ;;  %6805 = vmatmul.mubr.msk.bf16.gmra.mxu0 %vm678_vm2, %v3561_v3  ;;  %v8549_v20 = vadd.f32 %v6612_v55, %v8408_v6  ;;  %v3573_v29 = vsel %vm3536_vm7, %v3570_v1, %v3572_v32 }
 0x161   : > { %v8541_v54 = vadd.f32 %v6590_v43, %v1124_v5  ;;  %6808 = vmatprep.mubr.msk.bf16.mxu0 %vm678_vm2, %v3563_v10  ;;  %v1768_v34 = vpop.f32.mrf.mxu1 }
 0x162   : > { %v1393_v9 = vpop.f32.mrf.mxu0  ;;  %v8554_v3 = vadd.f32 %v1768_v34, %v8418_v31 }
 0x163   : > { %v8551_v63 = vadd.f32 %v1393_v9, %v1116_v7  ;;  %v6613_v2 = vpop.f32.mrf.mxu1 }
 0x164   : > { %v6591_v14 = vpop.f32.mrf.mxu0  ;;  %v8563_v15 = vadd.f32 %v6613_v2, %v8427_v12 }
 0x165   : > { %v8556_v59 = vadd.f32 %v6591_v14, %v1127_v53  ;;  %v8565_v6 = vpop.f32.mrf.mxu1 }
 0x166   : > { %v8559_v10 = vpop.f32.mrf.mxu0 }
 0x167   : > { %v6616_v5 = vpop.f32.mrf.mxu1 }
 0x168   : > { %v6634_v60 = vpop.f32.mrf.mxu0  ;;  %6809 = vmatmul.mubr.msk.bf16.gmra.mxu0 %vm678_vm2, %v3565_v28  ;;  %v8575_v7 = vadd.f32 %v6616_v5, %v8443_v40 }
 0x169   : > { %v8569_v31 = vadd.f32 %v6634_v60, %v8415_v46  ;;  %6812 = vmatprep.mubr.msk.bf16.mxu0 %vm678_vm2, %v3567_v48  ;;  %v1784_v0 = vpop.f32.mrf.mxu1 }
 0x16a   : > { %v2151_v43 = vpop.f32.mrf.mxu0  ;;  %v8581_v9 = vadd.f32 %v1784_v0, %v8453_v25 }
 0x16b   : > { %v8578_v12 = vadd.f32 %v2151_v43, %v8424_v13  ;;  %v6617_v35 = vpop.f32.mrf.mxu1 }
 0x16c   : > { %v6635_v55 = vpop.f32.mrf.mxu0  ;;  %v8591_v40 = vadd.f32 %v6617_v35, %v8460_v41 }
 0x16d   : > { %v8584_v46 = vadd.f32 %v6635_v55, %v8433_v45  ;;  %v1787_v13 = vpop.f32.mrf.mxu1 }
 0x16e   : > { %v8587_v53 = vpop.f32.mrf.mxu0  ;;  %v8595_v25 = vadd.f32 %v1787_v13, %v8468_v39 }
 0x16f   : > { %v6620_v14 = vpop.f32.mrf.mxu1 }
 0x170   : > { %v6638_v34 = vpop.f32.mrf.mxu0  ;;  %6813 = vmatmul.mubr.msk.bf16.gmra.mxu0 %vm678_vm2, %v3569_v51  ;;  %v8603_v2 = vadd.f32 %v6620_v14, %v8475_v23 }
 0x171   : > { %v8598_v45 = vadd.f32 %v6638_v34, %v8450_v56  ;;  %6816 = vmatprep.mubr.msk.bf16.mxu0 %vm678_vm2, %v3571_v16  ;;  %v1800_v48 = vpop.f32.mrf.mxu1 }
 0x172   : > { %v2167_v28 = vpop.f32.mrf.mxu0  ;;  %v8609_v39 = vadd.f32 %v1800_v48, %v8485_v26 }
 0x173   : > { %v8606_v41 = vadd.f32 %v2167_v28, %v8457_v58  ;;  %v6621_v5 = vpop.f32.mrf.mxu1 }
 0x174   : > { %v6639_v60 = vpop.f32.mrf.mxu0  ;;  %v8618_v43 = vadd.f32 %v6621_v5, %v8491_v4 }
 0x175   : > { %v8612_v56 = vadd.f32 %v6639_v60, %v8465_v24  ;;  %v1803_v23 = vpop.f32.mrf.mxu1 }
 0x176   : > { %v8615_v62 = vpop.f32.mrf.mxu0  ;;  %v8622_v58 = vadd.f32 %v1803_v23, %v8501_v21 }
 0x177   : > { %v6624_v24 = vpop.f32.mrf.mxu1 }
 0x178   : > { %v6642_v0 = vpop.f32.mrf.mxu0  ;;  %6817 = vmatmul.mubr.msk.bf16.gmra.mxu0 %vm678_vm2, %v3573_v29  ;;  %v8628_v1 = vadd.f32 %v6624_v24, %v8508_v57 }
 0x179   : > { %v8625_v26 = vadd.f32 %v6642_v0, %v8482_v52  ;;  %v1816_v4 = vpop.f32.mrf.mxu1 }
 0x17a   : > { %v2183_v55 = vpop.f32.mrf.mxu0  ;;  %v8634_v16 = vadd.f32 %v1816_v4, %v8518_v18 }
 0x17b   : > { %v8631_v51 = vadd.f32 %v2183_v55, %v8488_v19  ;;  %v6625_v21 = vpop.f32.mrf.mxu1 }
 0x17c   : > { %v6643_v35 = vpop.f32.mrf.mxu0  ;;  %v8642_v52 = vadd.f32 %v6625_v21, %v8525_v27  ;;  %v1860_v27 = vadd.f32 %v8536_v22, %v8397_v61  ;;  %v1864_v21 = vadd.f32 %v8565_v6, %v8436_v50 }
 0x17d   : > { %v8637_v13 = vadd.f32 %v6643_v35, %v8498_v11  ;;  %v1819_v32 = vpop.f32.mrf.mxu1 }
 0x17e   : > { %v8639_v34 = vpop.f32.mrf.mxu0  ;;  %v8645_v14 = vadd.f32 %v1819_v32, %v8534_v33 }
 0x17f   : > { %v6628_v28 = vpop.f32.mrf.mxu1 }
 0x180   : > { %v6646_v57 = vpop.f32.mrf.mxu0  ;;  %v8651_v48 = vadd.f32 %v6628_v28, %v8541_v54 }
 0x181   : > { %v8648_v19 = vadd.f32 %v6646_v57, %v8516_v38  ;;  %v1832_v60 = vpop.f32.mrf.mxu1 }
 0x182   : > { %v2199_v18 = vpop.f32.mrf.mxu0  ;;  %v8659_v5 = vadd.f32 %v1832_v60, %v8551_v63 }
 0x183   : > { %v8654_v11 = vadd.f32 %v2199_v18, %v8523_v49  ;;  %v6629_v38 = vpop.f32.mrf.mxu1 }
 0x184   : > { %v6647_v29 = vpop.f32.mrf.mxu0  ;;  %v8665_v0 = vadd.f32 %v6629_v38, %v8556_v59  ;;  %v1848_v59 = vadd.f32 %v8438_v36, %v8291_v42 }
 0x185   : > { %v8662_v33 = vadd.f32 %v6647_v29, %v8532_v37  ;;  %v8669_v49 = vpop.f32.mrf.mxu1 }
 0x186   : > { %v2202_v23 = vpop.f32.mrf.mxu0  ;;  %v2295_v28 = vadd.f32 %v8587_v53, %v1848_v59 }
 0x187   : > { %v8667_v54 = vadd.f32 %v2202_v23, %v1860_v27  ;;  %v6672_v61 = vpop.f32.mrf.mxu1  ;;  %v1852_v27 = vadd.f32 %v8471_v30, %v8329_v47 }
 0x188   : > { %v6650_v24 = vpop.f32.mrf.mxu0  ;;  %v8675_v63 = vadd.f32 %v6672_v61, %v8569_v31 }
 0x189   : > { %v8672_v55 = vadd.f32 %v6650_v24, %v8549_v20  ;;  %v2465_v4 = vpop.f32.mrf.mxu1  ;;  %v2299_v61 = vadd.f32 %v8615_v62, %v1852_v27 }
 0x18a   : > { %v2215_v22 = vpop.f32.mrf.mxu0  ;;  %v8685_v32 = vadd.f32 %v2465_v4, %v8578_v12 }
 0x18b   : > { %v8678_v37 = vadd.f32 %v2215_v22, %v8554_v3  ;;  %v6673_v57 = vpop.f32.mrf.mxu1 }
 0x18c   : > { %v6651_v35 = vpop.f32.mrf.mxu0  ;;  %v8692_v3 = vadd.f32 %v6673_v57, %v8584_v46 }
 0x18d   : > { %v8688_v20 = vadd.f32 %v6651_v35, %v8563_v15  ;;  %v2468_v60 = vpop.f32.mrf.mxu1 }
 0x18e   : > { %v2218_v31 = vpop.f32.mrf.mxu0  ;;  %v8696_v36 = vadd.f32 %v2468_v60, %v2295_v28 }
 0x18f   : > { %v8694_v18 = vadd.f32 %v2218_v31, %v1864_v21  ;;  %v6676_v6 = vpop.f32.mrf.mxu1 }
 0x190   : > { %v6654_v42 = vpop.f32.mrf.mxu0  ;;  %v8702_v15 = vadd.f32 %v6676_v6, %v8598_v45 }
 0x191   : > { %v8699_v50 = vadd.f32 %v6654_v42, %v8575_v7  ;;  %v2481_v53 = vpop.f32.mrf.mxu1 }
 0x192   : > { %v2231_v12 = vpop.f32.mrf.mxu0  ;;  %v8710_v38 = vadd.f32 %v2481_v53, %v8606_v41 }
 0x193   : > { %v8705_v29 = vadd.f32 %v2231_v12, %v8581_v9  ;;  %v6677_v7 = vpop.f32.mrf.mxu1 }
 0x194   : > { %v6655_v46 = vpop.f32.mrf.mxu0  ;;  %v8717_v45 = vadd.f32 %v6677_v7, %v8612_v56 }
 0x195   : > { %v8713_v23 = vadd.f32 %v6655_v46, %v8591_v40  ;;  %v2484_v22 = vpop.f32.mrf.mxu1 }
 0x196   : > { %v2234_v24 = vpop.f32.mrf.mxu0  ;;  %v8722_v35 = vadd.f32 %v2484_v22, %v2299_v61 }
 0x197   : > { %v8720_v9 = vadd.f32 %v2234_v24, %v8595_v25  ;;  %v6680_v30 = vpop.f32.mrf.mxu1  ;;  %v1856_v25 = vadd.f32 %v8503_v17, %v8363_v8 }
 0x198   : > { %v6658_v4 = vpop.f32.mrf.mxu0  ;;  %v8728_v41 = vadd.f32 %v6680_v30, %v8625_v26 }
 0x199   : > { %v8725_v47 = vadd.f32 %v6658_v4, %v8603_v2  ;;  %v2497_v56 = vpop.f32.mrf.mxu1  ;;  %v2303_v28 = vadd.f32 %v8639_v34, %v1856_v25 }
 0x19a   : > { %v2247_v40 = vpop.f32.mrf.mxu0  ;;  %v8736_v21 = vadd.f32 %v2497_v56, %v8631_v51 }
 0x19b   : > { %v8731_v62 = vadd.f32 %v2247_v40, %v8609_v39  ;;  %v6681_v2 = vpop.f32.mrf.mxu1 }
 0x19c   : > { %v6659_v59 = vpop.f32.mrf.mxu0  ;;  %v8743_v26 = vadd.f32 %v6681_v2, %v8637_v13 }
 0x19d   : > { %v8739_v57 = vadd.f32 %v6659_v59, %v8618_v43  ;;  %v2500_v60 = vpop.f32.mrf.mxu1 }
 0x19e   : > { %v2250_v31 = vpop.f32.mrf.mxu0  ;;  %v8748_v6 = vadd.f32 %v2500_v60, %v2303_v28 }
 0x19f   : > { %v8746_v39 = vadd.f32 %v2250_v31, %v8622_v58  ;;  %v6684_v17 = vpop.f32.mrf.mxu1 }
 0x1a0   : > { %v6662_v42 = vpop.f32.mrf.mxu0  ;;  %v8754_v51 = vadd.f32 %v6684_v17, %v8648_v19 }
 0x1a1   : > { %v8751_v8 = vadd.f32 %v6662_v42, %v8628_v1  ;;  %v2513_v13 = vpop.f32.mrf.mxu1 }
 0x1a2   : > { %v2263_v43 = vpop.f32.mrf.mxu0  ;;  %v8760_v58 = vadd.f32 %v2513_v13, %v8654_v11 }
 0x1a3   : > { %v8757_v34 = vadd.f32 %v2263_v43, %v8634_v16  ;;  %v6685_v46 = vpop.f32.mrf.mxu1  ;;  %v9913_v16 = vld [vmem:[#allocation13_spill] sm:$0xff] }
 0x1a4   : > { %v6663_v12 = vpop.f32.mrf.mxu0  ;;  %v8766_v1 = vadd.f32 %v6685_v46, %v8662_v33  ;;  %v1119_v61 = vadd.f32 %v8403_v44, %v9913_v16 }
 0x1a5   : > { %v8763_v53 = vadd.f32 %v6663_v12, %v8642_v52  ;;  %v2516_v19 = vpop.f32.mrf.mxu1 }
 0x1a6   : > { %v2266_v27 = vpop.f32.mrf.mxu0  ;;  %v8774_v22 = vadd.f32 %v2516_v19, %v8667_v54  ;;  %v1441_v30 = vadd.f32 %v8559_v10, %v1119_v61 }
 0x1a7   : > { %v8769_v7 = vadd.f32 %v2266_v27, %v8645_v14  ;;  %v6688_v52 = vpop.f32.mrf.mxu1 }
 0x1a8   : > { %v6666_v24 = vpop.f32.mrf.mxu0  ;;  %v8781_v33 = vadd.f32 %v6688_v52, %v8672_v55  ;;  %v1880_v44 = vadd.f32 %v8669_v49, %v1441_v30 }
 0x1a9   : > { %v8777_v11 = vadd.f32 %v6666_v24, %v8651_v48  ;;  %v2529_v40 = vpop.f32.mrf.mxu1 }
 0x1aa   : > { %v2279_v4 = vpop.f32.mrf.mxu0  ;;  %v8788_v54 = vadd.f32 %v2529_v40, %v8678_v37 }
 0x1ab   : > { %v8784_v14 = vadd.f32 %v2279_v4, %v8659_v5  ;;  %v6689_v59 = vpop.f32.mrf.mxu1 }
 0x1ac   : > { %v6667_v56 = vpop.f32.mrf.mxu0  ;;  %v8794_v10 = vadd.f32 %v6689_v59, %v8688_v20 }
 0x1ad   : > { %v8791_v48 = vadd.f32 %v6667_v56, %v8665_v0  ;;  %v2532_v2 = vpop.f32.mrf.mxu1 }
 0x1ae   : > { %v2282_v25 = vpop.f32.mrf.mxu0  ;;  %v8799_v31 = vadd.f32 %v2532_v2, %v8694_v18 }
 0x1af   : > { %v8796_v55 = vadd.f32 %v2282_v25, %v1880_v44  ;;  %v6692_v37 = vpop.f32.mrf.mxu1 }
 0x1b0   : > { %v6710_v5 = vpop.f32.mrf.mxu0  ;;  %v8805_v0 = vadd.f32 %v6692_v37, %v8699_v50 }
 0x1b1   : > { %v8802_v49 = vadd.f32 %v6710_v5, %v8675_v63  ;;  %v2545_v20 = vpop.f32.mrf.mxu1 }
 0x1b2   : > { %v2904_v28 = vpop.f32.mrf.mxu0  ;;  %v8811_v17 = vadd.f32 %v2545_v20, %v8705_v29 }
 0x1b3   : > { %v8808_v60 = vadd.f32 %v2904_v28, %v8685_v32  ;;  %v6693_v18 = vpop.f32.mrf.mxu1 }
 0x1b4   : > { %v6711_v42 = vpop.f32.mrf.mxu0  ;;  %v8817_v63 = vadd.f32 %v6693_v18, %v8713_v23 }
 0x1b5   : > { %v8814_v43 = vadd.f32 %v6711_v42, %v8692_v3  ;;  %v2548_v50 = vpop.f32.mrf.mxu1 }
 0x1b6   : > { %v2907_v13 = vpop.f32.mrf.mxu0  ;;  %v8823_v32 = vadd.f32 %v2548_v50, %v8720_v9 }
 0x1b7   : > { %v8820_v12 = vadd.f32 %v2907_v13, %v8696_v36  ;;  %v6696_v29 = vpop.f32.mrf.mxu1 }
 0x1b8   : > { %v6714_v46 = vpop.f32.mrf.mxu0  ;;  %v8829_v3 = vadd.f32 %v6696_v29, %v8725_v47 }
 0x1b9   : > { %v8826_v27 = vadd.f32 %v6714_v46, %v8702_v15  ;;  %v2561_v23 = vpop.f32.mrf.mxu1 }
 0x1ba   : > { %v2920_v19 = vpop.f32.mrf.mxu0  ;;  %v8835_v36 = vadd.f32 %v2561_v23, %v8731_v62 }
 0x1bb   : > { %v8832_v24 = vadd.f32 %v2920_v19, %v8710_v38  ;;  %v6697_v9 = vpop.f32.mrf.mxu1 }
 0x1bc   : > { %v6715_v16 = vpop.f32.mrf.mxu0  ;;  %v8841_v15 = vadd.f32 %v6697_v9, %v8739_v57 }
 0x1bd   : > { %v8838_v61 = vadd.f32 %v6715_v16, %v8717_v45  ;;  %v2564_v47 = vpop.f32.mrf.mxu1 }
 0x1be   : > { %v2923_v52 = vpop.f32.mrf.mxu0  ;;  %v8847_v38 = vadd.f32 %v2564_v47, %v8746_v39 }
 0x1bf   : > { %v8844_v4 = vadd.f32 %v2923_v52, %v8722_v35  ;;  %v6700_v62 = vpop.f32.mrf.mxu1 }
 0x1c0   : > { %v6718_v30 = vpop.f32.mrf.mxu0  ;;  %v8853_v45 = vadd.f32 %v6700_v62, %v8751_v8 }
 0x1c1   : > { %v8850_v40 = vadd.f32 %v6718_v30, %v8728_v41  ;;  %v2577_v57 = vpop.f32.mrf.mxu1 }
 0x1c2   : > { %v2936_v56 = vpop.f32.mrf.mxu0  ;;  %v8859_v35 = vadd.f32 %v2577_v57, %v8757_v34 }
 0x1c3   : > { %v8856_v44 = vadd.f32 %v2936_v56, %v8736_v21  ;;  %v6701_v39 = vpop.f32.mrf.mxu1 }
 0x1c4   : > { %v6719_v59 = vpop.f32.mrf.mxu0  ;;  %v8865_v41 = vadd.f32 %v6701_v39, %v8763_v53 }
 0x1c5   : > { %v8862_v25 = vadd.f32 %v6719_v59, %v8743_v26  ;;  %v2580_v8 = vpop.f32.mrf.mxu1 }
 0x1c6   : > { %v2939_v2 = vpop.f32.mrf.mxu0  ;;  %v8871_v21 = vadd.f32 %v2580_v8, %v8769_v7 }
 0x1c7   : > { %v8868_v5 = vadd.f32 %v2939_v2, %v8748_v6  ;;  %v6704_v34 = vpop.f32.mrf.mxu1 }
 0x1c8   : > { %v6722_v37 = vpop.f32.mrf.mxu0  ;;  %v8877_v26 = vadd.f32 %v6704_v34, %v8777_v11 }
 0x1c9   : > { %v8874_v28 = vadd.f32 %v6722_v37, %v8754_v51  ;;  %v2593_v53 = vpop.f32.mrf.mxu1 }
 0x1ca   : > { %v2952_v20 = vpop.f32.mrf.mxu0  ;;  %v8883_v6 = vadd.f32 %v2593_v53, %v8784_v14 }
 0x1cb   : > { %v8880_v42 = vadd.f32 %v2952_v20, %v8760_v58  ;;  %v6705_v7 = vpop.f32.mrf.mxu1 }
 0x1cc   : > { %v6723_v18 = vpop.f32.mrf.mxu0  ;;  %v8889_v51 = vadd.f32 %v6705_v7, %v8791_v48 }
 0x1cd   : > { %v8886_v13 = vadd.f32 %v6723_v18, %v8766_v1  ;;  %v2596_v11 = vpop.f32.mrf.mxu1 }
 0x1ce   : > { %v2955_v50 = vpop.f32.mrf.mxu0  ;;  %v8895_v58 = vadd.f32 %v2596_v11, %v8796_v55 }
 0x1cf   : > { %v8892_v46 = vadd.f32 %v2955_v50, %v8774_v22  ;;  %v6748_v14 = vpop.f32.mrf.mxu1 }
 0x1d0   : > { %v6726_v29 = vpop.f32.mrf.mxu0  ;;  %v8901_v1 = vadd.f32 %v6748_v14, %v8802_v49  ;;  %v7282_v49 = vmov 1966171168  }
 0x1d1   : > { %v8898_v19 = vadd.f32 %v6726_v29, %v8781_v33  ;;  %v3351_v48 = vpop.f32.mrf.mxu1  ;;  %v3952_v62 = vunpack.c.l.s4 %v7282_v49  ;;  %v6951_v49 = vld [vmem:[%s9861_s4 + $0xec] ss:$16 sps:$4 sm:$0xff]  }
 0x1d2   : > { %v2968_v23 = vpop.f32.mrf.mxu0  ;;  %v8907_v22 = vadd.f32 %v3351_v48, %v8808_v60  ;;  %4308 = vmatprep.subr.bf16.mxu0 %v6951_v49  ;;  %v6975_v49 = vld [vmem:[%s9861_s4 + $0x6c] ss:$16 sps:$4 sm:$0xff]  }
 0x1d3   : > { %v8904_v16 = vadd.f32 %v2968_v23, %v8788_v54  ;;  %v6749_v55 = vpop.f32.mrf.mxu1  ;;  %v9874_v54 = vlaneseq }
 0x1d4   : > { %v6727_v9 = vpop.f32.mrf.mxu0  ;;  %v8913_v33 = vadd.f32 %v6749_v55, %v8814_v43 }
 0x1d5   : > { %v8910_v52 = vadd.f32 %v6727_v9, %v8794_v10  ;;  %v3354_v56 = vpop.f32.mrf.mxu1  ;;  %v3953_v10 = vunpack.c.0.s8 %v3952_v62  ;;  %v8925_v39 = vshrl.u32 %v9874_v54, 7  ;;  %v6957_v62 = vld [vmem:[%s9861_s4 + $0xcc] ss:$16 sps:$4 sm:$0xff]  }
 0x1d6   : > { %v2971_v47 = vpop.f32.mrf.mxu0  ;;  %v8919_v59 = vadd.f32 %v3354_v56, %v8820_v12 }
 0x1d7   : > { %v8916_v30 = vadd.f32 %v2971_v47, %v8799_v31  ;;  %9914 = vst [vmem:[#allocation12_spill] sm:$0xff] %v8925_v39  ;;  %v6752_v43 = vpop.f32.mrf.mxu1  ;;  %v8930_v31 = vld.sshfl [vmem:[%s9858_s1] sm:$0x13 pattern:$0x75316420]  ;;  %v8941_v37 = vsub.s32 %v3953_v10, %v8925_v39 }
 0x1d8   : > { %v6730_v57 = vpop.f32.mrf.mxu0  ;;  %9915 = vst [vmem:[#allocation18_spill] sm:$0xff] %v8930_v31  ;;  %v8933_v8 = vadd.f32 %v6752_v43, %v8826_v27  ;;  %v6955_v10 = vld [vmem:[%s9861_s4 + $0xc8] ss:$16 sps:$4 sm:$0xff]  }
 0x1d9   : > { %v8922_v60 = vadd.f32 %v6730_v57, %v8805_v0  ;;  %v3950_v0 = vcombine.high %v8930_v31, %v8930_v31  ;;  %9916 = vst [vmem:[#allocation19_spill] sm:$0xff] %v8941_v37  ;;  %v3367_v34 = vpop.f32.mrf.mxu1 }
 0x1da   : > { %v2984_v2 = vpop.f32.mrf.mxu0  ;;  %v8944_v53 = vadd.f32 %v3367_v34, %v8832_v24 }
 0x1db   : > { %v8936_v12 = vadd.f32 %v2984_v2, %v8811_v17  ;;  %v3964_v27 = vrot.slane %v3950_v0, %v8941_v37  ;;  %v6753_v7 = vpop.f32.mrf.mxu1  ;;  %v6963_v0 = vld [vmem:[%s9861_s4 + $0xac] ss:$16 sps:$4 sm:$0xff]  }
 0x1dc   : > { %v6731_v20 = vpop.f32.mrf.mxu0  ;;  %v8951_v17 = vadd.f32 %v6753_v7, %v8838_v61 }
 0x1dd   : > { %v8947_v18 = vadd.f32 %v6731_v20, %v8817_v63  ;;  %4004 = vmatprep.mubr.bf16.mxu1 %v3964_v27  ;;  %v3370_v29 = vpop.f32.mrf.mxu1  ;;  %v6961_v27 = vld [vmem:[%s9861_s4 + $0xa8] ss:$16 sps:$4 sm:$0xff]  }
 0x1de   : > { %v2987_v50 = vpop.f32.mrf.mxu0  ;;  %v8957_v23 = vadd.f32 %v3370_v29, %v8844_v4  ;;  %v6949_v4 = vld [vmem:[%s9861_s4 + $0xe8] ss:$16 sps:$4 sm:$0xff]   ;;  %v6969_v29 = vld [vmem:[%s9861_s4 + $0x8c] ss:$16 sps:$4 sm:$0xff]  }
 0x1df   : > { %v8954_v11 = vadd.f32 %v2987_v50, %v8823_v32  ;;  %v8962_v63 = vpop.f32.mrf.mxu1  ;;  %4309 = vmatpush1.bf16.msra.mxu0 %v6949_v4 }
 0x1e0   : > { %v6734_v14 = vpop.f32.mrf.mxu0  ;;  %4310 = vmatprep.subr.bf16.mxu0 %v6957_v62 }
 0x1e1   : > { %v8960_v24 = vadd.f32 %v6734_v14, %v8829_v3  ;;  %v8967_v61 = vpop.f32.mrf.mxu1 }
 0x1e2   : > { %v3000_v48 = vpop.f32.mrf.mxu0 }
 0x1e3   : > { %v8965_v9 = vadd.f32 %v3000_v48, %v8835_v36  ;;  %v8975_v47 = vpop.f32.mrf.mxu1  ;;  %4311 = vmatpush1.bf16.msra.mxu0 %v6955_v10  ;;  %v6973_v10 = vld [vmem:[%s9861_s4 + $0x68] ss:$16 sps:$4 sm:$0xff]  }
 0x1e4   : > { %v6735_v55 = vpop.f32.mrf.mxu0  ;;  %4312 = vmatprep.subr.bf16.mxu0 %v6963_v0 }
 0x1e5   : > { %v8970_v32 = vadd.f32 %v6735_v55, %v8841_v15  ;;  %v8986_v15 = vpop.f32.mrf.mxu1  ;;  %v6967_v55 = vld [vmem:[%s9861_s4 + $0x88] ss:$16 sps:$4 sm:$0xff]  }
 0x1e6   : > { %v3003_v3 = vpop.f32.mrf.mxu0 }
 0x1e7   : > { %v8981_v36 = vadd.f32 %v3003_v3, %v8847_v38  ;;  %v8994_v43 = vpop.f32.mrf.mxu1  ;;  %4313 = vmatpush1.bf16.msra.mxu0 %v6961_v27 }
 0x1e8   : > { %v6738_v56 = vpop.f32.mrf.mxu0  ;;  %4314 = vmatprep.subr.bf16.mxu0 %v6969_v29 }
 0x1e9   : > { %v8989_v57 = vadd.f32 %v6738_v56, %v8853_v45  ;;  %v9002_v34 = vpop.f32.mrf.mxu1 }
 0x1ea   : > { %v3016_v38 = vpop.f32.mrf.mxu0 }
 0x1eb   : > { %v8997_v2 = vadd.f32 %v3016_v38, %v8859_v35  ;;  %v9010_v7 = vpop.f32.mrf.mxu1  ;;  %4315 = vmatpush1.bf16.msra.mxu0 %v6967_v55 }
 0x1ec   : > { %v6739_v45 = vpop.f32.mrf.mxu0  ;;  %4316 = vmatprep.subr.bf16.mxu0 %v6975_v49 }
 0x1ed   : > { %v9005_v20 = vadd.f32 %v6739_v45, %v8865_v41  ;;  %v9018_v14 = vpop.f32.mrf.mxu1 }
 0x1ee   : > { %v3019_v50 = vpop.f32.mrf.mxu0 }
 0x1ef   : > { %v9013_v35 = vadd.f32 %v3019_v50, %v8871_v21  ;;  %v9026_v4 = vpop.f32.mrf.mxu1  ;;  %4317 = vmatpush1.bf16.msra.mxu0 %v6973_v10 }
 0x1f0   : > { %v6742_v41 = vpop.f32.mrf.mxu0 }
 0x1f1   : > { %v9021_v48 = vadd.f32 %v6742_v41, %v8877_v26  ;;  %v9034_v62 = vpop.f32.mrf.mxu1 }
 0x1f2   : > { %v3032_v3 = vpop.f32.mrf.mxu0 }
 0x1f3   : > { %v9029_v21 = vadd.f32 %v3032_v3, %v8883_v6  ;;  %v9042_v38 = vpop.f32.mrf.mxu1 }
 0x1f4   : > { %v6743_v26 = vpop.f32.mrf.mxu0 }
 0x1f5   : > { %v9037_v56 = vadd.f32 %v6743_v26, %v8889_v51  ;;  %v9048_v50 = vpop.f32.mrf.mxu1  ;;  %v9053_v51 = vld [vmem:[%s9860_s3] ss:$0 sm:$0xff] }
 0x1f6   : > { %v3035_v0 = vpop.f32.mrf.mxu0 }
 0x1f7   : > { %v9045_v6 = vadd.f32 %v3035_v0, %v8895_v58  ;;  %v9058_v49 = vpop.f32.mrf.mxu1 }
 0x1f8   : > { %v6786_v45 = vpop.f32.mrf.mxu0 }
 0x1f9   : > { %9917 = vst [vmem:[#allocation14_spill] sm:$0xff] %v9045_v6  ;;  %v3810_v27 = vadd.f32 %v6786_v45, %v8901_v1 }
 0x1fa   : > { %v3665_v29 = vpop.f32.mrf.mxu0 }
 0x1fb   : > { %v3808_v41 = vadd.f32 %v3665_v29, %v8907_v22  ;;  %v3853_v3 = vadd.f32 %v9053_v51, %v3810_v27  ;;  %v9065_v29 = vpop.f32.mrf.mxu1 }
 0x1fc   : > { %v6787_v55 = vpop.f32.mrf.mxu0 }
 0x1fd   : > { %v3811_v58 = vadd.f32 %v6787_v55, %v8913_v33  ;;  %v3851_v1 = vadd.f32 %v9053_v51, %v3808_v41  ;;  %v3889_v54 = vmax.f32 %v3853_v3, 0.0 }
 0x1fe   : > { %v3668_v26 = vpop.f32.mrf.mxu0 }
 0x1ff   : > { %v3854_v10 = vadd.f32 %v9053_v51, %v3811_v58  ;;  %v3809_v0 = vadd.f32 %v3668_v26, %v8919_v59  ;;  %v3887_v33 = vmax.f32 %v3851_v1, 0.0  ;;  %v9074_v26 = vpop.f32.mrf.mxu1 }
 0x200   : > { %v6790_v45 = vpop.f32.mrf.mxu0 }
 0x201   : > { %v3890_v39 = vmax.f32 %v3854_v10, 0.0  ;;  %v3852_v31 = vadd.f32 %v9053_v51, %v3809_v0  ;;  %v3814_v22 = vadd.f32 %v6790_v45, %v8933_v8  ;;  %v3504_v8 = vadd.f32 %v8962_v63, %v8850_v40 }
 0x202   : > { %v3681_v27 = vpop.f32.mrf.mxu0  ;;  %v3505_v40 = vadd.f32 %v8975_v47, %v8862_v25  ;;  %v3508_v25 = vadd.f32 %v8994_v43, %v8874_v28  ;;  %v3509_v28 = vadd.f32 %v9010_v7, %v8886_v13 }
 0x203   : > { %v9067_v55 = vpack.c.bf16 %v3890_v39, %v3889_v54  ;;  %v3888_v37 = vmax.f32 %v3852_v31, 0.0  ;;  %v3812_v41 = vadd.f32 %v3681_v27, %v8944_v53  ;;  %v3857_v59 = vadd.f32 %v9053_v51, %v3814_v22 }
 0x204   : > { %v6791_v6 = vpop.f32.mrf.mxu0 }
 0x205   : > { %v9070_v58 = vpack.c.bf16 %v3888_v37, %v3887_v33  ;;  %v3815_v3 = vadd.f32 %v6791_v6, %v8951_v17  ;;  %v3855_v1 = vadd.f32 %v9053_v51, %v3812_v41  ;;  %v3893_v53 = vmax.f32 %v3857_v59, 0.0  ;;  %v9084_v6 = vpop.f32.mrf.mxu1 }
 0x206   : > { %v3684_v10 = vpop.f32.mrf.mxu0  ;;  %v3502_v17 = vadd.f32 %v8967_v61, %v8856_v44  ;;  %v3503_v59 = vadd.f32 %v8986_v15, %v8868_v5 }
 0x207   : > { %v3858_v54 = vadd.f32 %v9053_v51, %v3815_v3  ;;  %v3813_v39 = vadd.f32 %v3684_v10, %v8957_v23  ;;  %v3891_v63 = vmax.f32 %v3855_v1, 0.0  ;;  %v9095_v61 = vpop.f32.mrf.mxu1 }
 0x208   : > { %v6794_v31 = vpop.f32.mrf.mxu0 }
 0x209   : > { %v3894_v37 = vmax.f32 %v3858_v54, 0.0  ;;  %v3856_v0 = vadd.f32 %v9053_v51, %v3813_v39  ;;  %v3818_v45 = vadd.f32 %v6794_v31, %v3504_v8 }
 0x20a   : > { %v3697_v22 = vpop.f32.mrf.mxu0 }
 0x20b   : > { %v9088_v27 = vpack.c.bf16 %v3894_v37, %v3893_v53  ;;  %v3892_v33 = vmax.f32 %v3856_v0, 0.0  ;;  %v3816_v23 = vadd.f32 %v3697_v22, %v3502_v17  ;;  %v3861_v10 = vadd.f32 %v9053_v51, %v3818_v45  ;;  %v9104_v0 = vpop.f32.mrf.mxu1 }
 0x20c   : > { %v6795_v41 = vpop.f32.mrf.mxu0  ;;  %v3506_v37 = vadd.f32 %v9002_v34, %v8880_v42 }
 0x20d   : > { %v9092_v3 = vpack.c.bf16 %v3892_v33, %v3891_v63  ;;  %v3819_v44 = vadd.f32 %v6795_v41, %v3505_v40  ;;  %v3859_v47 = vadd.f32 %v9053_v51, %v3816_v23  ;;  %v3897_v31 = vmax.f32 %v3861_v10, 0.0  ;;  %v6773_v34 = vpop.f32.mrf.mxu1 }
 0x20e   : > { %v3700_v8 = vpop.f32.mrf.mxu0  ;;  %v3507_v33 = vadd.f32 %v9018_v14, %v8892_v46  ;;  %v3512_v10 = vadd.f32 %v9026_v4, %v8898_v19 }
 0x20f   : > { %v3862_v1 = vadd.f32 %v9053_v51, %v3819_v44  ;;  %v3817_v54 = vadd.f32 %v3700_v8, %v3503_v59  ;;  %v3895_v43 = vmax.f32 %v3859_v47, 0.0  ;;  %v3510_v8 = vadd.f32 %v9034_v62, %v8904_v16 }
 0x210   : > { %v6798_v39 = vpop.f32.mrf.mxu0  ;;  %v3511_v16 = vadd.f32 %v9048_v50, %v8916_v30 }
 0x211   : > { %v3898_v53 = vmax.f32 %v3862_v1, 0.0  ;;  %v3860_v5 = vadd.f32 %v9053_v51, %v3817_v54  ;;  %v3822_v15 = vadd.f32 %v6798_v39, %v3508_v25  ;;  %v3513_v54 = vadd.f32 %v9042_v38, %v8910_v52  ;;  %v3450_v39 = vpop.f32.mrf.mxu1 }
 0x212   : > { %v3713_v45 = vpop.f32.mrf.mxu0  ;;  %v3516_v52 = vadd.f32 %v9058_v49, %v8922_v60 }
 0x213   : > { %v9108_v17 = vpack.c.bf16 %v3898_v53, %v3897_v31  ;;  %v3896_v22 = vmax.f32 %v3860_v5, 0.0  ;;  %v3820_v40 = vadd.f32 %v3713_v45, %v3506_v37  ;;  %v3865_v41 = vadd.f32 %v9053_v51, %v3822_v15 }
 0x214   : > { %v6799_v63 = vpop.f32.mrf.mxu0 }
 0x215   : > { %v9112_v23 = vpack.c.bf16 %v3896_v22, %v3895_v43  ;;  %v3823_v42 = vadd.f32 %v6799_v63, %v3509_v28  ;;  %v3863_v13 = vadd.f32 %v9053_v51, %v3820_v40  ;;  %v3901_v46 = vmax.f32 %v3865_v41, 0.0  ;;  %v6776_v28 = vpop.f32.mrf.mxu1 }
 0x216   : > { %v3716_v59 = vpop.f32.mrf.mxu0  ;;  %v3514_v63 = vadd.f32 %v9065_v29, %v8936_v12  ;;  %v3515_v12 = vadd.f32 %v9084_v6, %v8954_v11 }
 0x217   : > { %v3866_v7 = vadd.f32 %v9053_v51, %v3823_v42  ;;  %v3821_v44 = vadd.f32 %v3716_v59, %v3507_v33  ;;  %v3899_v19 = vmax.f32 %v3863_v13, 0.0  ;;  %v3517_v59 = vadd.f32 %v9074_v26, %v8947_v18 }
 0x218   : > { %v6802_v25 = vpop.f32.mrf.mxu0  ;;  %v3520_v18 = vadd.f32 %v9095_v61, %v8960_v24 }
 0x219   : > { %v3902_v14 = vmax.f32 %v3866_v7, 0.0  ;;  %v3864_v47 = vadd.f32 %v9053_v51, %v3821_v44  ;;  %v3826_v1 = vadd.f32 %v6802_v25, %v3512_v10  ;;  %v3463_v10 = vpop.f32.mrf.mxu1 }
 0x21a   : > { %v3729_v31 = vpop.f32.mrf.mxu0 }
 0x21b   : > { %v9124_v4 = vpack.c.bf16 %v3902_v14, %v3901_v46  ;;  %v3900_v53 = vmax.f32 %v3864_v47, 0.0  ;;  %v3824_v5 = vadd.f32 %v3729_v31, %v3510_v8  ;;  %v3869_v37 = vadd.f32 %v9053_v51, %v3826_v1  ;;  %v6777_v14 = vpop.f32.mrf.mxu1 }
 0x21c   : > { %v6803_v15 = vpop.f32.mrf.mxu0  ;;  %v3518_v31 = vadd.f32 %v9104_v0, %v8965_v9 }
 0x21d   : > { %v9128_v62 = vpack.c.bf16 %v3900_v53, %v3899_v19  ;;  %v3827_v45 = vadd.f32 %v6803_v15, %v3513_v54  ;;  %v3867_v38 = vadd.f32 %v9053_v51, %v3824_v5  ;;  %v3905_v30 = vmax.f32 %v3869_v37, 0.0 }
 0x21e   : > { %v3732_v43 = vpop.f32.mrf.mxu0  ;;  %v3521_v15 = vadd.f32 %v6773_v34, %v8970_v32 }
 0x21f   : > { %v3870_v22 = vadd.f32 %v9053_v51, %v3827_v45  ;;  %v3825_v40 = vadd.f32 %v3732_v43, %v3511_v16  ;;  %v3903_v60 = vmax.f32 %v3867_v38, 0.0  ;;  %v3466_v16 = vpop.f32.mrf.mxu1  ;;  %v3519_v38 = vadd.f32 %v3450_v39, %v8981_v36 }
 0x220   : > { %v6806_v33 = vpop.f32.mrf.mxu0 }
 0x221   : > { %v3906_v50 = vmax.f32 %v3870_v22, 0.0  ;;  %v3868_v41 = vadd.f32 %v9053_v51, %v3825_v40  ;;  %v3830_v42 = vadd.f32 %v6806_v33, %v3516_v52  ;;  %v6780_v40 = vpop.f32.mrf.mxu1  ;;  %v3524_v33 = vadd.f32 %v6776_v28, %v8989_v57 }
 0x222   : > { %v3745_v13 = vpop.f32.mrf.mxu0 }
 0x223   : > { %v3904_v49 = vmax.f32 %v3868_v41, 0.0  ;;  %v3828_v7 = vadd.f32 %v3745_v13, %v3514_v63  ;;  %v9140_v44 = vpack.c.bf16 %v3906_v50, %v3905_v30  ;;  %v3873_v29 = vadd.f32 %v9053_v51, %v3830_v42 }
 0x224   : > { %v6807_v8 = vpop.f32.mrf.mxu0  ;;  %v3522_v50 = vadd.f32 %v3463_v10, %v8997_v2  ;;  %v3525_v13 = vadd.f32 %v6777_v14, %v9005_v20 }
 0x225   : > { %v3831_v25 = vadd.f32 %v6807_v8, %v3517_v59  ;;  %v9145_v46 = vpack.c.bf16 %v3904_v49, %v3903_v60  ;;  %v3871_v26 = vadd.f32 %v9053_v51, %v3828_v7  ;;  %v3909_v11 = vmax.f32 %v3873_v29, 0.0  ;;  %v3479_v60 = vpop.f32.mrf.mxu1 }
 0x226   : > { %v3748_v47 = vpop.f32.mrf.mxu0  ;;  %v3523_v29 = vadd.f32 %v3466_v16, %v9013_v35 }
 0x227   : > { %v3874_v1 = vadd.f32 %v9053_v51, %v3831_v25  ;;  %v3829_v54 = vadd.f32 %v3748_v47, %v3515_v12  ;;  %v3907_v45 = vmax.f32 %v3871_v26, 0.0  ;;  %v6781_v47 = vpop.f32.mrf.mxu1  ;;  %v3528_v26 = vadd.f32 %v6780_v40, %v9021_v48 }
 0x228   : > { %v6810_v19 = vpop.f32.mrf.mxu0 }
 0x229   : > { %v3910_v6 = vmax.f32 %v3874_v1, 0.0  ;;  %v3872_v53 = vadd.f32 %v9053_v51, %v3829_v54  ;;  %v3834_v5 = vadd.f32 %v6810_v19, %v3520_v18  ;;  %v3526_v54 = vadd.f32 %v3479_v60, %v9029_v21  ;;  %v6979_v60 = vld [vmem:[%s9861_s4 + $0x48] ss:$16 sps:$4 sm:$0xff]  }
 0x22a   : > { %v3761_v37 = vpop.f32.mrf.mxu0 }
 0x22b   : > { %v3908_v24 = vmax.f32 %v3872_v53, 0.0  ;;  %v3832_v61 = vadd.f32 %v3761_v37, %v3518_v31  ;;  %v9155_v43 = vpack.c.bf16 %v3910_v6, %v3909_v11  ;;  %v3877_v9 = vadd.f32 %v9053_v51, %v3834_v5  ;;  %v3482_v5 = vpop.f32.mrf.mxu1 }
 0x22c   : > { %v6811_v52 = vpop.f32.mrf.mxu0  ;;  %v3529_v53 = vadd.f32 %v6781_v47, %v9037_v56  ;;  %v6996_v47 = vld [vmem:[%s9863_s6 + $0xe4] ss:$16 sps:$4 sm:$0xff]  }
 0x22d   : > { %v3835_v0 = vadd.f32 %v6811_v52, %v3521_v15  ;;  %v9159_v22 = vpack.c.bf16 %v3908_v24, %v3907_v45  ;;  %v3875_v32 = vadd.f32 %v9053_v51, %v3832_v61  ;;  %v3913_v42 = vmax.f32 %v3877_v9, 0.0  ;;  %v9918_v61 = vld [vmem:[#allocation14_spill] sm:$0xff] }
 0x22e   : > { %v3764_v63 = vpop.f32.mrf.mxu0  ;;  %v3527_v52 = vadd.f32 %v3482_v5, %v9918_v61  ;;  %v7002_v5 = vld [vmem:[%s9863_s6 + $0xc4] ss:$16 sps:$4 sm:$0xff]  }
 0x22f   : > { %v3878_v34 = vadd.f32 %v9053_v51, %v3835_v0  ;;  %v3833_v30 = vadd.f32 %v3764_v63, %v3519_v38  ;;  %v3911_v7 = vmax.f32 %v3875_v32, 0.0  ;;  %v7011_v61 = vld [vmem:[%s9863_s6 + $0x2a4] ss:$16 sps:$4 sm:$0xff]  }
 0x230   : > { %v6814_v41 = vpop.f32.mrf.mxu0 }
 0x231   : > { %v3914_v59 = vmax.f32 %v3878_v34, 0.0  ;;  %v3876_v36 = vadd.f32 %v9053_v51, %v3833_v30  ;;  %v3838_v39 = vadd.f32 %v6814_v41, %v3524_v33 }
 0x232   : > { %v3777_v49 = vpop.f32.mrf.mxu0 }
 0x233   : > { %v3912_v8 = vmax.f32 %v3876_v36, 0.0  ;;  %v3836_v57 = vadd.f32 %v3777_v49, %v3522_v50  ;;  %v3937_v28 = vpack.c.bf16 %v3914_v59, %v3913_v42  ;;  %v3881_v25 = vadd.f32 %v9053_v51, %v3838_v39  ;;  %v6972_v59 = vld [vmem:[%s9861_s4 + $0x64] ss:$16 sps:$4 sm:$0xff]   ;;  %v6970_v36 = vld [vmem:[%s9861_s4 + $0x60] ss:$16 sps:$4 sm:$0xff]  }
 0x234   : > { %v6815_v12 = vpop.f32.mrf.mxu0  ;;  %v6976_v39 = vld [vmem:[%s9861_s4 + $0x40] ss:$16 sps:$4 sm:$0xff]   ;;  %v6981_v49 = vld [vmem:[%s9861_s4 + $0x4c] ss:$16 sps:$4 sm:$0xff]  }
 0x235   : > { %v3839_v2 = vadd.f32 %v6815_v12, %v3525_v13  ;;  %v3936_v10 = vpack.c.bf16 %v3912_v8, %v3911_v7  ;;  %v3879_v1 = vadd.f32 %v9053_v51, %v3836_v57  ;;  %v3917_v19 = vmax.f32 %v3881_v25, 0.0  ;;  %v6978_v13 = vld [vmem:[%s9861_s4 + $0x44] ss:$16 sps:$4 sm:$0xff]   ;;  %4318 = vmatprep.subr.bf16.mxu0 %v6981_v49  ;;  %v6982_v7 = vld [vmem:[%s9861_s4 + $0x20] ss:$16 sps:$4 sm:$0xff]  }
 0x236   : > { %v3780_v18 = vpop.f32.mrf.mxu0  ;;  %4319 = vmatpush1.bf16.msra.mxu0 %v6979_v60  ;;  %v6984_v8 = vld [vmem:[%s9861_s4 + $0x24] ss:$16 sps:$4 sm:$0xff]   ;;  %v6985_v57 = vld [vmem:[%s9861_s4 + $0x28] ss:$16 sps:$4 sm:$0xff]   ;;  %v6988_v25 = vld [vmem:[%s9861_s4] ss:$16 sps:$4 sm:$0xff]  }
 0x237   : > { %v3882_v20 = vadd.f32 %v9053_v51, %v3839_v2  ;;  %v3837_v14 = vadd.f32 %v3780_v18, %v3523_v29  ;;  %v3915_v16 = vmax.f32 %v3879_v1, 0.0  ;;  %v6990_v12 = vld [vmem:[%s9861_s4 + $0x4] ss:$16 sps:$4 sm:$0xff]   ;;  %v6993_v29 = vld [vmem:[%s9861_s4 + $0xc] ss:$16 sps:$4 sm:$0xff]  }
 0x238   : > { %v6818_v31 = vpop.f32.mrf.mxu0  ;;  %v6991_v2 = vld [vmem:[%s9861_s4 + $0x8] ss:$16 sps:$4 sm:$0xff]   ;;  %v6999_v18 = vld [vmem:[%s9863_s6 + $0x2e4] ss:$16 sps:$4 sm:$0xff]   ;;  %v7054_v49 = vld [vmem:[%s9863_s6 + $0x1a0] ss:$16 sps:$4 sm:$0xff]  }
 0x239   : > { %v3918_v11 = vmax.f32 %v3882_v20, 0.0  ;;  %v3880_v35 = vadd.f32 %v9053_v51, %v3837_v14  ;;  %v3842_v6 = vadd.f32 %v6818_v31, %v3528_v26  ;;  %v7059_v60 = vld [vmem:[%s9863_s6 + $0x3a4] ss:$16 sps:$4 sm:$0xff]  }
 0x23a   : > { %v3793_v15 = vpop.f32.mrf.mxu0 }
 0x23b   : > { %v3916_v37 = vmax.f32 %v3880_v35, 0.0  ;;  %v3840_v48 = vadd.f32 %v3793_v15, %v3526_v54  ;;  %v3939_v45 = vpack.c.bf16 %v3918_v11, %v3917_v19  ;;  %v3885_v38 = vadd.f32 %v9053_v51, %v3842_v6  ;;  %v6994_v35 = vld [vmem:[%s9863_s6 + $0xe0] ss:$16 sps:$4 sm:$0xff]   ;;  %v7005_v15 = vld [vmem:[%s9863_s6 + $0x2c4] ss:$16 sps:$4 sm:$0xff]  }
 0x23c   : > { %v6819_v24 = vpop.f32.mrf.mxu0  ;;  %v6997_v6 = vld [vmem:[%s9863_s6 + $0x2e0] ss:$16 sps:$4 sm:$0xff]  }
 0x23d   : > { %v3843_v21 = vadd.f32 %v6819_v24, %v3529_v53  ;;  %6409 = vmatprep.subr.bf16.mxu1 %v3939_v45  ;;  %v3938_v9 = vpack.c.bf16 %v3916_v37, %v3915_v16  ;;  %v3883_v40 = vadd.f32 %v9053_v51, %v3840_v48  ;;  %v3921_v33 = vmax.f32 %v3885_v38, 0.0  ;;  %v7000_v48 = vld [vmem:[%s9863_s6 + $0xc0] ss:$16 sps:$4 sm:$0xff]   ;;  %v7008_v24 = vld [vmem:[%s9863_s6 + $0xa4] ss:$16 sps:$4 sm:$0xff]  }
 0x23e   : > { %v3796_v0 = vpop.f32.mrf.mxu0  ;;  %6410 = vmatpush3.bf16.msra.mxu1 %v9124_v4  ;;  %v9920_v4 = vld [vmem:[#allocation18_spill] sm:$0xff] }
 0x23f   : > { %v3886_v56 = vadd.f32 %v9053_v51, %v3843_v21  ;;  %v3841_v63 = vadd.f32 %v3796_v0, %v3527_v52  ;;  %6411 = vmatprep.subr.bf16.mxu1 %v3938_v9  ;;  %v3919_v30 = vmax.f32 %v3883_v40, 0.0  ;;  %v7003_v45 = vld [vmem:[%s9863_s6 + $0x2c0] ss:$16 sps:$4 sm:$0xff]   ;;  %v7014_v21 = vld [vmem:[%s9863_s6 + $0x84] ss:$16 sps:$4 sm:$0xff]  }
 0x240   : > { %v7006_v52 = vld [vmem:[%s9863_s6 + $0xa0] ss:$16 sps:$4 sm:$0xff]   ;;  %v7017_v9 = vld [vmem:[%s9863_s6 + $0x284] ss:$16 sps:$4 sm:$0xff]  }
 0x241   : > { %v3922_v32 = vmax.f32 %v3886_v56, 0.0  ;;  %v3884_v34 = vadd.f32 %v9053_v51, %v3841_v63  ;;  %v9919_v51 = vld [vmem:[#allocation19_spill] sm:$0xff] }
 0x242   : > { %6412 = vmatpush3.bf16.msra.mxu1 %v9128_v62  ;;  %v6952_v62 = vld [vmem:[%s9861_s4 + $0xc0] ss:$16 sps:$4 sm:$0xff]   ;;  %v7020_v56 = vld [vmem:[%s9863_s6 + $0x64] ss:$16 sps:$4 sm:$0xff]  }
 0x243   : > { %v3941_v50 = vpack.c.bf16 %v3922_v32, %v3921_v33  ;;  %v3920_v41 = vmax.f32 %v3884_v34, 0.0  ;;  %6413 = vmatprep.subr.bf16.mxu1 %v3937_v28  ;;  %v6987_v28 = vld [vmem:[%s9861_s4 + $0x2c] ss:$16 sps:$4 sm:$0xff]   ;;  %v7009_v38 = vld [vmem:[%s9863_s6 + $0x2a0] ss:$16 sps:$4 sm:$0xff]  }
 0x244   : > { %4320 = vmatprep.subr.bf16.mxu0 %v6987_v28  ;;  %v7012_v0 = vld [vmem:[%s9863_s6 + $0x80] ss:$16 sps:$4 sm:$0xff]   ;;  %v7023_v63 = vld [vmem:[%s9863_s6 + $0x264] ss:$16 sps:$4 sm:$0xff]  }
 0x245   : > { %v3940_v42 = vpack.c.bf16 %v3920_v41, %v3919_v30  ;;  %4321 = vmatpush1.bf16.msra.mxu0 %v6985_v57  ;;  %v7015_v40 = vld [vmem:[%s9863_s6 + $0x280] ss:$16 sps:$4 sm:$0xff]   ;;  %v7026_v34 = vld [vmem:[%s9863_s6 + $0x44] ss:$16 sps:$4 sm:$0xff]  }
 0x246   : > { %6414 = vmatpush3.bf16.msra.mxu1 %v9108_v17  ;;  %v3957_v17 = vrot.slane %v9920_v4, %v9919_v51  ;;  %4322 = vmatprep.subr.bf16.mxu0 %v6993_v29  ;;  %v7018_v33 = vld [vmem:[%s9863_s6 + $0x60] ss:$16 sps:$4 sm:$0xff]   ;;  %v7029_v30 = vld [vmem:[%s9863_s6 + $0x244] ss:$16 sps:$4 sm:$0xff]  }
 0x247   : > { %6415 = vmatprep.subr.bf16.mxu1 %v3936_v10  ;;  %v7285_v10 = vmov 0   ;;  %v7021_v32 = vld [vmem:[%s9863_s6 + $0x260] ss:$16 sps:$4 sm:$0xff]   ;;  %v7035_v4 = vld [vmem:[%s9863_s6 + $0x224] ss:$16 sps:$4 sm:$0xff]  }
 0x248   : > { %4340 = vmatprep.mubr.bf16.mxu0 %v7285_v10  ;;  %v7027_v41 = vld [vmem:[%s9863_s6 + $0x240] ss:$16 sps:$4 sm:$0xff]   ;;  %v7065_v57 = vld [vmem:[%s9863_s6 + $0x384] ss:$16 sps:$4 sm:$0xff]  }
 0x249   : > { %4323 = vmatpush1.bf16.msra.mxu0 %v6991_v2  ;;  %v7060_v28 = vld [vmem:[%s9863_s6 + $0x180] ss:$16 sps:$4 sm:$0xff]   ;;  %v7068_v29 = vld [vmem:[%s9863_s6 + $0x164] ss:$16 sps:$4 sm:$0xff]  }
 0x24a   : > { %6416 = vmatpush3.bf16.msra.mxu1 %v9112_v23  ;;  %v7283_v23 = vmov 0.0   ;;  %5184 = vmatprep.subr.bf16.mxu0 %v6999_v18  ;;  %v7066_v2 = vld [vmem:[%s9863_s6 + $0x160] ss:$16 sps:$4 sm:$0xff]   ;;  %v7077_v18 = vld [vmem:[%s9863_s6 + $0x344] ss:$16 sps:$4 sm:$0xff]  }
 0x24b   : > { %6417 = vmatprep.subr.bf16.mxu1 %v9155_v43  ;;  %v6966_v43 = vld [vmem:[%s9861_s4 + $0x84] ss:$16 sps:$4 sm:$0xff]  }
 0x24e   : > { %6418 = vmatpush3.bf16.msra.mxu1 %v9088_v27  ;;  %v6948_v27 = vld [vmem:[%s9861_s4 + $0xe4] ss:$16 sps:$4 sm:$0xff]  }
 0x24f   : > { %6419 = vmatprep.subr.bf16.mxu1 %v9159_v22  ;;  %v6964_v22 = vld [vmem:[%s9861_s4 + $0x80] ss:$16 sps:$4 sm:$0xff]  }
 0x252   : > { %6420 = vmatpush3.bf16.msra.mxu1 %v9092_v3  ;;  %v3965_v3 = vcombine.high %v3957_v17, %v3957_v17 }
 0x253   : > { %6421 = vmatprep.subr.bf16.mxu1 %v9140_v44  ;;  %v6960_v44 = vld [vmem:[%s9861_s4 + $0xa4] ss:$16 sps:$4 sm:$0xff]  }
 0x256   : > { %6422 = vmatpush3.bf16.msra.mxu1 %v9067_v55  ;;  %v6946_v55 = vld [vmem:[%s9861_s4 + $0xe0] ss:$16 sps:$4 sm:$0xff]  }
 0x257   : > { %6423 = vmatprep.subr.bf16.mxu1 %v9145_v46  ;;  %v6958_v46 = vld [vmem:[%s9861_s4 + $0xa0] ss:$16 sps:$4 sm:$0xff]  }
 0x25a   : > { %6424 = vmatpush3.bf16.msra.mxu1 %v9070_v58  ;;  %v6954_v58 = vld [vmem:[%s9861_s4 + $0xc4] ss:$16 sps:$4 sm:$0xff]  }
 0x25b   : > { %6820 = vmatprep.subr.bf16.mxu1 %v7283_v23 }
 0x25d   : > { %4005 = vmatmul.mubr.bf16.vlgmr.msra.gmra.mxu1 %v3957_v17  ;;  %v7030_v17 = vld [vmem:[%s9863_s6 + $0x20] ss:$16 sps:$4 sm:$0xff]  }
 0x25e   : > { %6821 = vmatpush3.bf16.msra.mxu1 %v3941_v50  ;;  %6824 = vmatprep.mubr.msk.bf16.mxu1 %vm7284_vm8, %v7283_v23  ;;  %v7024_v50 = vld [vmem:[%s9863_s6 + $0x40] ss:$16 sps:$4 sm:$0xff]  }
 0x25f   : > { %6822 = vmatprep.subr.bf16.mxu1 %v7283_v23  ;;  %v7033_v23 = vld [vmem:[%s9863_s6 + $0x220] ss:$16 sps:$4 sm:$0xff]  }
 0x262   : > { %6823 = vmatpush3.bf16.msra.mxu1 %v3940_v42  ;;  %v7032_v42 = vld [vmem:[%s9863_s6 + $0x24] ss:$16 sps:$4 sm:$0xff]  }
 0x263   : > { %4267 = vmatprep.subr.bf16.mxu1 %v6948_v27  ;;  %v7038_v27 = vld [vmem:[%s9863_s6 + $0x4] ss:$16 sps:$4 sm:$0xff]  }
 0x265   : > { %6825 = vmatmul.mubr.msk.bf16.vlgmr.msra.gmra.mxu1 %vm3968_vm9, %v3965_v3  ;;  %v7041_v3 = vld [vmem:[%s9863_s6 + $0x204] ss:$16 sps:$4 sm:$0xff]  }
 0x266   : > { %4268 = vmatpush1.bf16.msra.mxu1 %v6946_v55  ;;  %4299 = vmatprep.mubr.bf16.mxu1 %v7285_v10  ;;  %v7036_v55 = vld [vmem:[%s9863_s6] ss:$16 sps:$4 sm:$0xff]  }
 0x267   : > { %4269 = vmatprep.subr.bf16.mxu1 %v6954_v58  ;;  %v7039_v58 = vld [vmem:[%s9863_s6 + $0x200] ss:$16 sps:$4 sm:$0xff]  }
 0x268   : > { %v7069_v10 = vld [vmem:[%s9863_s6 + $0x360] ss:$16 sps:$4 sm:$0xff]  }
 0x26a   : > { %4270 = vmatpush1.bf16.msra.mxu1 %v6952_v62  ;;  %v7044_v62 = vld [vmem:[%s9863_s6 + $0x1e4] ss:$16 sps:$4 sm:$0xff]  }
 0x26b   : > { %4271 = vmatprep.subr.bf16.mxu1 %v6960_v44  ;;  %v7047_v44 = vld [vmem:[%s9863_s6 + $0x3e4] ss:$16 sps:$4 sm:$0xff]  }
 0x26e   : > { %4272 = vmatpush1.bf16.msra.mxu1 %v6958_v46  ;;  %v7042_v46 = vld [vmem:[%s9863_s6 + $0x1e0] ss:$16 sps:$4 sm:$0xff]  }
 0x26f   : > { %4273 = vmatprep.subr.bf16.mxu1 %v6966_v43  ;;  %v7045_v43 = vld [vmem:[%s9863_s6 + $0x3e0] ss:$16 sps:$4 sm:$0xff]  }
 0x272   : > { %4274 = vmatpush1.bf16.msra.mxu1 %v6964_v22  ;;  %v7050_v22 = vld [vmem:[%s9863_s6 + $0x1c4] ss:$16 sps:$4 sm:$0xff]  }
 0x273   : > { %4275 = vmatprep.subr.bf16.mxu1 %v6972_v59  ;;  %v7053_v59 = vld [vmem:[%s9863_s6 + $0x3c4] ss:$16 sps:$4 sm:$0xff]  }
 0x276   : > { %4276 = vmatpush1.bf16.msra.mxu1 %v6970_v36  ;;  %v7048_v36 = vld [vmem:[%s9863_s6 + $0x1c0] ss:$16 sps:$4 sm:$0xff]  }
 0x277   : > { %4277 = vmatprep.subr.bf16.mxu1 %v6978_v13  ;;  %v7056_v13 = vld [vmem:[%s9863_s6 + $0x1a4] ss:$16 sps:$4 sm:$0xff]  }
 0x27a   : > { %4278 = vmatpush1.bf16.msra.mxu1 %v6976_v39  ;;  %v7051_v39 = vld [vmem:[%s9863_s6 + $0x3c0] ss:$16 sps:$4 sm:$0xff]  }
 0x27b   : > { %4279 = vmatprep.subr.bf16.mxu1 %v6984_v8  ;;  %v7062_v8 = vld [vmem:[%s9863_s6 + $0x184] ss:$16 sps:$4 sm:$0xff]  }
 0x27e   : > { %4280 = vmatpush1.bf16.msra.mxu1 %v6982_v7  ;;  %v7057_v7 = vld [vmem:[%s9863_s6 + $0x3a0] ss:$16 sps:$4 sm:$0xff]  }
 0x27f   : > { %4281 = vmatprep.subr.bf16.mxu1 %v6990_v12  ;;  %v7063_v12 = vld [vmem:[%s9863_s6 + $0x380] ss:$16 sps:$4 sm:$0xff]  }
 0x282   : > { %4282 = vmatpush1.bf16.msra.mxu1 %v6988_v25  ;;  %v7071_v25 = vld [vmem:[%s9863_s6 + $0x364] ss:$16 sps:$4 sm:$0xff]  }
 0x283   : > { %5143 = vmatprep.subr.bf16.mxu1 %v6996_v47  ;;  %v7074_v47 = vld [vmem:[%s9863_s6 + $0x144] ss:$16 sps:$4 sm:$0xff]  }
 0x31d   : > { %v6425_v26 = vpop.f32.mrf.mxu1 }
 0x31f   : > { %v6426_v1 = vpop.f32.mrf.mxu1 }
 0x320   : > { %v6427_v54 = vadd.f32 %v6426_v1, %v6425_v26  ;;  %v7072_v26 = vld [vmem:[%s9863_s6 + $0x140] ss:$16 sps:$4 sm:$0xff]  }
 0x321   : > { %v6428_v20 = vpop.f32.mrf.mxu1  ;;  %v7075_v1 = vld [vmem:[%s9863_s6 + $0x340] ss:$16 sps:$4 sm:$0xff]  }
 0x322   : > { %v7080_v20 = vld [vmem:[%s9863_s6 + $0x124] ss:$16 sps:$4 sm:$0xff]  }
 0x323   : > { %v6429_v14 = vpop.f32.mrf.mxu1 }
 0x324   : > { %v7083_v14 = vld [vmem:[%s9863_s6 + $0x324] ss:$16 sps:$4 sm:$0xff]  }
 0x325   : > { %v4046_v31 = vpop.f32.mrf.mxu1 }
 0x326   : > { %v4047_v19 = vadd.f32 %v6427_v54, %v4046_v31  ;;  %v7078_v54 = vld [vmem:[%s9863_s6 + $0x120] ss:$16 sps:$4 sm:$0xff]  }
 0x327   : > { %v6826_v11 = vpop.f32.mrf.mxu1  ;;  %v7081_v31 = vld [vmem:[%s9863_s6 + $0x320] ss:$16 sps:$4 sm:$0xff]  }
 0x328   : > { %v4052_v53 = vpack.c.bf16 %v4047_v19, %v4047_v19  ;;  %v7086_v19 = vld [vmem:[%s9863_s6 + $0x104] ss:$16 sps:$4 sm:$0xff]  }
 0x329   : > { %v4049_v16 = vpop.f32.mrf.mxu1  ;;  %v7089_v11 = vld [vmem:[%s9863_s6 + $0x304] ss:$16 sps:$4 sm:$0xff]  }
 0x32a   : > { %4300 = vmatmul.mubr.bf16.vlgmr.msra.gmra.mxu1 %v4052_v53  ;;  %4341 = vmatmul.mubr.bf16.vlgmr.msra.gmra.mxu0 %v4052_v53  ;;  %v7092_v53 = vld [vmem:[%s9863_s6 + $0xec] ss:$16 sps:$4 sm:$0xff]  }
 0x32b   : > { %v6827_v37 = vpop.f32.mrf.mxu1  ;;  %5144 = vmatpush1.bf16.msra.mxu1 %v6994_v35  ;;  %5185 = vmatpush1.bf16.msra.mxu0 %v6997_v6  ;;  %v7084_v35 = vld [vmem:[%s9863_s6 + $0x100] ss:$16 sps:$4 sm:$0xff]  }
 0x32c   : > { %5145 = vmatprep.subr.bf16.mxu1 %v7002_v5  ;;  %5186 = vmatprep.subr.bf16.mxu0 %v7005_v15  ;;  %v7087_v6 = vld [vmem:[%s9863_s6 + $0x300] ss:$16 sps:$4 sm:$0xff]   ;;  %v7095_v5 = vld [vmem:[%s9863_s6 + $0x2ec] ss:$16 sps:$4 sm:$0xff]  }
 0x32d   : > { %v9921_v15 = vld [vmem:[#allocation12_spill] sm:$0xff] }
 0x32e   : > { %v4249_v16 = vsub.s32 0, %v9921_v15  ;;  %v4257_v37 = vsub.s32 2, %v9921_v15 }
 0x32f   : > { %5146 = vmatpush1.bf16.msra.mxu1 %v7000_v48  ;;  %5187 = vmatpush1.bf16.msra.mxu0 %v7003_v45  ;;  %v4085_v48 = vld [vmem:[%s9862_s5] sm:$0xf]  ;;  %v4253_v45 = vsub.s32 1, %v9921_v15 }
 0x330   : > { %5147 = vmatprep.subr.bf16.mxu1 %v7008_v24  ;;  %5188 = vmatprep.subr.bf16.mxu0 %v7011_v61  ;;  %v4261_v24 = vsub.s32 3, %v9921_v15  ;;  %v4250_v61 = vrot.slane %v4085_v48, %v4249_v16 }
 0x333   : > { %5148 = vmatpush1.bf16.msra.mxu1 %v7006_v52  ;;  %5189 = vmatpush1.bf16.msra.mxu0 %v7009_v38  ;;  %v4258_v52 = vrot.slane %v4085_v48, %v4257_v37  ;;  %v4254_v38 = vrot.slane %v4085_v48, %v4253_v45 }
 0x334   : > { %5149 = vmatprep.subr.bf16.mxu1 %v7014_v21  ;;  %5190 = vmatprep.subr.bf16.mxu0 %v7017_v9 }
 0x337   : > { %5150 = vmatpush1.bf16.msra.mxu1 %v7012_v0  ;;  %5191 = vmatpush1.bf16.msra.mxu0 %v7015_v40  ;;  %v4262_v0 = vrot.slane %v4085_v48, %v4261_v24  ;;  %v7134_v48 = vld [vmem:[%s9863_s6 + $0xc] ss:$16 sps:$4 sm:$0xff]  }
 0x338   : > { %5151 = vmatprep.subr.bf16.mxu1 %v7020_v56  ;;  %5192 = vmatprep.subr.bf16.mxu0 %v7023_v63 }
 0x33b   : > { %5152 = vmatpush1.bf16.msra.mxu1 %v7018_v33  ;;  %5193 = vmatpush1.bf16.msra.mxu0 %v7021_v32 }
 0x33c   : > { %5153 = vmatprep.subr.bf16.mxu1 %v7026_v34  ;;  %5194 = vmatprep.subr.bf16.mxu0 %v7029_v30 }
 0x33f   : > { %5154 = vmatpush1.bf16.msra.mxu1 %v7024_v50  ;;  %5195 = vmatpush1.bf16.msra.mxu0 %v7027_v41 }
 0x340   : > { %5155 = vmatprep.subr.bf16.mxu1 %v7032_v42  ;;  %5196 = vmatprep.subr.bf16.mxu0 %v7035_v4 }
 0x343   : > { %5156 = vmatpush1.bf16.msra.mxu1 %v7030_v17  ;;  %5197 = vmatpush1.bf16.msra.mxu0 %v7033_v23  ;;  %v7090_v17 = vld [vmem:[%s9863_s6 + $0xe8] ss:$16 sps:$4 sm:$0xff]  }
 0x344   : > { %5157 = vmatprep.subr.bf16.mxu1 %v7038_v27  ;;  %5198 = vmatprep.subr.bf16.mxu0 %v7041_v3 }
 0x347   : > { %5158 = vmatpush1.bf16.msra.mxu1 %v7036_v55  ;;  %5199 = vmatpush1.bf16.msra.mxu0 %v7039_v58  ;;  %v7093_v55 = vld [vmem:[%s9863_s6 + $0x2e8] ss:$16 sps:$4 sm:$0xff]   ;;  %v7098_v58 = vld [vmem:[%s9863_s6 + $0xcc] ss:$16 sps:$4 sm:$0xff]  }
 0x348   : > { %5159 = vmatprep.subr.bf16.mxu1 %v7044_v62  ;;  %5200 = vmatprep.subr.bf16.mxu0 %v7047_v44 }
 0x34b   : > { %5160 = vmatpush2.bf16.msra.mxu1 %v7042_v46  ;;  %5201 = vmatpush2.bf16.msra.mxu0 %v7045_v43  ;;  %v7101_v43 = vld [vmem:[%s9863_s6 + $0x2cc] ss:$16 sps:$4 sm:$0xff]  }
 0x34c   : > { %5161 = vmatprep.subr.bf16.mxu1 %v7050_v22  ;;  %5202 = vmatprep.subr.bf16.mxu0 %v7053_v59 }
 0x34f   : > { %5162 = vmatpush2.bf16.msra.mxu1 %v7048_v36  ;;  %5203 = vmatpush2.bf16.msra.mxu0 %v7051_v39 }
 0x350   : > { %5163 = vmatprep.subr.bf16.mxu1 %v7056_v13  ;;  %5204 = vmatprep.subr.bf16.mxu0 %v7059_v60  ;;  %v7096_v13 = vld [vmem:[%s9863_s6 + $0xc8] ss:$16 sps:$4 sm:$0xff]  }
 0x353   : > { %5164 = vmatpush2.bf16.msra.mxu1 %v7054_v49  ;;  %5205 = vmatpush2.bf16.msra.mxu0 %v7057_v7  ;;  %v7099_v49 = vld [vmem:[%s9863_s6 + $0x2c8] ss:$16 sps:$4 sm:$0xff]  }
 0x354   : > { %5165 = vmatprep.subr.bf16.mxu1 %v7062_v8  ;;  %5206 = vmatprep.subr.bf16.mxu0 %v7065_v57  ;;  %v7104_v57 = vld [vmem:[%s9863_s6 + $0xac] ss:$16 sps:$4 sm:$0xff]  }
 0x357   : > { %5166 = vmatpush2.bf16.msra.mxu1 %v7060_v28  ;;  %5207 = vmatpush2.bf16.msra.mxu0 %v7063_v12  ;;  %v7107_v28 = vld [vmem:[%s9863_s6 + $0x2ac] ss:$16 sps:$4 sm:$0xff]  }
 0x358   : > { %5167 = vmatprep.subr.bf16.mxu1 %v7068_v29  ;;  %5208 = vmatprep.subr.bf16.mxu0 %v7071_v25  ;;  %v7102_v29 = vld [vmem:[%s9863_s6 + $0xa8] ss:$16 sps:$4 sm:$0xff]  }
 0x359   : > { %v7105_v25 = vld [vmem:[%s9863_s6 + $0x2a8] ss:$16 sps:$4 sm:$0xff]  }
 0x35b   : > { %5168 = vmatpush2.bf16.msra.mxu1 %v7066_v2  ;;  %5209 = vmatpush2.bf16.msra.mxu0 %v7069_v10  ;;  %v7110_v2 = vld [vmem:[%s9863_s6 + $0x8c] ss:$16 sps:$4 sm:$0xff]  }
 0x35c   : > { %5169 = vmatprep.subr.bf16.mxu1 %v7074_v47  ;;  %5210 = vmatprep.subr.bf16.mxu0 %v7077_v18  ;;  %v7113_v10 = vld [vmem:[%s9863_s6 + $0x28c] ss:$16 sps:$4 sm:$0xff]   ;;  %v7108_v47 = vld [vmem:[%s9863_s6 + $0x88] ss:$16 sps:$4 sm:$0xff]  }
 0x35d   : > { %v7111_v18 = vld [vmem:[%s9863_s6 + $0x288] ss:$16 sps:$4 sm:$0xff]  }
 0x35f   : > { %5170 = vmatpush2.bf16.msra.mxu1 %v7072_v26  ;;  %5211 = vmatpush2.bf16.msra.mxu0 %v7075_v1  ;;  %v7116_v26 = vld [vmem:[%s9863_s6 + $0x6c] ss:$16 sps:$4 sm:$0xff]  }
 0x360   : > { %5171 = vmatprep.subr.bf16.mxu1 %v7080_v20  ;;  %5212 = vmatprep.subr.bf16.mxu0 %v7083_v14  ;;  %v7119_v1 = vld [vmem:[%s9863_s6 + $0x26c] ss:$16 sps:$4 sm:$0xff]   ;;  %v7114_v20 = vld [vmem:[%s9863_s6 + $0x68] ss:$16 sps:$4 sm:$0xff]  }
 0x361   : > { %v7117_v14 = vld [vmem:[%s9863_s6 + $0x268] ss:$16 sps:$4 sm:$0xff]  }
 0x363   : > { %5172 = vmatpush2.bf16.msra.mxu1 %v7078_v54  ;;  %5213 = vmatpush2.bf16.msra.mxu0 %v7081_v31  ;;  %v7122_v54 = vld [vmem:[%s9863_s6 + $0x4c] ss:$16 sps:$4 sm:$0xff]  }
 0x364   : > { %5173 = vmatprep.subr.bf16.mxu1 %v7086_v19  ;;  %5214 = vmatprep.subr.bf16.mxu0 %v7089_v11  ;;  %v7125_v31 = vld [vmem:[%s9863_s6 + $0x24c] ss:$16 sps:$4 sm:$0xff]   ;;  %v7120_v19 = vld [vmem:[%s9863_s6 + $0x48] ss:$16 sps:$4 sm:$0xff]  }
 0x365   : > { %v7123_v11 = vld [vmem:[%s9863_s6 + $0x248] ss:$16 sps:$4 sm:$0xff]  }
 0x367   : > { %5174 = vmatpush2.bf16.msra.mxu1 %v7084_v35  ;;  %5215 = vmatpush2.bf16.msra.mxu0 %v7087_v6  ;;  %v7128_v35 = vld [vmem:[%s9863_s6 + $0x2c] ss:$16 sps:$4 sm:$0xff]  }
 0x368   : > { %5225 = vmatprep.subr.bf16.mxu1 %v7092_v53  ;;  %5266 = vmatprep.subr.bf16.mxu0 %v7095_v5  ;;  %v7131_v6 = vld [vmem:[%s9863_s6 + $0x22c] ss:$16 sps:$4 sm:$0xff]   ;;  %v7126_v53 = vld [vmem:[%s9863_s6 + $0x28] ss:$16 sps:$4 sm:$0xff]  }
 0x369   : > { %v7129_v5 = vld [vmem:[%s9863_s6 + $0x228] ss:$16 sps:$4 sm:$0xff]  }
 0x3ea   : > { %v4301_v21 = vpop.f32.mrf.mxu1  ;;  %v4342_v9 = vpop.f32.mrf.mxu0 }
 0x3eb   : > { %v9473_v40 = vadd.f32 %v4301_v21, %v4250_v61  ;;  %v9475_v56 = vadd.f32 %v4342_v9, %v4258_v52  ;;  %v7137_v61 = vld [vmem:[%s9863_s6 + $0x20c] ss:$16 sps:$4 sm:$0xff]   ;;  %v7132_v52 = vld [vmem:[%s9863_s6 + $0x8] ss:$16 sps:$4 sm:$0xff]  }
 0x3ec   : > { %v4303_v63 = vpop.f32.mrf.mxu1  ;;  %v4344_v33 = vpop.f32.mrf.mxu0  ;;  %v7140_v21 = vld [vmem:[%s9863_s6 + $0x1ec] ss:$16 sps:$4 sm:$0xff]  }
 0x3ed   : > { %v5307_v32 = vmul.f32 %v9473_v40, %v9473_v40  ;;  %v9479_v34 = vadd.f32 %v4303_v63, %v4254_v38  ;;  %v9481_v30 = vadd.f32 %v4344_v33, %v4262_v0  ;;  %v5309_v23 = vmul.f32 %v9475_v56, %v9475_v56  ;;  %v7135_v38 = vld [vmem:[%s9863_s6 + $0x208] ss:$16 sps:$4 sm:$0xff]   ;;  %v7143_v9 = vld [vmem:[%s9863_s6 + $0x3ec] ss:$16 sps:$4 sm:$0xff]  }
 0x3ee   : > { %v4305_v50 = vpop.f32.mrf.mxu1  ;;  %v4346_v41 = vpop.f32.mrf.mxu0  ;;  %v9494_v27 = vpack.c.bf16 %v9473_v40, %v9473_v40  ;;  %v9506_v46 = vpack.c.bf16 %v9475_v56, %v9475_v56  ;;  %v7138_v0 = vld [vmem:[%s9863_s6 + $0x1e8] ss:$16 sps:$4 sm:$0xff]   ;;  %v7146_v33 = vld [vmem:[%s9863_s6 + $0x1cc] ss:$16 sps:$4 sm:$0xff]  }
 0x3ef   : > { %v5308_v42 = vmul.f32 %v9479_v34, %v9479_v34  ;;  %v4350_v4 = vpack.c.bf16 %v9479_v34, %v9479_v34  ;;  %v4352_v3 = vpack.c.bf16 %v9481_v30, %v9481_v30  ;;  %v5310_v22 = vmul.f32 %v9481_v30, %v9481_v30  ;;  %v7141_v63 = vld [vmem:[%s9863_s6 + $0x3e8] ss:$16 sps:$4 sm:$0xff]  }
 0x3f0   : > { %v4306_v62 = vpop.f32.mrf.mxu1  ;;  %v4347_v44 = vpop.f32.mrf.mxu0  ;;  %v5312_v59 = vsel %vm5311_vm10, %v5307_v32, 0.0  ;;  %v5315_v60 = vsel %vm5311_vm10, %v5309_v23, 0.0  ;;  %v7149_v32 = vld [vmem:[%s9863_s6 + $0x3cc] ss:$16 sps:$4 sm:$0xff]   ;;  %v7144_v50 = vld [vmem:[%s9863_s6 + $0x1c8] ss:$16 sps:$4 sm:$0xff]  }
 0x3f1   : > { %5175 = vmatprep.mubr.bf16.mxu1 %v4350_v4  ;;  %v5313_v36 = vsel %vm5311_vm10, %v5308_v42, 0.0  ;;  %5216 = vmatprep.mubr.bf16.mxu0 %v4352_v3  ;;  %v5317_v8 = vsel %vm5311_vm10, %v5310_v22, 0.0  ;;  %v7147_v41 = vld [vmem:[%s9863_s6 + $0x3c8] ss:$16 sps:$4 sm:$0xff]   ;;  %v7152_v42 = vld [vmem:[%s9863_s6 + $0x1ac] ss:$16 sps:$4 sm:$0xff]  }
 0x3f2   : > { %5176 = vmatmul.mubr.bf16.vlgmr.msra.gmra.mxu1 %v9494_v27  ;;  %v5314_v39 = vadd.f32 %v5313_v36, %v5312_v59  ;;  %5217 = vmatmul.mubr.bf16.vlgmr.msra.gmra.mxu0 %v9506_v46  ;;  %v7153_v23 = vld [vmem:[%s9863_s6 + $0x3a8] ss:$16 sps:$4 sm:$0xff]   ;;  %v7164_v44 = vld [vmem:[%s9863_s6 + $0x16c] ss:$16 sps:$4 sm:$0xff]  }
 0x3f3   : > { %5226 = vmatpush1.bf16.msra.mxu1 %v7090_v17  ;;  %5267 = vmatpush1.bf16.msra.mxu0 %v7093_v55  ;;  %v7150_v17 = vld [vmem:[%s9863_s6 + $0x1a8] ss:$16 sps:$4 sm:$0xff]   ;;  %v7161_v55 = vld [vmem:[%s9863_s6 + $0x38c] ss:$16 sps:$4 sm:$0xff]  }
 0x3f4   : > { %5227 = vmatprep.subr.bf16.mxu1 %v7098_v58  ;;  %v5316_v7 = vadd.f32 %v5315_v60, %v5314_v39  ;;  %5268 = vmatprep.subr.bf16.mxu0 %v7101_v43  ;;  %v7156_v58 = vld [vmem:[%s9863_s6 + $0x188] ss:$16 sps:$4 sm:$0xff]   ;;  %v7167_v43 = vld [vmem:[%s9863_s6 + $0x36c] ss:$16 sps:$4 sm:$0xff]  }
 0x3f5   : > { %5257 = vmatprep.mubr.bf16.mxu1 %v4350_v4  ;;  %5298 = vmatprep.mubr.bf16.mxu0 %v4352_v3  ;;  %v7155_v4 = vld [vmem:[%s9863_s6 + $0x3ac] ss:$16 sps:$4 sm:$0xff]   ;;  %v7159_v62 = vld [vmem:[%s9863_s6 + $0x388] ss:$16 sps:$4 sm:$0xff]  }
 0x3f6   : > { %v5318_v12 = vadd.f32 %v5317_v8, %v5316_v7  ;;  %v7158_v3 = vld [vmem:[%s9863_s6 + $0x18c] ss:$16 sps:$4 sm:$0xff]   ;;  %v7162_v22 = vld [vmem:[%s9863_s6 + $0x168] ss:$16 sps:$4 sm:$0xff]  }
 0x3f7   : > { %5228 = vmatpush1.bf16.msra.mxu1 %v7096_v13  ;;  %5269 = vmatpush1.bf16.msra.mxu0 %v7099_v49  ;;  %v7165_v59 = vld [vmem:[%s9863_s6 + $0x368] ss:$16 sps:$4 sm:$0xff]   ;;  %v7170_v36 = vld [vmem:[%s9863_s6 + $0x14c] ss:$16 sps:$4 sm:$0xff]  }
 0x3f8   : > { %5319 = vadd.xlane.f32.xlu0 %v5318_v12  ;;  %5229 = vmatprep.subr.bf16.mxu1 %v7104_v57  ;;  %v7173_v39 = vld [vmem:[%s9863_s6 + $0x34c] ss:$16 sps:$4 sm:$0xff]   ;;  %v7168_v13 = vld [vmem:[%s9863_s6 + $0x148] ss:$16 sps:$4 sm:$0xff]  }
 0x3f9   : > { %5270 = vmatprep.subr.bf16.mxu0 %v7107_v28  ;;  %v7171_v60 = vld [vmem:[%s9863_s6 + $0x348] ss:$16 sps:$4 sm:$0xff]   ;;  %v7176_v49 = vld [vmem:[%s9863_s6 + $0x12c] ss:$16 sps:$4 sm:$0xff]  }
 0x3fa   : > { %v7179_v7 = vld [vmem:[%s9863_s6 + $0x32c] ss:$16 sps:$4 sm:$0xff]   ;;  %v7174_v8 = vld [vmem:[%s9863_s6 + $0x128] ss:$16 sps:$4 sm:$0xff]  }
 0x3fb   : > { %5230 = vmatpush1.bf16.msra.mxu1 %v7102_v29  ;;  %5271 = vmatpush1.bf16.msra.mxu0 %v7105_v25  ;;  %v7177_v57 = vld [vmem:[%s9863_s6 + $0x328] ss:$16 sps:$4 sm:$0xff]   ;;  %v7182_v28 = vld [vmem:[%s9863_s6 + $0x10c] ss:$16 sps:$4 sm:$0xff]  }
 0x3fc   : > { %5231 = vmatprep.subr.bf16.mxu1 %v7110_v2  ;;  %5272 = vmatprep.subr.bf16.mxu0 %v7113_v10  ;;  %v7185_v12 = vld [vmem:[%s9863_s6 + $0x30c] ss:$16 sps:$4 sm:$0xff]   ;;  %v7180_v29 = vld [vmem:[%s9863_s6 + $0x108] ss:$16 sps:$4 sm:$0xff]  }
 0x3fd   : > { %v7183_v25 = vld [vmem:[%s9863_s6 + $0x308] ss:$16 sps:$4 sm:$0xff]  }
 0x3fe   : > { %v7186_v2 = vld [vmem:[%s9865_s8 + $0x78] sm:$0xff]  }
 0x3ff   : > { %5232 = vmatpush1.bf16.msra.mxu1 %v7108_v47  ;;  %5273 = vmatpush1.bf16.msra.mxu0 %v7111_v18  ;;  %v7187_v10 = vld [vmem:[%s9865_s8 + $0x38] sm:$0xff]   ;;  %v7188_v47 = vld [vmem:[%s9865_s8 + $0x70] sm:$0xff]  }
 0x400   : > { %5233 = vmatprep.subr.bf16.mxu1 %v7116_v26  ;;  %5274 = vmatprep.subr.bf16.mxu0 %v7119_v1  ;;  %v7189_v18 = vld [vmem:[%s9865_s8 + $0x30] sm:$0xff]   ;;  %v7190_v26 = vld [vmem:[%s9865_s8 + $0x68] sm:$0xff]  }
 0x401   : > { %v7191_v1 = vld [vmem:[%s9865_s8 + $0x28] sm:$0xff]  }
 0x403   : > { %5234 = vmatpush1.bf16.msra.mxu1 %v7114_v20  ;;  %5275 = vmatpush1.bf16.msra.mxu0 %v7117_v14  ;;  %v7194_v20 = vld [vmem:[%s9865_s8 + $0x58] sm:$0xff]  }
 0x404   : > { %5235 = vmatprep.subr.bf16.mxu1 %v7122_v54  ;;  %5276 = vmatprep.subr.bf16.mxu0 %v7125_v31  ;;  %v7202_v14 = vld [vmem:[%s9865_s8 + $0xf8] sm:$0xff]   ;;  %v7204_v31 = vld [vmem:[%s9865_s8 + $0xf0] sm:$0xff]  }
 0x405   : > { %v7203_v54 = vld [vmem:[%s9865_s8 + $0xb8] sm:$0xff]  }
 0x407   : > { %5236 = vmatpush1.bf16.msra.mxu1 %v7120_v19  ;;  %5277 = vmatpush1.bf16.msra.mxu0 %v7123_v11  ;;  %v7195_v19 = vld [vmem:[%s9865_s8 + $0x18] sm:$0xff]   ;;  %v7205_v11 = vld [vmem:[%s9865_s8 + $0xb0] sm:$0xff]  }
 0x408   : > { %5237 = vmatprep.subr.bf16.mxu1 %v7128_v35  ;;  %5278 = vmatprep.subr.bf16.mxu0 %v7131_v6  ;;  %v7196_v35 = vld [vmem:[%s9865_s8 + $0x50] sm:$0xff]   ;;  %v7206_v6 = vld [vmem:[%s9865_s8 + $0xe8] sm:$0xff]  }
 0x40b   : > { %5238 = vmatpush1.bf16.msra.mxu1 %v7126_v53  ;;  %5279 = vmatpush1.bf16.msra.mxu0 %v7129_v5  ;;  %v7197_v53 = vld [vmem:[%s9865_s8 + $0x10] sm:$0xff]   ;;  %v7207_v5 = vld [vmem:[%s9865_s8 + $0xa8] sm:$0xff]  }
 0x40c   : > { %5239 = vmatprep.subr.bf16.mxu1 %v7134_v48  ;;  %5280 = vmatprep.subr.bf16.mxu0 %v7137_v61  ;;  %v7198_v48 = vld [vmem:[%s9865_s8 + $0x48] sm:$0xff]   ;;  %v7208_v61 = vld [vmem:[%s9865_s8 + $0xe0] sm:$0xff]  }
 0x40f   : > { %5240 = vmatpush1.bf16.msra.mxu1 %v7132_v52  ;;  %5281 = vmatpush1.bf16.msra.mxu0 %v7135_v38  ;;  %v7199_v52 = vld [vmem:[%s9865_s8 + $0x8] sm:$0xff]   ;;  %v7209_v38 = vld [vmem:[%s9865_s8 + $0xa0] sm:$0xff]  }
 0x410   : > { %5241 = vmatprep.subr.bf16.mxu1 %v7140_v21  ;;  %5282 = vmatprep.subr.bf16.mxu0 %v7143_v9  ;;  %v7200_v21 = vld [vmem:[%s9865_s8 + $0x40] sm:$0xff]   ;;  %v7210_v9 = vld [vmem:[%s9865_s8 + $0xd8] sm:$0xff]  }
 0x413   : > { %5242 = vmatpush2.bf16.msra.mxu1 %v7138_v0  ;;  %5283 = vmatpush2.bf16.msra.mxu0 %v7141_v63  ;;  %v7201_v0 = vld [vmem:[%s9865_s8] sm:$0xff]   ;;  %v7211_v63 = vld [vmem:[%s9865_s8 + $0x98] sm:$0xff]  }
 0x414   : > { %5243 = vmatprep.subr.bf16.mxu1 %v7146_v33  ;;  %5284 = vmatprep.subr.bf16.mxu0 %v7149_v32  ;;  %v7212_v33 = vld [vmem:[%s9865_s8 + $0xd0] sm:$0xff]  }
 0x415   : > { %v7213_v32 = vld [vmem:[%s9865_s8 + $0x90] sm:$0xff]  }
 0x417   : > { %5244 = vmatpush2.bf16.msra.mxu1 %v7144_v50  ;;  %5285 = vmatpush2.bf16.msra.mxu0 %v7147_v41  ;;  %v7214_v50 = vld [vmem:[%s9865_s8 + $0xc8] sm:$0xff]  }
 0x418   : > { %5245 = vmatprep.subr.bf16.mxu1 %v7152_v42  ;;  %5286 = vmatprep.subr.bf16.mxu0 %v7155_v4  ;;  %v7215_v41 = vld [vmem:[%s9865_s8 + $0x88] sm:$0xff]   ;;  %v7216_v42 = vld [vmem:[%s9865_s8 + $0xc0] sm:$0xff]  }
 0x419   : > { %v7217_v4 = vld [vmem:[%s9865_s8 + $0x80] sm:$0xff]  }
 0x41b   : > { %5246 = vmatpush2.bf16.msra.mxu1 %v7150_v17  ;;  %5287 = vmatpush2.bf16.msra.mxu0 %v7153_v23 }
 0x41c   : > { %5247 = vmatprep.subr.bf16.mxu1 %v7158_v3  ;;  %5288 = vmatprep.subr.bf16.mxu0 %v7161_v55 }
 0x41f   : > { %5248 = vmatpush2.bf16.msra.mxu1 %v7156_v58  ;;  %5289 = vmatpush2.bf16.msra.mxu0 %v7159_v62 }
 0x420   : > { %5249 = vmatprep.subr.bf16.mxu1 %v7164_v44  ;;  %5290 = vmatprep.subr.bf16.mxu0 %v7167_v43 }
 0x423   : > { %5250 = vmatpush2.bf16.msra.mxu1 %v7162_v22  ;;  %5291 = vmatpush2.bf16.msra.mxu0 %v7165_v59 }
 0x424   : > { %5251 = vmatprep.subr.bf16.mxu1 %v7170_v36  ;;  %5292 = vmatprep.subr.bf16.mxu0 %v7173_v39 }
 0x427   : > { %5252 = vmatpush2.bf16.msra.mxu1 %v7168_v13  ;;  %5293 = vmatpush2.bf16.msra.mxu0 %v7171_v60  ;;  %v9922_v13 = vlaneseq }
 0x428   : > { %5253 = vmatprep.subr.bf16.mxu1 %v7176_v49  ;;  %5294 = vmatprep.subr.bf16.mxu0 %v7179_v7 }
 0x429   : > { %vm5358_vm11 = vcmp.lt.s32.totalorder %v9922_v13, 512 }
 0x42b   : > { %5254 = vmatpush2.bf16.msra.mxu1 %v7174_v8  ;;  %5295 = vmatpush2.bf16.msra.mxu0 %v7177_v57 }
 0x42c   : > { %5255 = vmatprep.subr.bf16.mxu1 %v7182_v28  ;;  %5296 = vmatprep.subr.bf16.mxu0 %v7185_v12 }
 0x42f   : > { %5256 = vmatpush2.bf16.msra.mxu1 %v7180_v29  ;;  %5297 = vmatpush2.bf16.msra.mxu0 %v7183_v25 }
 0x430   : > { %6434 = vmatprep.subr.bf16.mxu1 %v7186_v2  ;;  %6456 = vmatprep.subr.bf16.mxu0 %v7202_v14 }
 0x432   : > { %5258 = vmatmul.mubr.bf16.vlgmr.msra.gmra.mxu1 %v9494_v27  ;;  %5299 = vmatmul.mubr.bf16.vlgmr.msra.gmra.mxu0 %v9506_v46  ;;  %v7192_v27 = vld [vmem:[%s9865_s8 + $0x60] sm:$0xff]  }
 0x433   : > { %6435 = vmatpush3.bf16.msra.mxu1 %v7187_v10  ;;  %v7193_v46 = vld [vmem:[%s9865_s8 + $0x20] sm:$0xff]   ;;  %6457 = vmatpush3.bf16.msra.mxu0 %v7203_v54 }
 0x434   : > { %6436 = vmatprep.subr.bf16.mxu1 %v7188_v47  ;;  %6458 = vmatprep.subr.bf16.mxu0 %v7204_v31 }
 0x437   : > { %6437 = vmatpush3.bf16.msra.mxu1 %v7189_v18  ;;  %6459 = vmatpush3.bf16.msra.mxu0 %v7205_v11 }
 0x438   : > { %6438 = vmatprep.subr.bf16.mxu1 %v7190_v26  ;;  %6460 = vmatprep.subr.bf16.mxu0 %v7206_v6 }
 0x43b   : > { %6439 = vmatpush3.bf16.msra.mxu1 %v7191_v1  ;;  %6461 = vmatpush3.bf16.msra.mxu0 %v7207_v5 }
 0x43c   : > { %6440 = vmatprep.subr.bf16.mxu1 %v7192_v27  ;;  %6462 = vmatprep.subr.bf16.mxu0 %v7208_v61 }
 0x43f   : > { %6441 = vmatpush3.bf16.msra.mxu1 %v7193_v46  ;;  %6463 = vmatpush3.bf16.msra.mxu0 %v7209_v38 }
 0x440   : > { %6442 = vmatprep.subr.bf16.mxu1 %v7194_v20  ;;  %6464 = vmatprep.subr.bf16.mxu0 %v7210_v9 }
 0x443   : > { %6443 = vmatpush3.bf16.msra.mxu1 %v7195_v19  ;;  %6465 = vmatpush3.bf16.msra.mxu0 %v7211_v63 }
 0x444   : > { %6444 = vmatprep.subr.bf16.mxu1 %v7196_v35  ;;  %6466 = vmatprep.subr.bf16.mxu0 %v7212_v33 }
 0x447   : > { %6445 = vmatpush3.bf16.msra.mxu1 %v7197_v53  ;;  %6467 = vmatpush3.bf16.msra.mxu0 %v7213_v32 }
 0x448   : > { %6446 = vmatprep.subr.bf16.mxu1 %v7198_v48  ;;  %6468 = vmatprep.subr.bf16.mxu0 %v7214_v50 }
 0x44b   : > { %6447 = vmatpush3.bf16.msra.mxu1 %v7199_v52  ;;  %6469 = vmatpush3.bf16.msra.mxu0 %v7215_v41  ;;  %v5429_v52 = vld [vmem:[%s9866_s9] sm:$0x1] }
 0x44c   : > { %6448 = vmatprep.subr.bf16.mxu1 %v7200_v21  ;;  %6470 = vmatprep.subr.bf16.mxu0 %v7216_v42 }
 0x44f   : > { %6449 = vmatpush3.bf16.msra.mxu1 %v7201_v0  ;;  %6471 = vmatpush3.bf16.msra.mxu0 %v7217_v4 }
 0x481   : > { %v5320_v17 = vpop.xlane.xlu0 %5319 }
 0x482   : > { %v5321_v23 = vmax.f32 %v5320_v17, 1e-24 }
 0x484   : > { %7218 = vrsqrt.f32 %v5321_v23 }
 0x491   : > { %v7219_v3 = vpop.eup %7218 }
 0x492   : > { %v5323_v55 = vmul.f32 %v7219_v3, %v9473_v40  ;;  %v5324_v58 = vmul.f32 %v7219_v3, %v9479_v34  ;;  %v5325_v62 = vmul.f32 %v7219_v3, %v9475_v56  ;;  %v5326_v44 = vmul.f32 %v7219_v3, %v9481_v30  ;;  %v4481_v56 = vld [vmem:[%s9864_s7] sm:$0xf] }
 0x493   : > { %v5126_v34 = vrot.slane %v4481_v56, %v4249_v16  ;;  %v5130_v30 = vrot.slane %v4481_v56, %v4253_v45  ;;  %v5134_v16 = vrot.slane %v4481_v56, %v4257_v37  ;;  %v5138_v45 = vrot.slane %v4481_v56, %v4261_v24 }
 0x494   : > { %v5331_v43 = vcombine.low %v5323_v55, %v5324_v58  ;;  %v5332_v22 = vcombine.low %v5325_v62, %v5326_v44 }
 0x496   : > { %v5339_v59 = vrot.slane %v5331_v43, %v9919_v51  ;;  %v5346_v36 = vrot.slane %v5332_v22, %v9919_v51 }
 0x498   : > { %v5347_v39 = vcombine.low %v5339_v59, %v5346_v36 }
 0x49a   : > { %v5354_v40 = vrot.slane %v5347_v39, %v9919_v51 }
 0x49c   : > { %5360 = vst.msk [vmem:[%s394_s12] sm:$0xf] %vm5358_vm11, %v5354_v40  ;;  %s9822_s12 = scalar_lea.hbm %s9868_s11, %s6235_s0 }
 0x4b2   : > { %v5177_v60 = vpop.f32.mrf.mxu1  ;;  %v5218_v7 = vpop.f32.mrf.mxu0 }
 0x4b3   : > { %v5178_v49 = vadd.f32 %v5177_v60, %v5126_v34 }
 0x4b4   : > { %v5179_v8 = vpop.f32.mrf.mxu1  ;;  %v5220_v28 = vpop.f32.mrf.mxu0 }
 0x4b5   : > { %v5180_v57 = vadd.f32 %v5179_v8, %v5130_v30  ;;  %v5219_v12 = vadd.f32 %v5218_v7, %v5178_v49 }
 0x4b6   : > { %v5181_v29 = vpop.f32.mrf.mxu1  ;;  %v5222_v25 = vpop.f32.mrf.mxu0 }
 0x4b7   : > { %v5221_v51 = vadd.f32 %v5220_v28, %v5180_v57  ;;  %v5361_v18 = vpack.c.bf16 %v5219_v12, %v5219_v12 }
 0x4b8   : > { %v5182_v2 = vpop.f32.mrf.mxu1  ;;  %v5223_v47 = vpop.f32.mrf.mxu0 }
 0x4b9   : > { %v5362_v10 = vpack.c.bf16 %v5221_v51, %v5221_v51 }
 0x4bb   : > { %5654 = vmatprep.mubr.bf16.mxu1 %v5362_v10 }
 0x4bc   : > { %5655 = vmatmul.mubr.bf16.vlgmr.msra.gmra.mxu1 %v5361_v18 }
 0x4f2   : > { %v5259_v26 = vpop.f32.mrf.mxu1  ;;  %v5300_v27 = vpop.f32.mrf.mxu0 }
 0x4f3   : > { %v5260_v1 = vadd.f32 %v5259_v26, %v5134_v16 }
 0x4f4   : > { %v5261_v46 = vpop.f32.mrf.mxu1  ;;  %v5302_v14 = vpop.f32.mrf.mxu0 }
 0x4f5   : > { %v5262_v20 = vadd.f32 %v5261_v46, %v5138_v45  ;;  %v5301_v54 = vadd.f32 %v5300_v27, %v5260_v1 }
 0x4f6   : > { %v5263_v31 = vpop.f32.mrf.mxu1  ;;  %v5304_v11 = vpop.f32.mrf.mxu0 }
 0x4f7   : > { %v5303_v19 = vadd.f32 %v5302_v14, %v5262_v20  ;;  %v5363_v5 = vpack.c.bf16 %v5301_v54, %v5301_v54 }
 0x4f8   : > { %v5264_v35 = vpop.f32.mrf.mxu1  ;;  %v5305_v53 = vpop.f32.mrf.mxu0 }
 0x4f9   : > { %v5364_v6 = vpack.c.bf16 %v5303_v19, %v5303_v19 }
 0x4fb   : > { %5694 = vmatprep.mubr.bf16.mxu0 %v5364_v6 }
 0x4fc   : > { %5695 = vmatmul.mubr.bf16.vlgmr.msra.gmra.mxu0 %v5363_v5 }
 0x57c   : > { %v6450_v15 = vpop.f32.mrf.mxu1 }
 0x57e   : > { %v6451_v37 = vpop.f32.mrf.mxu1 }
 0x57f   : > { %v6452_v61 = vadd.f32 %v6451_v37, %v6450_v15 }
 0x580   : > { %v6453_v24 = vpop.f32.mrf.mxu1 }
 0x581   : > { %v5657_v9 = vadd.f32 %v6452_v61, %v5429_v52 }
 0x582   : > { %v6454_v48 = vpop.f32.mrf.mxu1 }
 0x5bc   : > { %v6472_v38 = vpop.f32.mrf.mxu0 }
 0x5be   : > { %v6473_v21 = vpop.f32.mrf.mxu0 }
 0x5bf   : > { %v6474_v0 = vadd.f32 %v6473_v21, %v6472_v38 }
 0x5c0   : > { %v6475_v63 = vpop.f32.mrf.mxu0 }
 0x5c1   : > { %v5697_v33 = vadd.f32 %v6474_v0, %v5657_v9 }
 0x5c2   : > { %v6476_v32 = vpop.f32.mrf.mxu0 }
 0x5c3   : > { %5702 = vst [vmem:[%s385_s22] sm:$0x1] %v5697_v33 }
 0x5c4   : > { %7233 = shalt.err (!%p7230_p3)
}
 0x5c5   : > { %s7234_s0 = scalar_lea.hbm %s9822_s12, 16  ;;  %s7238_s25 = scalar_lea.hbm %s9868_s11, 32 }
 0x5c6   : > { %p7235_p4 = scmp.ne.s32.totalorder %s9822_s12, %s7234_s0  ;;  %p7239_p9 = scmp.lt.s32.totalorder %s9822_s12, %s9868_s11 }
 0x5c7   : > { %p7240_p10 = scmp.lt.s32.totalorder %s7238_s25, %s7234_s0 }
 0x5c8   : > { %p7236_p7 = pnand %p7235_p4, %p7385_p5 }
 0x5c9   : > { %p7241_p11 = por %p7240_p10, %p7239_p9 }
 0x5ca   : > { %p7237_p8 = pneg %p7236_p7 }
 0x5cc   : > { %p7242_p12 = pnand %p7241_p11, %p7237_p8 }
 0x5ce   : > { %7245 = shalt.err (!%p7242_p12)
}
 0x5cf   : > { %6841 = dma.vmem_to_hbm [thread:$0]  (%p7385_p5), %s5724_s24, 16, %s9822_s12, %s5708_s13  }
 0x5d0 PF: > { %p6847_p13 = scmp.ge.s32.totalorder %s7280_s20, 2  ;;  %s5742_s14 = sand.u32 1, %s7268_s17  }
 0x5d1   : > { %s5743_s29 = scalar_lea.sflag [#allocation3], %s5742_s14 }
 0x5d2   : > { %p6844_p0 = pnand %p6847_p13, %p7389_p6 }
 0x5d4   : > { %p6845_p1 = pneg %p6844_p0 }
 0x5d6   : > { %7263 = dma.done.wait (%p6845_p1), %s5743_s29, 16  }
 0x5d7   : > { %7265 = vsyncadd (%p6845_p1), %s5743_s29, 4294967280  ;;  %p22_p2 = scmp.ge.s32.totalorder %s7372_s23, 4   ;;  %s9923_s17 = smov %s7272_s18 }
 0x5d8   : > { %s9924_s18 = smov %s7276_s19  ;;  %s9925_s19 = smov %s7383_s26 }
 0x5d9   : > { %s9926_s20 = smov %s7372_s23  ;;  %24 = sbr.rel (!%p22_p2) target bundleno = 5 (0x5), region = 115 }
 0x5de   :  { %5747 = vsyncpa [#allocation3], 1 }
 0x5df   :  { %5749 = vsyncpa [#allocation3 + $0x1], 1 }

</bundles_post_ra>
